<compile_context>
chip_gen: v5e
topology: v5e:2x2
jax: 0.10.0
libtpu: 0.0.40
codegen_flags: <defaults>
</compile_context>

<pallas_src>
import jax
import jax.numpy as jnp
from jax import lax
from jax.experimental import pallas as pl
from jax.experimental.pallas import tpu as pltpu

K_TAPS = 3  # TCN kernel_size


def tlab_fused_kernel(
    # inputs (per-batch-element block for x; full arrays for weights)
    x_ref,                                       # (T, Din)
    wx0_ref, wh0_ref, b0_ref,                    # (Din,4H) (H,4H) (1,4H)
    wx1_ref, wh1_ref, b1_ref,                    # (H,4H)   (H,4H) (1,4H)
    pw_ref, pb_ref,                              # (Din,H)  (1,H)
    c0w1_ref, c0b1_ref, c0w2_ref, c0b2_ref,      # (3,Din,H)(1,H)(3,H,H)(1,H)
    c0wd_ref, c0bd_ref,                          # (Din,H)  (1,H)
    c1w1_ref, c1b1_ref, c1w2_ref, c1b2_ref,      # (3,H,H)  (1,H)(3,H,H)(1,H)
    wq_ref, bq_ref, wk_ref, bk_ref, wv_ref, bv_ref,
    # output
    o_ref,                                       # (T, H)
    # scratch
    hseq_ref,                                    # VMEM (T, H) f32
):
    T, _ = x_ref.shape
    H = wh0_ref.shape[0]
    f32 = jnp.float32

    x = x_ref[...].astype(f32)                   # (T, Din)

    # ------------------------- LSTM branch ----------------------------------
    def lstm_layer(inp, wx_r, wh_r, b_r):
        # Hoisted input projection: one lane-dense (T, 4H) matmul + bias.
        gx = (jnp.dot(inp, wx_r[...].astype(f32), preferred_element_type=f32)
              + b_r[...].astype(f32))                         # (T, 4H)
        wh = wh_r[...].astype(f32)                            # (H, 4H)
        h = jnp.zeros((1, H), f32)
        c = jnp.zeros((1, H), f32)
        for t in range(T):                                    # static unroll
            g = gx[t:t + 1, :] + jnp.dot(h, wh, preferred_element_type=f32)
            i_g = jax.nn.sigmoid(g[:, 0 * H:1 * H])
            f_g = jax.nn.sigmoid(g[:, 1 * H:2 * H])
            g_g = jnp.tanh(g[:, 2 * H:3 * H])
            o_g = jax.nn.sigmoid(g[:, 3 * H:4 * H])
            c = f_g * c + i_g * g_g
            h = o_g * jnp.tanh(c)
            hseq_ref[t:t + 1, :] = h                          # buffer in VMEM scratch
        return hseq_ref[...]                                  # (T, H)

    h1 = lstm_layer(x, wx0_ref, wh0_ref, b0_ref)
    h2 = lstm_layer(h1, wx1_ref, wh1_ref, b1_ref)
    # residual_embeddings: lstm_out + Linear(x)
    lstm_feat = h2 + (jnp.dot(x, pw_ref[...].astype(f32),
                              preferred_element_type=f32)
                      + pb_ref[...].astype(f32))              # (T, H)

    # ------------------------- TCN branch ------------------------------------
    row_ids = lax.broadcasted_iota(jnp.int32, (T, 1), 0)      # hoisted once

    def shift_down(a, s):
        # Causal right-shift in time by s (first s rows -> 0), in-register.
        if s == 0:
            return a
        if s >= T:
            return jnp.zeros_like(a)
        rolled = pltpu.roll(a, shift=s, axis=0)               # XLU sublane rotate
        return jnp.where(row_ids >= s, rolled, 0.0)

    def causal_conv(inp, w_r, b_r, dil, relu):
        # Dilated causal Conv1d as a sum over K time-shifted matmuls.
        acc = b_r[...].astype(f32)                            # (1, Cout)
        for j in range(K_TAPS):
            s = (K_TAPS - 1 - j) * dil
            acc = acc + jnp.dot(shift_down(inp, s), w_r[j].astype(f32),
                                preferred_element_type=f32)
        if relu:
            acc = jnp.maximum(acc, 0.0)
        return acc                                            # (T, Cout)

    # block 0: Din -> H, dilation 1, 1x1-conv residual (Din != H)
    b0_o1 = causal_conv(x, c0w1_ref, c0b1_ref, 1, True)
    b0_o2 = causal_conv(b0_o1, c0w2_ref, c0b2_ref, 1, True)
    b0_res = (jnp.dot(x, c0wd_ref[...].astype(f32), preferred_element_type=f32)
              + c0bd_ref[...].astype(f32))
    tcn0 = jnp.maximum(b0_o2 + b0_res, 0.0)
    # block 1: H -> H, dilation 2, identity residual
    b1_o1 = causal_conv(tcn0, c1w1_ref, c1b1_ref, 2, True)
    b1_o2 = causal_conv(b1_o1, c1w2_ref, c1b2_ref, 2, True)
    tcn_feat = jnp.maximum(b1_o2 + tcn0, 0.0)                 # (T, H)

    # --------------------- self-attention fusion -----------------------------
    combined = lstm_feat + tcn_feat                           # (T, H)

    def lin(w_r, b_r):
        return (jnp.dot(combined, w_r[...].astype(f32),
                        preferred_element_type=f32) + b_r[...].astype(f32))

    q = lin(wq_ref, bq_ref)
    k = lin(wk_ref, bk_ref)
    v = lin(wv_ref, bv_ref)
    # scores = Q @ K^T (no 1/sqrt(d) scale — matches the PyTorch module)
    s = lax.dot_general(q, k, (((1,), (1,)), ((), ())),
                        preferred_element_type=f32)           # (T, T)
    s = s - jnp.max(s, axis=-1, keepdims=True)
    e = jnp.exp(s)
    attw = e * pl.reciprocal(jnp.sum(e, axis=-1, keepdims=True), approx=True)
    att = jnp.dot(attw, v, preferred_element_type=f32)        # (T, H)
    o_ref[...] = (combined + att).astype(o_ref.dtype)


# -----------------------------------------------------------------------------
# Wrapper: single pallas_call, batch-parallel grid
# -----------------------------------------------------------------------------
def tlab_forward(x, p):
    B, T, Din = x.shape
    H = p["lstm_wh0"].shape[0]

    weight_names = (
        "lstm_wx0", "lstm_wh0", "lstm_b0",
        "lstm_wx1", "lstm_wh1", "lstm_b1",
        "proj_w", "proj_b",
        "tcn0_w1", "tcn0_b1", "tcn0_w2", "tcn0_b2", "tcn0_wd", "tcn0_bd",
        "tcn1_w1", "tcn1_b1", "tcn1_w2", "tcn1_b2",
        "wq", "bq", "wk", "bk", "wv", "bv",
    )
    weights = [p[n] for n in weight_names]

    def full_spec(a):
        # whole-array block, same block every grid step -> stays VMEM-resident
        return pl.BlockSpec(a.shape, lambda b: (0,) * a.ndim)

    in_specs = ([pl.BlockSpec((None, T, Din), lambda b: (b, 0, 0))]
                + [full_spec(w) for w in weights])
    out_spec = pl.BlockSpec((None, T, H), lambda b: (b, 0, 0))

    # Advisory cost estimate (rough) so XLA schedules the custom call sanely.
    flops = int(B * (
        2 * T * 4 * H * (Din + 3 * H)            # LSTM input+hidden projections
        + 2 * T * Din * H                        # residual projection
        + 2 * T * H * 3 * (Din + 3 * H)          # TCN convs (K=3 taps)
        + 2 * T * Din * H                        # 1x1 downsample
        + 3 * 2 * T * H * H                      # Q/K/V linears
        + 2 * 2 * T * T * H))                    # QK^T and PV
    transcend = int(B * (10 * T * H + T * T))
    bytes_acc = int(4 * (x.size + sum(w.size for w in weights) + B * T * H))

    return pl.pallas_call(
        tlab_fused_kernel,
        grid=(B,),
        in_specs=in_specs,
        out_specs=out_spec,
        out_shape=jax.ShapeDtypeStruct((B, T, H), jnp.float32),
        scratch_shapes=[pltpu.VMEM((T, H), jnp.float32)],
        compiler_params=pltpu.CompilerParams(
            dimension_semantics=("parallel",)),
        cost_estimate=pl.CostEstimate(
            flops=flops, transcendentals=transcend, bytes_accessed=bytes_acc),
    )(x, *weights)


# -----------------------------------------------------------------------------
# Parameter init (gate order i,f,g,o; gates concatenated to lane-dense 4H)
# -----------------------------------------------------------------------------
def init_params(key, input_dim, hidden_dim):
    keys = iter(jax.random.split(key, 32))

    def nrm(shape, scale=0.1):
        return (scale * jax.random.normal(next(keys), shape)).astype(jnp.float32)

    H = hidden_dim
    p = {}
    dims = [input_dim, H]
    for l in range(2):
        p[f"lstm_wx{l}"] = nrm((dims[l], 4 * H))
        p[f"lstm_wh{l}"] = nrm((H, 4 * H))
        p[f"lstm_b{l}"] = nrm((1, 4 * H))
    p["proj_w"] = nrm((input_dim, H))
    p["proj_b"] = nrm((1, H))
    chans = [input_dim, H, H]
    for i in range(2):
        cin, cout = chans[i], chans[i + 1]
        p[f"tcn{i}_w1"] = nrm((K_TAPS, cin, cout), 0.05)
        p[f"tcn{i}_b1"] = nrm((1, cout), 0.05)
        p[f"tcn{i}_w2"] = nrm((K_TAPS, cout, cout), 0.05)
        p[f"tcn{i}_b2"] = nrm((1, cout), 0.05)
        if cin != cout:
            p[f"tcn{i}_wd"] = nrm((cin, cout))
            p[f"tcn{i}_bd"] = nrm((1, cout))
    for n in ("q", "k", "v"):
        p[f"w{n}"] = nrm((H, H))
        p[f"b{n}"] = nrm((1, H))
    return p


if __name__ == "__main__":
    B, T, INPUT_DIM, HIDDEN_DIM = 2, 8, 16, 32

    key = jax.random.PRNGKey(0)
    kx, kp = jax.random.split(key)
    x = jax.random.normal(kx, (B, T, INPUT_DIM), dtype=jnp.float32)
    params = init_params(kp, INPUT_DIM, HIDDEN_DIM)

    out = jax.jit(tlab_forward)(x, params)
    out = jax.block_until_ready(out)
    assert out.shape == (B, T, HIDDEN_DIM)
    assert bool(jnp.all(jnp.isfinite(out)))
    print("KERNEL_OK")
</pallas_src>

<mosaic_0001>
module attributes {stable_mosaic.version = 11 : i64} {
  func.func @tlab_fused_kernel(%arg0: i32, %arg1: memref<1x8x16xf32, #tpu.memory_space<vmem>>, %arg2: memref<16x128xf32, #tpu.memory_space<vmem>>, %arg3: memref<32x128xf32, #tpu.memory_space<vmem>>, %arg4: memref<1x128xf32, #tpu.memory_space<vmem>>, %arg5: memref<32x128xf32, #tpu.memory_space<vmem>>, %arg6: memref<32x128xf32, #tpu.memory_space<vmem>>, %arg7: memref<1x128xf32, #tpu.memory_space<vmem>>, %arg8: memref<16x32xf32, #tpu.memory_space<vmem>>, %arg9: memref<1x32xf32, #tpu.memory_space<vmem>>, %arg10: memref<3x16x32xf32, #tpu.memory_space<vmem>>, %arg11: memref<1x32xf32, #tpu.memory_space<vmem>>, %arg12: memref<3x32x32xf32, #tpu.memory_space<vmem>>, %arg13: memref<1x32xf32, #tpu.memory_space<vmem>>, %arg14: memref<16x32xf32, #tpu.memory_space<vmem>>, %arg15: memref<1x32xf32, #tpu.memory_space<vmem>>, %arg16: memref<3x32x32xf32, #tpu.memory_space<vmem>>, %arg17: memref<1x32xf32, #tpu.memory_space<vmem>>, %arg18: memref<3x32x32xf32, #tpu.memory_space<vmem>>, %arg19: memref<1x32xf32, #tpu.memory_space<vmem>>, %arg20: memref<32x32xf32, #tpu.memory_space<vmem>>, %arg21: memref<1x32xf32, #tpu.memory_space<vmem>>, %arg22: memref<32x32xf32, #tpu.memory_space<vmem>>, %arg23: memref<1x32xf32, #tpu.memory_space<vmem>>, %arg24: memref<32x32xf32, #tpu.memory_space<vmem>>, %arg25: memref<1x32xf32, #tpu.memory_space<vmem>>, %arg26: memref<1x8x32xf32, #tpu.memory_space<vmem>>, %arg27: memref<8x32xf32, #tpu.memory_space<vmem>>) attributes {dimension_semantics = [#tpu.dimension_semantics<parallel>], iteration_bounds = array<i64: 2>, scalar_prefetch = 0 : i64, scratch_operands = 1 : i64, tpu.core_type = #tpu.core_type<tc>, window_params = [{transform_indices = @transform_0, window_bounds = array<i64: 1, 8, 16>}, {pipeline_mode = #tpu.pipeline_mode<synchronous>, transform_indices = @transform_1, window_bounds = array<i64: 16, 128>}, {pipeline_mode = #tpu.pipeline_mode<synchronous>, transform_indices = @transform_2, window_bounds = array<i64: 32, 128>}, {pipeline_mode = #tpu.pipeline_mode<synchronous>, transform_indices = @transform_3, window_bounds = array<i64: 1, 128>}, {pipeline_mode = #tpu.pipeline_mode<synchronous>, transform_indices = @transform_4, window_bounds = array<i64: 32, 128>}, {pipeline_mode = #tpu.pipeline_mode<synchronous>, transform_indices = @transform_5, window_bounds = array<i64: 32, 128>}, {pipeline_mode = #tpu.pipeline_mode<synchronous>, transform_indices = @transform_6, window_bounds = array<i64: 1, 128>}, {pipeline_mode = #tpu.pipeline_mode<synchronous>, transform_indices = @transform_7, window_bounds = array<i64: 16, 32>}, {pipeline_mode = #tpu.pipeline_mode<synchronous>, transform_indices = @transform_8, window_bounds = array<i64: 1, 32>}, {pipeline_mode = #tpu.pipeline_mode<synchronous>, transform_indices = @transform_9, window_bounds = array<i64: 3, 16, 32>}, {pipeline_mode = #tpu.pipeline_mode<synchronous>, transform_indices = @transform_10, window_bounds = array<i64: 1, 32>}, {pipeline_mode = #tpu.pipeline_mode<synchronous>, transform_indices = @transform_11, window_bounds = array<i64: 3, 32, 32>}, {pipeline_mode = #tpu.pipeline_mode<synchronous>, transform_indices = @transform_12, window_bounds = array<i64: 1, 32>}, {pipeline_mode = #tpu.pipeline_mode<synchronous>, transform_indices = @transform_13, window_bounds = array<i64: 16, 32>}, {pipeline_mode = #tpu.pipeline_mode<synchronous>, transform_indices = @transform_14, window_bounds = array<i64: 1, 32>}, {pipeline_mode = #tpu.pipeline_mode<synchronous>, transform_indices = @transform_15, window_bounds = array<i64: 3, 32, 32>}, {pipeline_mode = #tpu.pipeline_mode<synchronous>, transform_indices = @transform_16, window_bounds = array<i64: 1, 32>}, {pipeline_mode = #tpu.pipeline_mode<synchronous>, transform_indices = @transform_17, window_bounds = array<i64: 3, 32, 32>}, {pipeline_mode = #tpu.pipeline_mode<synchronous>, transform_indices = @transform_18, window_bounds = array<i64: 1, 32>}, {pipeline_mode = #tpu.pipeline_mode<synchronous>, transform_indices = @transform_19, window_bounds = array<i64: 32, 32>}, {pipeline_mode = #tpu.pipeline_mode<synchronous>, transform_indices = @transform_20, window_bounds = array<i64: 1, 32>}, {pipeline_mode = #tpu.pipeline_mode<synchronous>, transform_indices = @transform_21, window_bounds = array<i64: 32, 32>}, {pipeline_mode = #tpu.pipeline_mode<synchronous>, transform_indices = @transform_22, window_bounds = array<i64: 1, 32>}, {pipeline_mode = #tpu.pipeline_mode<synchronous>, transform_indices = @transform_23, window_bounds = array<i64: 32, 32>}, {pipeline_mode = #tpu.pipeline_mode<synchronous>, transform_indices = @transform_24, window_bounds = array<i64: 1, 32>}, {transform_indices = @transform_25, window_bounds = array<i64: 1, 8, 32>}]} {
    %c0 = arith.constant 0 : index
    %c0_0 = arith.constant 0 : index
    %c0_1 = arith.constant 0 : index
    %0 = vector.load %arg1[%c0, %c0_0, %c0_1] : memref<1x8x16xf32, #tpu.memory_space<vmem>>, vector<1x8x16xf32>
    %1 = vector.shape_cast %0 : vector<1x8x16xf32> to vector<8x16xf32>
    %c0_2 = arith.constant 0 : index
    %c0_3 = arith.constant 0 : index
    %2 = vector.load %arg2[%c0_2, %c0_3] : memref<16x128xf32, #tpu.memory_space<vmem>>, vector<16x128xf32>
    %cst = arith.constant dense<0.000000e+00> : vector<8x128xf32>
    %3 = tpu.matmul %1, %2, %cst {dimension_numbers = #tpu.dot_dimension_numbers<[1], [0], [0], [1], [0, 0, 1, 1], [], []>} : vector<8x16xf32>, vector<16x128xf32>, vector<8x128xf32> -> vector<8x128xf32>
    %c0_4 = arith.constant 0 : index
    %c0_5 = arith.constant 0 : index
    %4 = vector.load %arg4[%c0_4, %c0_5] : memref<1x128xf32, #tpu.memory_space<vmem>>, vector<1x128xf32>
    %5 = vector.broadcast %4 : vector<1x128xf32> to vector<8x128xf32>
    %6 = arith.addf %3, %5 : vector<8x128xf32>
    %c0_6 = arith.constant 0 : index
    %c0_7 = arith.constant 0 : index
    %7 = vector.load %arg3[%c0_6, %c0_7] : memref<32x128xf32, #tpu.memory_space<vmem>>, vector<32x128xf32>
    %cst_8 = arith.constant 0.000000e+00 : f32
    %8 = vector.broadcast %cst_8 : f32 to vector<1x32xf32>
    %cst_9 = arith.constant 0.000000e+00 : f32
    %9 = vector.broadcast %cst_9 : f32 to vector<1x32xf32>
    %10 = vector.extract_strided_slice %6 {offsets = [0, 0], sizes = [1, 128], strides = [1, 1]} : vector<8x128xf32> to vector<1x128xf32>
    %cst_10 = arith.constant dense<0.000000e+00> : vector<1x128xf32>
    %11 = tpu.matmul %8, %7, %cst_10 {dimension_numbers = #tpu.dot_dimension_numbers<[1], [0], [0], [1], [0, 0, 1, 1], [], []>} : vector<1x32xf32>, vector<32x128xf32>, vector<1x128xf32> -> vector<1x128xf32>
    %12 = arith.addf %10, %11 : vector<1x128xf32>
    %13 = vector.extract_strided_slice %12 {offsets = [0, 0], sizes = [1, 32], strides = [1, 1]} : vector<1x128xf32> to vector<1x32xf32>
    %14 = arith.negf %13 : vector<1x32xf32>
    %15 = math.exp %14 : vector<1x32xf32>
    %cst_11 = arith.constant 1.000000e+00 : f32
    %16 = vector.broadcast %cst_11 : f32 to vector<1x32xf32>
    %17 = arith.addf %16, %15 : vector<1x32xf32>
    %18 = arith.divf %16, %17 : vector<1x32xf32>
    %19 = vector.extract_strided_slice %12 {offsets = [0, 32], sizes = [1, 32], strides = [1, 1]} : vector<1x128xf32> to vector<1x32xf32>
    %20 = arith.negf %19 : vector<1x32xf32>
    %21 = math.exp %20 : vector<1x32xf32>
    %cst_12 = arith.constant 1.000000e+00 : f32
    %22 = vector.broadcast %cst_12 : f32 to vector<1x32xf32>
    %23 = arith.addf %22, %21 : vector<1x32xf32>
    %24 = arith.divf %22, %23 : vector<1x32xf32>
    %25 = vector.extract_strided_slice %12 {offsets = [0, 64], sizes = [1, 32], strides = [1, 1]} : vector<1x128xf32> to vector<1x32xf32>
    %26 = math.tanh %25 : vector<1x32xf32>
    %27 = vector.extract_strided_slice %12 {offsets = [0, 96], sizes = [1, 32], strides = [1, 1]} : vector<1x128xf32> to vector<1x32xf32>
    %28 = arith.negf %27 : vector<1x32xf32>
    %29 = math.exp %28 : vector<1x32xf32>
    %cst_13 = arith.constant 1.000000e+00 : f32
    %30 = vector.broadcast %cst_13 : f32 to vector<1x32xf32>
    %31 = arith.addf %30, %29 : vector<1x32xf32>
    %32 = arith.divf %30, %31 : vector<1x32xf32>
    %33 = arith.mulf %24, %9 : vector<1x32xf32>
    %34 = arith.mulf %18, %26 : vector<1x32xf32>
    %35 = arith.addf %33, %34 : vector<1x32xf32>
    %36 = math.tanh %35 : vector<1x32xf32>
    %37 = arith.mulf %32, %36 : vector<1x32xf32>
    %c0_14 = arith.constant 0 : index
    %c0_15 = arith.constant 0 : index
    %38 = vector.load %arg27[%c0_14, %c0_15] : memref<8x32xf32, #tpu.memory_space<vmem>>, vector<1x32xf32>
    tpu.vector_store %arg27[%c0_14, %c0_15], %37 {strides = array<i32>} : memref<8x32xf32, #tpu.memory_space<vmem>>, vector<1x32xf32>,
    %39 = vector.extract_strided_slice %6 {offsets = [1, 0], sizes = [1, 128], strides = [1, 1]} : vector<8x128xf32> to vector<1x128xf32>
    %cst_16 = arith.constant dense<0.000000e+00> : vector<1x128xf32>
    %40 = tpu.matmul %37, %7, %cst_16 {dimension_numbers = #tpu.dot_dimension_numbers<[1], [0], [0], [1], [0, 0, 1, 1], [], []>} : vector<1x32xf32>, vector<32x128xf32>, vector<1x128xf32> -> vector<1x128xf32>
    %41 = arith.addf %39, %40 : vector<1x128xf32>
    %42 = vector.extract_strided_slice %41 {offsets = [0, 0], sizes = [1, 32], strides = [1, 1]} : vector<1x128xf32> to vector<1x32xf32>
    %43 = arith.negf %42 : vector<1x32xf32>
    %44 = math.exp %43 : vector<1x32xf32>
    %cst_17 = arith.constant 1.000000e+00 : f32
    %45 = vector.broadcast %cst_17 : f32 to vector<1x32xf32>
    %46 = arith.addf %45, %44 : vector<1x32xf32>
    %47 = arith.divf %45, %46 : vector<1x32xf32>
    %48 = vector.extract_strided_slice %41 {offsets = [0, 32], sizes = [1, 32], strides = [1, 1]} : vector<1x128xf32> to vector<1x32xf32>
    %49 = arith.negf %48 : vector<1x32xf32>
    %50 = math.exp %49 : vector<1x32xf32>
    %cst_18 = arith.constant 1.000000e+00 : f32
    %51 = vector.broadcast %cst_18 : f32 to vector<1x32xf32>
    %52 = arith.addf %51, %50 : vector<1x32xf32>
    %53 = arith.divf %51, %52 : vector<1x32xf32>
    %54 = vector.extract_strided_slice %41 {offsets = [0, 64], sizes = [1, 32], strides = [1, 1]} : vector<1x128xf32> to vector<1x32xf32>
    %55 = math.tanh %54 : vector<1x32xf32>
    %56 = vector.extract_strided_slice %41 {offsets = [0, 96], sizes = [1, 32], strides = [1, 1]} : vector<1x128xf32> to vector<1x32xf32>
    %57 = arith.negf %56 : vector<1x32xf32>
    %58 = math.exp %57 : vector<1x32xf32>
    %cst_19 = arith.constant 1.000000e+00 : f32
    %59 = vector.broadcast %cst_19 : f32 to vector<1x32xf32>
    %60 = arith.addf %59, %58 : vector<1x32xf32>
    %61 = arith.divf %59, %60 : vector<1x32xf32>
    %62 = arith.mulf %53, %35 : vector<1x32xf32>
    %63 = arith.mulf %47, %55 : vector<1x32xf32>
    %64 = arith.addf %62, %63 : vector<1x32xf32>
    %65 = math.tanh %64 : vector<1x32xf32>
    %66 = arith.mulf %61, %65 : vector<1x32xf32>
    %c1 = arith.constant 1 : index
    %c0_20 = arith.constant 0 : index
    %67 = vector.load %arg27[%c1, %c0_20] : memref<8x32xf32, #tpu.memory_space<vmem>>, vector<1x32xf32>
    tpu.vector_store %arg27[%c1, %c0_20], %66 {strides = array<i32>} : memref<8x32xf32, #tpu.memory_space<vmem>>, vector<1x32xf32>,
    %68 = vector.extract_strided_slice %6 {offsets = [2, 0], sizes = [1, 128], strides = [1, 1]} : vector<8x128xf32> to vector<1x128xf32>
    %cst_21 = arith.constant dense<0.000000e+00> : vector<1x128xf32>
    %69 = tpu.matmul %66, %7, %cst_21 {dimension_numbers = #tpu.dot_dimension_numbers<[1], [0], [0], [1], [0, 0, 1, 1], [], []>} : vector<1x32xf32>, vector<32x128xf32>, vector<1x128xf32> -> vector<1x128xf32>
    %70 = arith.addf %68, %69 : vector<1x128xf32>
    %71 = vector.extract_strided_slice %70 {offsets = [0, 0], sizes = [1, 32], strides = [1, 1]} : vector<1x128xf32> to vector<1x32xf32>
    %72 = arith.negf %71 : vector<1x32xf32>
    %73 = math.exp %72 : vector<1x32xf32>
    %cst_22 = arith.constant 1.000000e+00 : f32
    %74 = vector.broadcast %cst_22 : f32 to vector<1x32xf32>
    %75 = arith.addf %74, %73 : vector<1x32xf32>
    %76 = arith.divf %74, %75 : vector<1x32xf32>
    %77 = vector.extract_strided_slice %70 {offsets = [0, 32], sizes = [1, 32], strides = [1, 1]} : vector<1x128xf32> to vector<1x32xf32>
    %78 = arith.negf %77 : vector<1x32xf32>
    %79 = math.exp %78 : vector<1x32xf32>
    %cst_23 = arith.constant 1.000000e+00 : f32
    %80 = vector.broadcast %cst_23 : f32 to vector<1x32xf32>
    %81 = arith.addf %80, %79 : vector<1x32xf32>
    %82 = arith.divf %80, %81 : vector<1x32xf32>
    %83 = vector.extract_strided_slice %70 {offsets = [0, 64], sizes = [1, 32], strides = [1, 1]} : vector<1x128xf32> to vector<1x32xf32>
    %84 = math.tanh %83 : vector<1x32xf32>
    %85 = vector.extract_strided_slice %70 {offsets = [0, 96], sizes = [1, 32], strides = [1, 1]} : vector<1x128xf32> to vector<1x32xf32>
    %86 = arith.negf %85 : vector<1x32xf32>
    %87 = math.exp %86 : vector<1x32xf32>
    %cst_24 = arith.constant 1.000000e+00 : f32
    %88 = vector.broadcast %cst_24 : f32 to vector<1x32xf32>
    %89 = arith.addf %88, %87 : vector<1x32xf32>
    %90 = arith.divf %88, %89 : vector<1x32xf32>
    %91 = arith.mulf %82, %64 : vector<1x32xf32>
    %92 = arith.mulf %76, %84 : vector<1x32xf32>
    %93 = arith.addf %91, %92 : vector<1x32xf32>
    %94 = math.tanh %93 : vector<1x32xf32>
    %95 = arith.mulf %90, %94 : vector<1x32xf32>
    %c2 = arith.constant 2 : index
    %c0_25 = arith.constant 0 : index
    %96 = vector.load %arg27[%c2, %c0_25] : memref<8x32xf32, #tpu.memory_space<vmem>>, vector<1x32xf32>
    tpu.vector_store %arg27[%c2, %c0_25], %95 {strides = array<i32>} : memref<8x32xf32, #tpu.memory_space<vmem>>, vector<1x32xf32>,
    %97 = vector.extract_strided_slice %6 {offsets = [3, 0], sizes = [1, 128], strides = [1, 1]} : vector<8x128xf32> to vector<1x128xf32>
    %cst_26 = arith.constant dense<0.000000e+00> : vector<1x128xf32>
    %98 = tpu.matmul %95, %7, %cst_26 {dimension_numbers = #tpu.dot_dimension_numbers<[1], [0], [0], [1], [0, 0, 1, 1], [], []>} : vector<1x32xf32>, vector<32x128xf32>, vector<1x128xf32> -> vector<1x128xf32>
    %99 = arith.addf %97, %98 : vector<1x128xf32>
    %100 = vector.extract_strided_slice %99 {offsets = [0, 0], sizes = [1, 32], strides = [1, 1]} : vector<1x128xf32> to vector<1x32xf32>
    %101 = arith.negf %100 : vector<1x32xf32>
    %102 = math.exp %101 : vector<1x32xf32>
    %cst_27 = arith.constant 1.000000e+00 : f32
    %103 = vector.broadcast %cst_27 : f32 to vector<1x32xf32>
    %104 = arith.addf %103, %102 : vector<1x32xf32>
    %105 = arith.divf %103, %104 : vector<1x32xf32>
    %106 = vector.extract_strided_slice %99 {offsets = [0, 32], sizes = [1, 32], strides = [1, 1]} : vector<1x128xf32> to vector<1x32xf32>
    %107 = arith.negf %106 : vector<1x32xf32>
    %108 = math.exp %107 : vector<1x32xf32>
    %cst_28 = arith.constant 1.000000e+00 : f32
    %109 = vector.broadcast %cst_28 : f32 to vector<1x32xf32>
    %110 = arith.addf %109, %108 : vector<1x32xf32>
    %111 = arith.divf %109, %110 : vector<1x32xf32>
    %112 = vector.extract_strided_slice %99 {offsets = [0, 64], sizes = [1, 32], strides = [1, 1]} : vector<1x128xf32> to vector<1x32xf32>
    %113 = math.tanh %112 : vector<1x32xf32>
    %114 = vector.extract_strided_slice %99 {offsets = [0, 96], sizes = [1, 32], strides = [1, 1]} : vector<1x128xf32> to vector<1x32xf32>
    %115 = arith.negf %114 : vector<1x32xf32>
    %116 = math.exp %115 : vector<1x32xf32>
    %cst_29 = arith.constant 1.000000e+00 : f32
    %117 = vector.broadcast %cst_29 : f32 to vector<1x32xf32>
    %118 = arith.addf %117, %116 : vector<1x32xf32>
    %119 = arith.divf %117, %118 : vector<1x32xf32>
    %120 = arith.mulf %111, %93 : vector<1x32xf32>
    %121 = arith.mulf %105, %113 : vector<1x32xf32>
    %122 = arith.addf %120, %121 : vector<1x32xf32>
    %123 = math.tanh %122 : vector<1x32xf32>
    %124 = arith.mulf %119, %123 : vector<1x32xf32>
    %c3 = arith.constant 3 : index
    %c0_30 = arith.constant 0 : index
    %125 = vector.load %arg27[%c3, %c0_30] : memref<8x32xf32, #tpu.memory_space<vmem>>, vector<1x32xf32>
    tpu.vector_store %arg27[%c3, %c0_30], %124 {strides = array<i32>} : memref<8x32xf32, #tpu.memory_space<vmem>>, vector<1x32xf32>,
    %126 = vector.extract_strided_slice %6 {offsets = [4, 0], sizes = [1, 128], strides = [1, 1]} : vector<8x128xf32> to vector<1x128xf32>
    %cst_31 = arith.constant dense<0.000000e+00> : vector<1x128xf32>
    %127 = tpu.matmul %124, %7, %cst_31 {dimension_numbers = #tpu.dot_dimension_numbers<[1], [0], [0], [1], [0, 0, 1, 1], [], []>} : vector<1x32xf32>, vector<32x128xf32>, vector<1x128xf32> -> vector<1x128xf32>
    %128 = arith.addf %126, %127 : vector<1x128xf32>
    %129 = vector.extract_strided_slice %128 {offsets = [0, 0], sizes = [1, 32], strides = [1, 1]} : vector<1x128xf32> to vector<1x32xf32>
    %130 = arith.negf %129 : vector<1x32xf32>
    %131 = math.exp %130 : vector<1x32xf32>
    %cst_32 = arith.constant 1.000000e+00 : f32
    %132 = vector.broadcast %cst_32 : f32 to vector<1x32xf32>
    %133 = arith.addf %132, %131 : vector<1x32xf32>
    %134 = arith.divf %132, %133 : vector<1x32xf32>
    %135 = vector.extract_strided_slice %128 {offsets = [0, 32], sizes = [1, 32], strides = [1, 1]} : vector<1x128xf32> to vector<1x32xf32>
    %136 = arith.negf %135 : vector<1x32xf32>
    %137 = math.exp %136 : vector<1x32xf32>
    %cst_33 = arith.constant 1.000000e+00 : f32
    %138 = vector.broadcast %cst_33 : f32 to vector<1x32xf32>
    %139 = arith.addf %138, %137 : vector<1x32xf32>
    %140 = arith.divf %138, %139 : vector<1x32xf32>
    %141 = vector.extract_strided_slice %128 {offsets = [0, 64], sizes = [1, 32], strides = [1, 1]} : vector<1x128xf32> to vector<1x32xf32>
    %142 = math.tanh %141 : vector<1x32xf32>
    %143 = vector.extract_strided_slice %128 {offsets = [0, 96], sizes = [1, 32], strides = [1, 1]} : vector<1x128xf32> to vector<1x32xf32>
    %144 = arith.negf %143 : vector<1x32xf32>
    %145 = math.exp %144 : vector<1x32xf32>
    %cst_34 = arith.constant 1.000000e+00 : f32
    %146 = vector.broadcast %cst_34 : f32 to vector<1x32xf32>
    %147 = arith.addf %146, %145 : vector<1x32xf32>
    %148 = arith.divf %146, %147 : vector<1x32xf32>
    %149 = arith.mulf %140, %122 : vector<1x32xf32>
    %150 = arith.mulf %134, %142 : vector<1x32xf32>
    %151 = arith.addf %149, %150 : vector<1x32xf32>
    %152 = math.tanh %151 : vector<1x32xf32>
    %153 = arith.mulf %148, %152 : vector<1x32xf32>
    %c4 = arith.constant 4 : index
    %c0_35 = arith.constant 0 : index
    %154 = vector.load %arg27[%c4, %c0_35] : memref<8x32xf32, #tpu.memory_space<vmem>>, vector<1x32xf32>
    tpu.vector_store %arg27[%c4, %c0_35], %153 {strides = array<i32>} : memref<8x32xf32, #tpu.memory_space<vmem>>, vector<1x32xf32>,
    %155 = vector.extract_strided_slice %6 {offsets = [5, 0], sizes = [1, 128], strides = [1, 1]} : vector<8x128xf32> to vector<1x128xf32>
    %cst_36 = arith.constant dense<0.000000e+00> : vector<1x128xf32>
    %156 = tpu.matmul %153, %7, %cst_36 {dimension_numbers = #tpu.dot_dimension_numbers<[1], [0], [0], [1], [0, 0, 1, 1], [], []>} : vector<1x32xf32>, vector<32x128xf32>, vector<1x128xf32> -> vector<1x128xf32>
    %157 = arith.addf %155, %156 : vector<1x128xf32>
    %158 = vector.extract_strided_slice %157 {offsets = [0, 0], sizes = [1, 32], strides = [1, 1]} : vector<1x128xf32> to vector<1x32xf32>
    %159 = arith.negf %158 : vector<1x32xf32>
    %160 = math.exp %159 : vector<1x32xf32>
    %cst_37 = arith.constant 1.000000e+00 : f32
    %161 = vector.broadcast %cst_37 : f32 to vector<1x32xf32>
    %162 = arith.addf %161, %160 : vector<1x32xf32>
    %163 = arith.divf %161, %162 : vector<1x32xf32>
    %164 = vector.extract_strided_slice %157 {offsets = [0, 32], sizes = [1, 32], strides = [1, 1]} : vector<1x128xf32> to vector<1x32xf32>
    %165 = arith.negf %164 : vector<1x32xf32>
    %166 = math.exp %165 : vector<1x32xf32>
    %cst_38 = arith.constant 1.000000e+00 : f32
    %167 = vector.broadcast %cst_38 : f32 to vector<1x32xf32>
    %168 = arith.addf %167, %166 : vector<1x32xf32>
    %169 = arith.divf %167, %168 : vector<1x32xf32>
    %170 = vector.extract_strided_slice %157 {offsets = [0, 64], sizes = [1, 32], strides = [1, 1]} : vector<1x128xf32> to vector<1x32xf32>
    %171 = math.tanh %170 : vector<1x32xf32>
    %172 = vector.extract_strided_slice %157 {offsets = [0, 96], sizes = [1, 32], strides = [1, 1]} : vector<1x128xf32> to vector<1x32xf32>
    %173 = arith.negf %172 : vector<1x32xf32>
    %174 = math.exp %173 : vector<1x32xf32>
    %cst_39 = arith.constant 1.000000e+00 : f32
    %175 = vector.broadcast %cst_39 : f32 to vector<1x32xf32>
    %176 = arith.addf %175, %174 : vector<1x32xf32>
    %177 = arith.divf %175, %176 : vector<1x32xf32>
    %178 = arith.mulf %169, %151 : vector<1x32xf32>
    %179 = arith.mulf %163, %171 : vector<1x32xf32>
    %180 = arith.addf %178, %179 : vector<1x32xf32>
    %181 = math.tanh %180 : vector<1x32xf32>
    %182 = arith.mulf %177, %181 : vector<1x32xf32>
    %c5 = arith.constant 5 : index
    %c0_40 = arith.constant 0 : index
    %183 = vector.load %arg27[%c5, %c0_40] : memref<8x32xf32, #tpu.memory_space<vmem>>, vector<1x32xf32>
    tpu.vector_store %arg27[%c5, %c0_40], %182 {strides = array<i32>} : memref<8x32xf32, #tpu.memory_space<vmem>>, vector<1x32xf32>,
    %184 = vector.extract_strided_slice %6 {offsets = [6, 0], sizes = [1, 128], strides = [1, 1]} : vector<8x128xf32> to vector<1x128xf32>
    %cst_41 = arith.constant dense<0.000000e+00> : vector<1x128xf32>
    %185 = tpu.matmul %182, %7, %cst_41 {dimension_numbers = #tpu.dot_dimension_numbers<[1], [0], [0], [1], [0, 0, 1, 1], [], []>} : vector<1x32xf32>, vector<32x128xf32>, vector<1x128xf32> -> vector<1x128xf32>
    %186 = arith.addf %184, %185 : vector<1x128xf32>
    %187 = vector.extract_strided_slice %186 {offsets = [0, 0], sizes = [1, 32], strides = [1, 1]} : vector<1x128xf32> to vector<1x32xf32>
    %188 = arith.negf %187 : vector<1x32xf32>
    %189 = math.exp %188 : vector<1x32xf32>
    %cst_42 = arith.constant 1.000000e+00 : f32
    %190 = vector.broadcast %cst_42 : f32 to vector<1x32xf32>
    %191 = arith.addf %190, %189 : vector<1x32xf32>
    %192 = arith.divf %190, %191 : vector<1x32xf32>
    %193 = vector.extract_strided_slice %186 {offsets = [0, 32], sizes = [1, 32], strides = [1, 1]} : vector<1x128xf32> to vector<1x32xf32>
    %194 = arith.negf %193 : vector<1x32xf32>
    %195 = math.exp %194 : vector<1x32xf32>
    %cst_43 = arith.constant 1.000000e+00 : f32
    %196 = vector.broadcast %cst_43 : f32 to vector<1x32xf32>
    %197 = arith.addf %196, %195 : vector<1x32xf32>
    %198 = arith.divf %196, %197 : vector<1x32xf32>
    %199 = vector.extract_strided_slice %186 {offsets = [0, 64], sizes = [1, 32], strides = [1, 1]} : vector<1x128xf32> to vector<1x32xf32>
    %200 = math.tanh %199 : vector<1x32xf32>
    %201 = vector.extract_strided_slice %186 {offsets = [0, 96], sizes = [1, 32], strides = [1, 1]} : vector<1x128xf32> to vector<1x32xf32>
    %202 = arith.negf %201 : vector<1x32xf32>
    %203 = math.exp %202 : vector<1x32xf32>
    %cst_44 = arith.constant 1.000000e+00 : f32
    %204 = vector.broadcast %cst_44 : f32 to vector<1x32xf32>
    %205 = arith.addf %204, %203 : vector<1x32xf32>
    %206 = arith.divf %204, %205 : vector<1x32xf32>
    %207 = arith.mulf %198, %180 : vector<1x32xf32>
    %208 = arith.mulf %192, %200 : vector<1x32xf32>
    %209 = arith.addf %207, %208 : vector<1x32xf32>
    %210 = math.tanh %209 : vector<1x32xf32>
    %211 = arith.mulf %206, %210 : vector<1x32xf32>
    %c6 = arith.constant 6 : index
    %c0_45 = arith.constant 0 : index
    %212 = vector.load %arg27[%c6, %c0_45] : memref<8x32xf32, #tpu.memory_space<vmem>>, vector<1x32xf32>
    tpu.vector_store %arg27[%c6, %c0_45], %211 {strides = array<i32>} : memref<8x32xf32, #tpu.memory_space<vmem>>, vector<1x32xf32>,
    %213 = vector.extract_strided_slice %6 {offsets = [7, 0], sizes = [1, 128], strides = [1, 1]} : vector<8x128xf32> to vector<1x128xf32>
    %cst_46 = arith.constant dense<0.000000e+00> : vector<1x128xf32>
    %214 = tpu.matmul %211, %7, %cst_46 {dimension_numbers = #tpu.dot_dimension_numbers<[1], [0], [0], [1], [0, 0, 1, 1], [], []>} : vector<1x32xf32>, vector<32x128xf32>, vector<1x128xf32> -> vector<1x128xf32>
    %215 = arith.addf %213, %214 : vector<1x128xf32>
    %216 = vector.extract_strided_slice %215 {offsets = [0, 0], sizes = [1, 32], strides = [1, 1]} : vector<1x128xf32> to vector<1x32xf32>
    %217 = arith.negf %216 : vector<1x32xf32>
    %218 = math.exp %217 : vector<1x32xf32>
    %cst_47 = arith.constant 1.000000e+00 : f32
    %219 = vector.broadcast %cst_47 : f32 to vector<1x32xf32>
    %220 = arith.addf %219, %218 : vector<1x32xf32>
    %221 = arith.divf %219, %220 : vector<1x32xf32>
    %222 = vector.extract_strided_slice %215 {offsets = [0, 32], sizes = [1, 32], strides = [1, 1]} : vector<1x128xf32> to vector<1x32xf32>
    %223 = arith.negf %222 : vector<1x32xf32>
    %224 = math.exp %223 : vector<1x32xf32>
    %cst_48 = arith.constant 1.000000e+00 : f32
    %225 = vector.broadcast %cst_48 : f32 to vector<1x32xf32>
    %226 = arith.addf %225, %224 : vector<1x32xf32>
    %227 = arith.divf %225, %226 : vector<1x32xf32>
    %228 = vector.extract_strided_slice %215 {offsets = [0, 64], sizes = [1, 32], strides = [1, 1]} : vector<1x128xf32> to vector<1x32xf32>
    %229 = math.tanh %228 : vector<1x32xf32>
    %230 = vector.extract_strided_slice %215 {offsets = [0, 96], sizes = [1, 32], strides = [1, 1]} : vector<1x128xf32> to vector<1x32xf32>
    %231 = arith.negf %230 : vector<1x32xf32>
    %232 = math.exp %231 : vector<1x32xf32>
    %cst_49 = arith.constant 1.000000e+00 : f32
    %233 = vector.broadcast %cst_49 : f32 to vector<1x32xf32>
    %234 = arith.addf %233, %232 : vector<1x32xf32>
    %235 = arith.divf %233, %234 : vector<1x32xf32>
    %236 = arith.mulf %227, %209 : vector<1x32xf32>
    %237 = arith.mulf %221, %229 : vector<1x32xf32>
    %238 = arith.addf %236, %237 : vector<1x32xf32>
    %239 = math.tanh %238 : vector<1x32xf32>
    %240 = arith.mulf %235, %239 : vector<1x32xf32>
    %c7 = arith.constant 7 : index
    %c0_50 = arith.constant 0 : index
    %241 = vector.load %arg27[%c7, %c0_50] : memref<8x32xf32, #tpu.memory_space<vmem>>, vector<1x32xf32>
    tpu.vector_store %arg27[%c7, %c0_50], %240 {strides = array<i32>} : memref<8x32xf32, #tpu.memory_space<vmem>>, vector<1x32xf32>,
    %c0_51 = arith.constant 0 : index
    %c0_52 = arith.constant 0 : index
    %242 = vector.load %arg27[%c0_51, %c0_52] : memref<8x32xf32, #tpu.memory_space<vmem>>, vector<8x32xf32>
    %c0_53 = arith.constant 0 : index
    %c0_54 = arith.constant 0 : index
    %243 = vector.load %arg5[%c0_53, %c0_54] : memref<32x128xf32, #tpu.memory_space<vmem>>, vector<32x128xf32>
    %cst_55 = arith.constant dense<0.000000e+00> : vector<8x128xf32>
    %244 = tpu.matmul %242, %243, %cst_55 {dimension_numbers = #tpu.dot_dimension_numbers<[1], [0], [0], [1], [0, 0, 1, 1], [], []>} : vector<8x32xf32>, vector<32x128xf32>, vector<8x128xf32> -> vector<8x128xf32>
    %c0_56 = arith.constant 0 : index
    %c0_57 = arith.constant 0 : index
    %245 = vector.load %arg7[%c0_56, %c0_57] : memref<1x128xf32, #tpu.memory_space<vmem>>, vector<1x128xf32>
    %246 = vector.broadcast %245 : vector<1x128xf32> to vector<8x128xf32>
    %247 = arith.addf %244, %246 : vector<8x128xf32>
    %c0_58 = arith.constant 0 : index
    %c0_59 = arith.constant 0 : index
    %248 = vector.load %arg6[%c0_58, %c0_59] : memref<32x128xf32, #tpu.memory_space<vmem>>, vector<32x128xf32>
    %cst_60 = arith.constant 0.000000e+00 : f32
    %249 = vector.broadcast %cst_60 : f32 to vector<1x32xf32>
    %cst_61 = arith.constant 0.000000e+00 : f32
    %250 = vector.broadcast %cst_61 : f32 to vector<1x32xf32>
    %251 = vector.extract_strided_slice %247 {offsets = [0, 0], sizes = [1, 128], strides = [1, 1]} : vector<8x128xf32> to vector<1x128xf32>
    %cst_62 = arith.constant dense<0.000000e+00> : vector<1x128xf32>
    %252 = tpu.matmul %249, %248, %cst_62 {dimension_numbers = #tpu.dot_dimension_numbers<[1], [0], [0], [1], [0, 0, 1, 1], [], []>} : vector<1x32xf32>, vector<32x128xf32>, vector<1x128xf32> -> vector<1x128xf32>
    %253 = arith.addf %251, %252 : vector<1x128xf32>
    %254 = vector.extract_strided_slice %253 {offsets = [0, 0], sizes = [1, 32], strides = [1, 1]} : vector<1x128xf32> to vector<1x32xf32>
    %255 = arith.negf %254 : vector<1x32xf32>
    %256 = math.exp %255 : vector<1x32xf32>
    %cst_63 = arith.constant 1.000000e+00 : f32
    %257 = vector.broadcast %cst_63 : f32 to vector<1x32xf32>
    %258 = arith.addf %257, %256 : vector<1x32xf32>
    %259 = arith.divf %257, %258 : vector<1x32xf32>
    %260 = vector.extract_strided_slice %253 {offsets = [0, 32], sizes = [1, 32], strides = [1, 1]} : vector<1x128xf32> to vector<1x32xf32>
    %261 = arith.negf %260 : vector<1x32xf32>
    %262 = math.exp %261 : vector<1x32xf32>
    %cst_64 = arith.constant 1.000000e+00 : f32
    %263 = vector.broadcast %cst_64 : f32 to vector<1x32xf32>
    %264 = arith.addf %263, %262 : vector<1x32xf32>
    %265 = arith.divf %263, %264 : vector<1x32xf32>
    %266 = vector.extract_strided_slice %253 {offsets = [0, 64], sizes = [1, 32], strides = [1, 1]} : vector<1x128xf32> to vector<1x32xf32>
    %267 = math.tanh %266 : vector<1x32xf32>
    %268 = vector.extract_strided_slice %253 {offsets = [0, 96], sizes = [1, 32], strides = [1, 1]} : vector<1x128xf32> to vector<1x32xf32>
    %269 = arith.negf %268 : vector<1x32xf32>
    %270 = math.exp %269 : vector<1x32xf32>
    %cst_65 = arith.constant 1.000000e+00 : f32
    %271 = vector.broadcast %cst_65 : f32 to vector<1x32xf32>
    %272 = arith.addf %271, %270 : vector<1x32xf32>
    %273 = arith.divf %271, %272 : vector<1x32xf32>
    %274 = arith.mulf %265, %250 : vector<1x32xf32>
    %275 = arith.mulf %259, %267 : vector<1x32xf32>
    %276 = arith.addf %274, %275 : vector<1x32xf32>
    %277 = math.tanh %276 : vector<1x32xf32>
    %278 = arith.mulf %273, %277 : vector<1x32xf32>
    %c0_66 = arith.constant 0 : index
    %c0_67 = arith.constant 0 : index
    %279 = vector.load %arg27[%c0_66, %c0_67] : memref<8x32xf32, #tpu.memory_space<vmem>>, vector<1x32xf32>
    tpu.vector_store %arg27[%c0_66, %c0_67], %278 {strides = array<i32>} : memref<8x32xf32, #tpu.memory_space<vmem>>, vector<1x32xf32>,
    %280 = vector.extract_strided_slice %247 {offsets = [1, 0], sizes = [1, 128], strides = [1, 1]} : vector<8x128xf32> to vector<1x128xf32>
    %cst_68 = arith.constant dense<0.000000e+00> : vector<1x128xf32>
    %281 = tpu.matmul %278, %248, %cst_68 {dimension_numbers = #tpu.dot_dimension_numbers<[1], [0], [0], [1], [0, 0, 1, 1], [], []>} : vector<1x32xf32>, vector<32x128xf32>, vector<1x128xf32> -> vector<1x128xf32>
    %282 = arith.addf %280, %281 : vector<1x128xf32>
    %283 = vector.extract_strided_slice %282 {offsets = [0, 0], sizes = [1, 32], strides = [1, 1]} : vector<1x128xf32> to vector<1x32xf32>
    %284 = arith.negf %283 : vector<1x32xf32>
    %285 = math.exp %284 : vector<1x32xf32>
    %cst_69 = arith.constant 1.000000e+00 : f32
    %286 = vector.broadcast %cst_69 : f32 to vector<1x32xf32>
    %287 = arith.addf %286, %285 : vector<1x32xf32>
    %288 = arith.divf %286, %287 : vector<1x32xf32>
    %289 = vector.extract_strided_slice %282 {offsets = [0, 32], sizes = [1, 32], strides = [1, 1]} : vector<1x128xf32> to vector<1x32xf32>
    %290 = arith.negf %289 : vector<1x32xf32>
    %291 = math.exp %290 : vector<1x32xf32>
    %cst_70 = arith.constant 1.000000e+00 : f32
    %292 = vector.broadcast %cst_70 : f32 to vector<1x32xf32>
    %293 = arith.addf %292, %291 : vector<1x32xf32>
    %294 = arith.divf %292, %293 : vector<1x32xf32>
    %295 = vector.extract_strided_slice %282 {offsets = [0, 64], sizes = [1, 32], strides = [1, 1]} : vector<1x128xf32> to vector<1x32xf32>
    %296 = math.tanh %295 : vector<1x32xf32>
    %297 = vector.extract_strided_slice %282 {offsets = [0, 96], sizes = [1, 32], strides = [1, 1]} : vector<1x128xf32> to vector<1x32xf32>
    %298 = arith.negf %297 : vector<1x32xf32>
    %299 = math.exp %298 : vector<1x32xf32>
    %cst_71 = arith.constant 1.000000e+00 : f32
    %300 = vector.broadcast %cst_71 : f32 to vector<1x32xf32>
    %301 = arith.addf %300, %299 : vector<1x32xf32>
    %302 = arith.divf %300, %301 : vector<1x32xf32>
    %303 = arith.mulf %294, %276 : vector<1x32xf32>
    %304 = arith.mulf %288, %296 : vector<1x32xf32>
    %305 = arith.addf %303, %304 : vector<1x32xf32>
    %306 = math.tanh %305 : vector<1x32xf32>
    %307 = arith.mulf %302, %306 : vector<1x32xf32>
    %c1_72 = arith.constant 1 : index
    %c0_73 = arith.constant 0 : index
    %308 = vector.load %arg27[%c1_72, %c0_73] : memref<8x32xf32, #tpu.memory_space<vmem>>, vector<1x32xf32>
    tpu.vector_store %arg27[%c1_72, %c0_73], %307 {strides = array<i32>} : memref<8x32xf32, #tpu.memory_space<vmem>>, vector<1x32xf32>,
    %309 = vector.extract_strided_slice %247 {offsets = [2, 0], sizes = [1, 128], strides = [1, 1]} : vector<8x128xf32> to vector<1x128xf32>
    %cst_74 = arith.constant dense<0.000000e+00> : vector<1x128xf32>
    %310 = tpu.matmul %307, %248, %cst_74 {dimension_numbers = #tpu.dot_dimension_numbers<[1], [0], [0], [1], [0, 0, 1, 1], [], []>} : vector<1x32xf32>, vector<32x128xf32>, vector<1x128xf32> -> vector<1x128xf32>
    %311 = arith.addf %309, %310 : vector<1x128xf32>
    %312 = vector.extract_strided_slice %311 {offsets = [0, 0], sizes = [1, 32], strides = [1, 1]} : vector<1x128xf32> to vector<1x32xf32>
    %313 = arith.negf %312 : vector<1x32xf32>
    %314 = math.exp %313 : vector<1x32xf32>
    %cst_75 = arith.constant 1.000000e+00 : f32
    %315 = vector.broadcast %cst_75 : f32 to vector<1x32xf32>
    %316 = arith.addf %315, %314 : vector<1x32xf32>
    %317 = arith.divf %315, %316 : vector<1x32xf32>
    %318 = vector.extract_strided_slice %311 {offsets = [0, 32], sizes = [1, 32], strides = [1, 1]} : vector<1x128xf32> to vector<1x32xf32>
    %319 = arith.negf %318 : vector<1x32xf32>
    %320 = math.exp %319 : vector<1x32xf32>
    %cst_76 = arith.constant 1.000000e+00 : f32
    %321 = vector.broadcast %cst_76 : f32 to vector<1x32xf32>
    %322 = arith.addf %321, %320 : vector<1x32xf32>
    %323 = arith.divf %321, %322 : vector<1x32xf32>
    %324 = vector.extract_strided_slice %311 {offsets = [0, 64], sizes = [1, 32], strides = [1, 1]} : vector<1x128xf32> to vector<1x32xf32>
    %325 = math.tanh %324 : vector<1x32xf32>
    %326 = vector.extract_strided_slice %311 {offsets = [0, 96], sizes = [1, 32], strides = [1, 1]} : vector<1x128xf32> to vector<1x32xf32>
    %327 = arith.negf %326 : vector<1x32xf32>
    %328 = math.exp %327 : vector<1x32xf32>
    %cst_77 = arith.constant 1.000000e+00 : f32
    %329 = vector.broadcast %cst_77 : f32 to vector<1x32xf32>
    %330 = arith.addf %329, %328 : vector<1x32xf32>
    %331 = arith.divf %329, %330 : vector<1x32xf32>
    %332 = arith.mulf %323, %305 : vector<1x32xf32>
    %333 = arith.mulf %317, %325 : vector<1x32xf32>
    %334 = arith.addf %332, %333 : vector<1x32xf32>
    %335 = math.tanh %334 : vector<1x32xf32>
    %336 = arith.mulf %331, %335 : vector<1x32xf32>
    %c2_78 = arith.constant 2 : index
    %c0_79 = arith.constant 0 : index
    %337 = vector.load %arg27[%c2_78, %c0_79] : memref<8x32xf32, #tpu.memory_space<vmem>>, vector<1x32xf32>
    tpu.vector_store %arg27[%c2_78, %c0_79], %336 {strides = array<i32>} : memref<8x32xf32, #tpu.memory_space<vmem>>, vector<1x32xf32>,
    %338 = vector.extract_strided_slice %247 {offsets = [3, 0], sizes = [1, 128], strides = [1, 1]} : vector<8x128xf32> to vector<1x128xf32>
    %cst_80 = arith.constant dense<0.000000e+00> : vector<1x128xf32>
    %339 = tpu.matmul %336, %248, %cst_80 {dimension_numbers = #tpu.dot_dimension_numbers<[1], [0], [0], [1], [0, 0, 1, 1], [], []>} : vector<1x32xf32>, vector<32x128xf32>, vector<1x128xf32> -> vector<1x128xf32>
    %340 = arith.addf %338, %339 : vector<1x128xf32>
    %341 = vector.extract_strided_slice %340 {offsets = [0, 0], sizes = [1, 32], strides = [1, 1]} : vector<1x128xf32> to vector<1x32xf32>
    %342 = arith.negf %341 : vector<1x32xf32>
    %343 = math.exp %342 : vector<1x32xf32>
    %cst_81 = arith.constant 1.000000e+00 : f32
    %344 = vector.broadcast %cst_81 : f32 to vector<1x32xf32>
    %345 = arith.addf %344, %343 : vector<1x32xf32>
    %346 = arith.divf %344, %345 : vector<1x32xf32>
    %347 = vector.extract_strided_slice %340 {offsets = [0, 32], sizes = [1, 32], strides = [1, 1]} : vector<1x128xf32> to vector<1x32xf32>
    %348 = arith.negf %347 : vector<1x32xf32>
    %349 = math.exp %348 : vector<1x32xf32>
    %cst_82 = arith.constant 1.000000e+00 : f32
    %350 = vector.broadcast %cst_82 : f32 to vector<1x32xf32>
    %351 = arith.addf %350, %349 : vector<1x32xf32>
    %352 = arith.divf %350, %351 : vector<1x32xf32>
    %353 = vector.extract_strided_slice %340 {offsets = [0, 64], sizes = [1, 32], strides = [1, 1]} : vector<1x128xf32> to vector<1x32xf32>
    %354 = math.tanh %353 : vector<1x32xf32>
    %355 = vector.extract_strided_slice %340 {offsets = [0, 96], sizes = [1, 32], strides = [1, 1]} : vector<1x128xf32> to vector<1x32xf32>
    %356 = arith.negf %355 : vector<1x32xf32>
    %357 = math.exp %356 : vector<1x32xf32>
    %cst_83 = arith.constant 1.000000e+00 : f32
    %358 = vector.broadcast %cst_83 : f32 to vector<1x32xf32>
    %359 = arith.addf %358, %357 : vector<1x32xf32>
    %360 = arith.divf %358, %359 : vector<1x32xf32>
    %361 = arith.mulf %352, %334 : vector<1x32xf32>
    %362 = arith.mulf %346, %354 : vector<1x32xf32>
    %363 = arith.addf %361, %362 : vector<1x32xf32>
    %364 = math.tanh %363 : vector<1x32xf32>
    %365 = arith.mulf %360, %364 : vector<1x32xf32>
    %c3_84 = arith.constant 3 : index
    %c0_85 = arith.constant 0 : index
    %366 = vector.load %arg27[%c3_84, %c0_85] : memref<8x32xf32, #tpu.memory_space<vmem>>, vector<1x32xf32>
    tpu.vector_store %arg27[%c3_84, %c0_85], %365 {strides = array<i32>} : memref<8x32xf32, #tpu.memory_space<vmem>>, vector<1x32xf32>,
    %367 = vector.extract_strided_slice %247 {offsets = [4, 0], sizes = [1, 128], strides = [1, 1]} : vector<8x128xf32> to vector<1x128xf32>
    %cst_86 = arith.constant dense<0.000000e+00> : vector<1x128xf32>
    %368 = tpu.matmul %365, %248, %cst_86 {dimension_numbers = #tpu.dot_dimension_numbers<[1], [0], [0], [1], [0, 0, 1, 1], [], []>} : vector<1x32xf32>, vector<32x128xf32>, vector<1x128xf32> -> vector<1x128xf32>
    %369 = arith.addf %367, %368 : vector<1x128xf32>
    %370 = vector.extract_strided_slice %369 {offsets = [0, 0], sizes = [1, 32], strides = [1, 1]} : vector<1x128xf32> to vector<1x32xf32>
    %371 = arith.negf %370 : vector<1x32xf32>
    %372 = math.exp %371 : vector<1x32xf32>
    %cst_87 = arith.constant 1.000000e+00 : f32
    %373 = vector.broadcast %cst_87 : f32 to vector<1x32xf32>
    %374 = arith.addf %373, %372 : vector<1x32xf32>
    %375 = arith.divf %373, %374 : vector<1x32xf32>
    %376 = vector.extract_strided_slice %369 {offsets = [0, 32], sizes = [1, 32], strides = [1, 1]} : vector<1x128xf32> to vector<1x32xf32>
    %377 = arith.negf %376 : vector<1x32xf32>
    %378 = math.exp %377 : vector<1x32xf32>
    %cst_88 = arith.constant 1.000000e+00 : f32
    %379 = vector.broadcast %cst_88 : f32 to vector<1x32xf32>
    %380 = arith.addf %379, %378 : vector<1x32xf32>
    %381 = arith.divf %379, %380 : vector<1x32xf32>
    %382 = vector.extract_strided_slice %369 {offsets = [0, 64], sizes = [1, 32], strides = [1, 1]} : vector<1x128xf32> to vector<1x32xf32>
    %383 = math.tanh %382 : vector<1x32xf32>
    %384 = vector.extract_strided_slice %369 {offsets = [0, 96], sizes = [1, 32], strides = [1, 1]} : vector<1x128xf32> to vector<1x32xf32>
    %385 = arith.negf %384 : vector<1x32xf32>
    %386 = math.exp %385 : vector<1x32xf32>
    %cst_89 = arith.constant 1.000000e+00 : f32
    %387 = vector.broadcast %cst_89 : f32 to vector<1x32xf32>
    %388 = arith.addf %387, %386 : vector<1x32xf32>
    %389 = arith.divf %387, %388 : vector<1x32xf32>
    %390 = arith.mulf %381, %363 : vector<1x32xf32>
    %391 = arith.mulf %375, %383 : vector<1x32xf32>
    %392 = arith.addf %390, %391 : vector<1x32xf32>
    %393 = math.tanh %392 : vector<1x32xf32>
    %394 = arith.mulf %389, %393 : vector<1x32xf32>
    %c4_90 = arith.constant 4 : index
    %c0_91 = arith.constant 0 : index
    %395 = vector.load %arg27[%c4_90, %c0_91] : memref<8x32xf32, #tpu.memory_space<vmem>>, vector<1x32xf32>
    tpu.vector_store %arg27[%c4_90, %c0_91], %394 {strides = array<i32>} : memref<8x32xf32, #tpu.memory_space<vmem>>, vector<1x32xf32>,
    %396 = vector.extract_strided_slice %247 {offsets = [5, 0], sizes = [1, 128], strides = [1, 1]} : vector<8x128xf32> to vector<1x128xf32>
    %cst_92 = arith.constant dense<0.000000e+00> : vector<1x128xf32>
    %397 = tpu.matmul %394, %248, %cst_92 {dimension_numbers = #tpu.dot_dimension_numbers<[1], [0], [0], [1], [0, 0, 1, 1], [], []>} : vector<1x32xf32>, vector<32x128xf32>, vector<1x128xf32> -> vector<1x128xf32>
    %398 = arith.addf %396, %397 : vector<1x128xf32>
    %399 = vector.extract_strided_slice %398 {offsets = [0, 0], sizes = [1, 32], strides = [1, 1]} : vector<1x128xf32> to vector<1x32xf32>
    %400 = arith.negf %399 : vector<1x32xf32>
    %401 = math.exp %400 : vector<1x32xf32>
    %cst_93 = arith.constant 1.000000e+00 : f32
    %402 = vector.broadcast %cst_93 : f32 to vector<1x32xf32>
    %403 = arith.addf %402, %401 : vector<1x32xf32>
    %404 = arith.divf %402, %403 : vector<1x32xf32>
    %405 = vector.extract_strided_slice %398 {offsets = [0, 32], sizes = [1, 32], strides = [1, 1]} : vector<1x128xf32> to vector<1x32xf32>
    %406 = arith.negf %405 : vector<1x32xf32>
    %407 = math.exp %406 : vector<1x32xf32>
    %cst_94 = arith.constant 1.000000e+00 : f32
    %408 = vector.broadcast %cst_94 : f32 to vector<1x32xf32>
    %409 = arith.addf %408, %407 : vector<1x32xf32>
    %410 = arith.divf %408, %409 : vector<1x32xf32>
    %411 = vector.extract_strided_slice %398 {offsets = [0, 64], sizes = [1, 32], strides = [1, 1]} : vector<1x128xf32> to vector<1x32xf32>
    %412 = math.tanh %411 : vector<1x32xf32>
    %413 = vector.extract_strided_slice %398 {offsets = [0, 96], sizes = [1, 32], strides = [1, 1]} : vector<1x128xf32> to vector<1x32xf32>
    %414 = arith.negf %413 : vector<1x32xf32>
    %415 = math.exp %414 : vector<1x32xf32>
    %cst_95 = arith.constant 1.000000e+00 : f32
    %416 = vector.broadcast %cst_95 : f32 to vector<1x32xf32>
    %417 = arith.addf %416, %415 : vector<1x32xf32>
    %418 = arith.divf %416, %417 : vector<1x32xf32>
    %419 = arith.mulf %410, %392 : vector<1x32xf32>
    %420 = arith.mulf %404, %412 : vector<1x32xf32>
    %421 = arith.addf %419, %420 : vector<1x32xf32>
    %422 = math.tanh %421 : vector<1x32xf32>
    %423 = arith.mulf %418, %422 : vector<1x32xf32>
    %c5_96 = arith.constant 5 : index
    %c0_97 = arith.constant 0 : index
    %424 = vector.load %arg27[%c5_96, %c0_97] : memref<8x32xf32, #tpu.memory_space<vmem>>, vector<1x32xf32>
    tpu.vector_store %arg27[%c5_96, %c0_97], %423 {strides = array<i32>} : memref<8x32xf32, #tpu.memory_space<vmem>>, vector<1x32xf32>,
    %425 = vector.extract_strided_slice %247 {offsets = [6, 0], sizes = [1, 128], strides = [1, 1]} : vector<8x128xf32> to vector<1x128xf32>
    %cst_98 = arith.constant dense<0.000000e+00> : vector<1x128xf32>
    %426 = tpu.matmul %423, %248, %cst_98 {dimension_numbers = #tpu.dot_dimension_numbers<[1], [0], [0], [1], [0, 0, 1, 1], [], []>} : vector<1x32xf32>, vector<32x128xf32>, vector<1x128xf32> -> vector<1x128xf32>
    %427 = arith.addf %425, %426 : vector<1x128xf32>
    %428 = vector.extract_strided_slice %427 {offsets = [0, 0], sizes = [1, 32], strides = [1, 1]} : vector<1x128xf32> to vector<1x32xf32>
    %429 = arith.negf %428 : vector<1x32xf32>
    %430 = math.exp %429 : vector<1x32xf32>
    %cst_99 = arith.constant 1.000000e+00 : f32
    %431 = vector.broadcast %cst_99 : f32 to vector<1x32xf32>
    %432 = arith.addf %431, %430 : vector<1x32xf32>
    %433 = arith.divf %431, %432 : vector<1x32xf32>
    %434 = vector.extract_strided_slice %427 {offsets = [0, 32], sizes = [1, 32], strides = [1, 1]} : vector<1x128xf32> to vector<1x32xf32>
    %435 = arith.negf %434 : vector<1x32xf32>
    %436 = math.exp %435 : vector<1x32xf32>
    %cst_100 = arith.constant 1.000000e+00 : f32
    %437 = vector.broadcast %cst_100 : f32 to vector<1x32xf32>
    %438 = arith.addf %437, %436 : vector<1x32xf32>
    %439 = arith.divf %437, %438 : vector<1x32xf32>
    %440 = vector.extract_strided_slice %427 {offsets = [0, 64], sizes = [1, 32], strides = [1, 1]} : vector<1x128xf32> to vector<1x32xf32>
    %441 = math.tanh %440 : vector<1x32xf32>
    %442 = vector.extract_strided_slice %427 {offsets = [0, 96], sizes = [1, 32], strides = [1, 1]} : vector<1x128xf32> to vector<1x32xf32>
    %443 = arith.negf %442 : vector<1x32xf32>
    %444 = math.exp %443 : vector<1x32xf32>
    %cst_101 = arith.constant 1.000000e+00 : f32
    %445 = vector.broadcast %cst_101 : f32 to vector<1x32xf32>
    %446 = arith.addf %445, %444 : vector<1x32xf32>
    %447 = arith.divf %445, %446 : vector<1x32xf32>
    %448 = arith.mulf %439, %421 : vector<1x32xf32>
    %449 = arith.mulf %433, %441 : vector<1x32xf32>
    %450 = arith.addf %448, %449 : vector<1x32xf32>
    %451 = math.tanh %450 : vector<1x32xf32>
    %452 = arith.mulf %447, %451 : vector<1x32xf32>
    %c6_102 = arith.constant 6 : index
    %c0_103 = arith.constant 0 : index
    %453 = vector.load %arg27[%c6_102, %c0_103] : memref<8x32xf32, #tpu.memory_space<vmem>>, vector<1x32xf32>
    tpu.vector_store %arg27[%c6_102, %c0_103], %452 {strides = array<i32>} : memref<8x32xf32, #tpu.memory_space<vmem>>, vector<1x32xf32>,
    %454 = vector.extract_strided_slice %247 {offsets = [7, 0], sizes = [1, 128], strides = [1, 1]} : vector<8x128xf32> to vector<1x128xf32>
    %cst_104 = arith.constant dense<0.000000e+00> : vector<1x128xf32>
    %455 = tpu.matmul %452, %248, %cst_104 {dimension_numbers = #tpu.dot_dimension_numbers<[1], [0], [0], [1], [0, 0, 1, 1], [], []>} : vector<1x32xf32>, vector<32x128xf32>, vector<1x128xf32> -> vector<1x128xf32>
    %456 = arith.addf %454, %455 : vector<1x128xf32>
    %457 = vector.extract_strided_slice %456 {offsets = [0, 0], sizes = [1, 32], strides = [1, 1]} : vector<1x128xf32> to vector<1x32xf32>
    %458 = arith.negf %457 : vector<1x32xf32>
    %459 = math.exp %458 : vector<1x32xf32>
    %cst_105 = arith.constant 1.000000e+00 : f32
    %460 = vector.broadcast %cst_105 : f32 to vector<1x32xf32>
    %461 = arith.addf %460, %459 : vector<1x32xf32>
    %462 = arith.divf %460, %461 : vector<1x32xf32>
    %463 = vector.extract_strided_slice %456 {offsets = [0, 32], sizes = [1, 32], strides = [1, 1]} : vector<1x128xf32> to vector<1x32xf32>
    %464 = arith.negf %463 : vector<1x32xf32>
    %465 = math.exp %464 : vector<1x32xf32>
    %cst_106 = arith.constant 1.000000e+00 : f32
    %466 = vector.broadcast %cst_106 : f32 to vector<1x32xf32>
    %467 = arith.addf %466, %465 : vector<1x32xf32>
    %468 = arith.divf %466, %467 : vector<1x32xf32>
    %469 = vector.extract_strided_slice %456 {offsets = [0, 64], sizes = [1, 32], strides = [1, 1]} : vector<1x128xf32> to vector<1x32xf32>
    %470 = math.tanh %469 : vector<1x32xf32>
    %471 = vector.extract_strided_slice %456 {offsets = [0, 96], sizes = [1, 32], strides = [1, 1]} : vector<1x128xf32> to vector<1x32xf32>
    %472 = arith.negf %471 : vector<1x32xf32>
    %473 = math.exp %472 : vector<1x32xf32>
    %cst_107 = arith.constant 1.000000e+00 : f32
    %474 = vector.broadcast %cst_107 : f32 to vector<1x32xf32>
    %475 = arith.addf %474, %473 : vector<1x32xf32>
    %476 = arith.divf %474, %475 : vector<1x32xf32>
    %477 = arith.mulf %468, %450 : vector<1x32xf32>
    %478 = arith.mulf %462, %470 : vector<1x32xf32>
    %479 = arith.addf %477, %478 : vector<1x32xf32>
    %480 = math.tanh %479 : vector<1x32xf32>
    %481 = arith.mulf %476, %480 : vector<1x32xf32>
    %c7_108 = arith.constant 7 : index
    %c0_109 = arith.constant 0 : index
    %482 = vector.load %arg27[%c7_108, %c0_109] : memref<8x32xf32, #tpu.memory_space<vmem>>, vector<1x32xf32>
    tpu.vector_store %arg27[%c7_108, %c0_109], %481 {strides = array<i32>} : memref<8x32xf32, #tpu.memory_space<vmem>>, vector<1x32xf32>,
    %c0_110 = arith.constant 0 : index
    %c0_111 = arith.constant 0 : index
    %483 = vector.load %arg27[%c0_110, %c0_111] : memref<8x32xf32, #tpu.memory_space<vmem>>, vector<8x32xf32>
    %c0_112 = arith.constant 0 : index
    %c0_113 = arith.constant 0 : index
    %484 = vector.load %arg8[%c0_112, %c0_113] : memref<16x32xf32, #tpu.memory_space<vmem>>, vector<16x32xf32>
    %cst_114 = arith.constant dense<0.000000e+00> : vector<8x32xf32>
    %485 = tpu.matmul %1, %484, %cst_114 {dimension_numbers = #tpu.dot_dimension_numbers<[1], [0], [0], [1], [0, 0, 1, 1], [], []>} : vector<8x16xf32>, vector<16x32xf32>, vector<8x32xf32> -> vector<8x32xf32>
    %c0_115 = arith.constant 0 : index
    %c0_116 = arith.constant 0 : index
    %486 = vector.load %arg9[%c0_115, %c0_116] : memref<1x32xf32, #tpu.memory_space<vmem>>, vector<1x32xf32>
    %487 = vector.broadcast %486 : vector<1x32xf32> to vector<8x32xf32>
    %488 = arith.addf %485, %487 : vector<8x32xf32>
    %489 = arith.addf %483, %488 : vector<8x32xf32>
    %490 = tpu.iota {dimensions = array<i32: 0>} : vector<8x1xi32>
    %c0_117 = arith.constant 0 : index
    %c0_118 = arith.constant 0 : index
    %491 = vector.load %arg11[%c0_117, %c0_118] : memref<1x32xf32, #tpu.memory_space<vmem>>, vector<1x32xf32>
    %c2_i32 = arith.constant 2 : i32
    %492 = tpu.dynamic_rotate %1 by %c2_i32 dim 0 : vector<8x16xf32>, i32 -> vector<8x16xf32>
    %c2_i32_119 = arith.constant 2 : i32
    %493 = vector.broadcast %c2_i32_119 : i32 to vector<8x1xi32>
    %494 = arith.cmpi sge, %490, %493 : vector<8x1xi32>
    %cst_120 = arith.constant 0.000000e+00 : f32
    %495 = vector.shape_cast %494 : vector<8x1xi1> to vector<8x1xi1>
    %496 = vector.broadcast %495 : vector<8x1xi1> to vector<8x16xi1>
    %497 = vector.broadcast %cst_120 : f32 to vector<8x16xf32>
    %498 = arith.select %496, %492, %497 : vector<8x16xi1>, vector<8x16xf32>
    %c0_121 = arith.constant 0 : index
    %c0_122 = arith.constant 0 : index
    %c0_123 = arith.constant 0 : index
    %499 = vector.load %arg10[%c0_121, %c0_122, %c0_123] : memref<3x16x32xf32, #tpu.memory_space<vmem>>, vector<1x16x32xf32>
    %500 = vector.shape_cast %499 : vector<1x16x32xf32> to vector<16x32xf32>
    %cst_124 = arith.constant dense<0.000000e+00> : vector<8x32xf32>
    %501 = tpu.matmul %498, %500, %cst_124 {dimension_numbers = #tpu.dot_dimension_numbers<[1], [0], [0], [1], [0, 0, 1, 1], [], []>} : vector<8x16xf32>, vector<16x32xf32>, vector<8x32xf32> -> vector<8x32xf32>
    %502 = vector.broadcast %491 : vector<1x32xf32> to vector<8x32xf32>
    %503 = arith.addf %502, %501 : vector<8x32xf32>
    %c1_i32 = arith.constant 1 : i32
    %504 = tpu.dynamic_rotate %1 by %c1_i32 dim 0 : vector<8x16xf32>, i32 -> vector<8x16xf32>
    %c1_i32_125 = arith.constant 1 : i32
    %505 = vector.broadcast %c1_i32_125 : i32 to vector<8x1xi32>
    %506 = arith.cmpi sge, %490, %505 : vector<8x1xi32>
    %cst_126 = arith.constant 0.000000e+00 : f32
    %507 = vector.shape_cast %506 : vector<8x1xi1> to vector<8x1xi1>
    %508 = vector.broadcast %507 : vector<8x1xi1> to vector<8x16xi1>
    %509 = vector.broadcast %cst_126 : f32 to vector<8x16xf32>
    %510 = arith.select %508, %504, %509 : vector<8x16xi1>, vector<8x16xf32>
    %c1_127 = arith.constant 1 : index
    %c0_128 = arith.constant 0 : index
    %c0_129 = arith.constant 0 : index
    %511 = vector.load %arg10[%c1_127, %c0_128, %c0_129] : memref<3x16x32xf32, #tpu.memory_space<vmem>>, vector<1x16x32xf32>
    %512 = vector.shape_cast %511 : vector<1x16x32xf32> to vector<16x32xf32>
    %cst_130 = arith.constant dense<0.000000e+00> : vector<8x32xf32>
    %513 = tpu.matmul %510, %512, %cst_130 {dimension_numbers = #tpu.dot_dimension_numbers<[1], [0], [0], [1], [0, 0, 1, 1], [], []>} : vector<8x16xf32>, vector<16x32xf32>, vector<8x32xf32> -> vector<8x32xf32>
    %514 = arith.addf %503, %513 : vector<8x32xf32>
    %c2_131 = arith.constant 2 : index
    %c0_132 = arith.constant 0 : index
    %c0_133 = arith.constant 0 : index
    %515 = vector.load %arg10[%c2_131, %c0_132, %c0_133] : memref<3x16x32xf32, #tpu.memory_space<vmem>>, vector<1x16x32xf32>
    %516 = vector.shape_cast %515 : vector<1x16x32xf32> to vector<16x32xf32>
    %cst_134 = arith.constant dense<0.000000e+00> : vector<8x32xf32>
    %517 = tpu.matmul %1, %516, %cst_134 {dimension_numbers = #tpu.dot_dimension_numbers<[1], [0], [0], [1], [0, 0, 1, 1], [], []>} : vector<8x16xf32>, vector<16x32xf32>, vector<8x32xf32> -> vector<8x32xf32>
    %518 = arith.addf %514, %517 : vector<8x32xf32>
    %cst_135 = arith.constant 0.000000e+00 : f32
    %519 = vector.broadcast %cst_135 : f32 to vector<8x32xf32>
    %520 = arith.maximumf %518, %519 : vector<8x32xf32>
    %c0_136 = arith.constant 0 : index
    %c0_137 = arith.constant 0 : index
    %521 = vector.load %arg13[%c0_136, %c0_137] : memref<1x32xf32, #tpu.memory_space<vmem>>, vector<1x32xf32>
    %c2_i32_138 = arith.constant 2 : i32
    %522 = tpu.dynamic_rotate %520 by %c2_i32_138 dim 0 : vector<8x32xf32>, i32 -> vector<8x32xf32>
    %c2_i32_139 = arith.constant 2 : i32
    %523 = vector.broadcast %c2_i32_139 : i32 to vector<8x1xi32>
    %524 = arith.cmpi sge, %490, %523 : vector<8x1xi32>
    %cst_140 = arith.constant 0.000000e+00 : f32
    %525 = vector.shape_cast %524 : vector<8x1xi1> to vector<8x1xi1>
    %526 = vector.broadcast %525 : vector<8x1xi1> to vector<8x32xi1>
    %527 = vector.broadcast %cst_140 : f32 to vector<8x32xf32>
    %528 = arith.select %526, %522, %527 : vector<8x32xi1>, vector<8x32xf32>
    %c0_141 = arith.constant 0 : index
    %c0_142 = arith.constant 0 : index
    %c0_143 = arith.constant 0 : index
    %529 = vector.load %arg12[%c0_141, %c0_142, %c0_143] : memref<3x32x32xf32, #tpu.memory_space<vmem>>, vector<1x32x32xf32>
    %530 = vector.shape_cast %529 : vector<1x32x32xf32> to vector<32x32xf32>
    %cst_144 = arith.constant dense<0.000000e+00> : vector<8x32xf32>
    %531 = tpu.matmul %528, %530, %cst_144 {dimension_numbers = #tpu.dot_dimension_numbers<[1], [0], [0], [1], [0, 0, 1, 1], [], []>} : vector<8x32xf32>, vector<32x32xf32>, vector<8x32xf32> -> vector<8x32xf32>
    %532 = vector.broadcast %521 : vector<1x32xf32> to vector<8x32xf32>
    %533 = arith.addf %532, %531 : vector<8x32xf32>
    %c1_i32_145 = arith.constant 1 : i32
    %534 = tpu.dynamic_rotate %520 by %c1_i32_145 dim 0 : vector<8x32xf32>, i32 -> vector<8x32xf32>
    %c1_i32_146 = arith.constant 1 : i32
    %535 = vector.broadcast %c1_i32_146 : i32 to vector<8x1xi32>
    %536 = arith.cmpi sge, %490, %535 : vector<8x1xi32>
    %cst_147 = arith.constant 0.000000e+00 : f32
    %537 = vector.shape_cast %536 : vector<8x1xi1> to vector<8x1xi1>
    %538 = vector.broadcast %537 : vector<8x1xi1> to vector<8x32xi1>
    %539 = vector.broadcast %cst_147 : f32 to vector<8x32xf32>
    %540 = arith.select %538, %534, %539 : vector<8x32xi1>, vector<8x32xf32>
    %c1_148 = arith.constant 1 : index
    %c0_149 = arith.constant 0 : index
    %c0_150 = arith.constant 0 : index
    %541 = vector.load %arg12[%c1_148, %c0_149, %c0_150] : memref<3x32x32xf32, #tpu.memory_space<vmem>>, vector<1x32x32xf32>
    %542 = vector.shape_cast %541 : vector<1x32x32xf32> to vector<32x32xf32>
    %cst_151 = arith.constant dense<0.000000e+00> : vector<8x32xf32>
    %543 = tpu.matmul %540, %542, %cst_151 {dimension_numbers = #tpu.dot_dimension_numbers<[1], [0], [0], [1], [0, 0, 1, 1], [], []>} : vector<8x32xf32>, vector<32x32xf32>, vector<8x32xf32> -> vector<8x32xf32>
    %544 = arith.addf %533, %543 : vector<8x32xf32>
    %c2_152 = arith.constant 2 : index
    %c0_153 = arith.constant 0 : index
    %c0_154 = arith.constant 0 : index
    %545 = vector.load %arg12[%c2_152, %c0_153, %c0_154] : memref<3x32x32xf32, #tpu.memory_space<vmem>>, vector<1x32x32xf32>
    %546 = vector.shape_cast %545 : vector<1x32x32xf32> to vector<32x32xf32>
    %cst_155 = arith.constant dense<0.000000e+00> : vector<8x32xf32>
    %547 = tpu.matmul %520, %546, %cst_155 {dimension_numbers = #tpu.dot_dimension_numbers<[1], [0], [0], [1], [0, 0, 1, 1], [], []>} : vector<8x32xf32>, vector<32x32xf32>, vector<8x32xf32> -> vector<8x32xf32>
    %548 = arith.addf %544, %547 : vector<8x32xf32>
    %cst_156 = arith.constant 0.000000e+00 : f32
    %549 = vector.broadcast %cst_156 : f32 to vector<8x32xf32>
    %550 = arith.maximumf %548, %549 : vector<8x32xf32>
    %c0_157 = arith.constant 0 : index
    %c0_158 = arith.constant 0 : index
    %551 = vector.load %arg14[%c0_157, %c0_158] : memref<16x32xf32, #tpu.memory_space<vmem>>, vector<16x32xf32>
    %cst_159 = arith.constant dense<0.000000e+00> : vector<8x32xf32>
    %552 = tpu.matmul %1, %551, %cst_159 {dimension_numbers = #tpu.dot_dimension_numbers<[1], [0], [0], [1], [0, 0, 1, 1], [], []>} : vector<8x16xf32>, vector<16x32xf32>, vector<8x32xf32> -> vector<8x32xf32>
    %c0_160 = arith.constant 0 : index
    %c0_161 = arith.constant 0 : index
    %553 = vector.load %arg15[%c0_160, %c0_161] : memref<1x32xf32, #tpu.memory_space<vmem>>, vector<1x32xf32>
    %554 = vector.broadcast %553 : vector<1x32xf32> to vector<8x32xf32>
    %555 = arith.addf %552, %554 : vector<8x32xf32>
    %556 = arith.addf %550, %555 : vector<8x32xf32>
    %cst_162 = arith.constant 0.000000e+00 : f32
    %557 = vector.broadcast %cst_162 : f32 to vector<8x32xf32>
    %558 = arith.maximumf %556, %557 : vector<8x32xf32>
    %c0_163 = arith.constant 0 : index
    %c0_164 = arith.constant 0 : index
    %559 = vector.load %arg17[%c0_163, %c0_164] : memref<1x32xf32, #tpu.memory_space<vmem>>, vector<1x32xf32>
    %c4_i32 = arith.constant 4 : i32
    %560 = tpu.dynamic_rotate %558 by %c4_i32 dim 0 : vector<8x32xf32>, i32 -> vector<8x32xf32>
    %c4_i32_165 = arith.constant 4 : i32
    %561 = vector.broadcast %c4_i32_165 : i32 to vector<8x1xi32>
    %562 = arith.cmpi sge, %490, %561 : vector<8x1xi32>
    %cst_166 = arith.constant 0.000000e+00 : f32
    %563 = vector.shape_cast %562 : vector<8x1xi1> to vector<8x1xi1>
    %564 = vector.broadcast %563 : vector<8x1xi1> to vector<8x32xi1>
    %565 = vector.broadcast %cst_166 : f32 to vector<8x32xf32>
    %566 = arith.select %564, %560, %565 : vector<8x32xi1>, vector<8x32xf32>
    %c0_167 = arith.constant 0 : index
    %c0_168 = arith.constant 0 : index
    %c0_169 = arith.constant 0 : index
    %567 = vector.load %arg16[%c0_167, %c0_168, %c0_169] : memref<3x32x32xf32, #tpu.memory_space<vmem>>, vector<1x32x32xf32>
    %568 = vector.shape_cast %567 : vector<1x32x32xf32> to vector<32x32xf32>
    %cst_170 = arith.constant dense<0.000000e+00> : vector<8x32xf32>
    %569 = tpu.matmul %566, %568, %cst_170 {dimension_numbers = #tpu.dot_dimension_numbers<[1], [0], [0], [1], [0, 0, 1, 1], [], []>} : vector<8x32xf32>, vector<32x32xf32>, vector<8x32xf32> -> vector<8x32xf32>
    %570 = vector.broadcast %559 : vector<1x32xf32> to vector<8x32xf32>
    %571 = arith.addf %570, %569 : vector<8x32xf32>
    %c2_i32_171 = arith.constant 2 : i32
    %572 = tpu.dynamic_rotate %558 by %c2_i32_171 dim 0 : vector<8x32xf32>, i32 -> vector<8x32xf32>
    %c2_i32_172 = arith.constant 2 : i32
    %573 = vector.broadcast %c2_i32_172 : i32 to vector<8x1xi32>
    %574 = arith.cmpi sge, %490, %573 : vector<8x1xi32>
    %cst_173 = arith.constant 0.000000e+00 : f32
    %575 = vector.shape_cast %574 : vector<8x1xi1> to vector<8x1xi1>
    %576 = vector.broadcast %575 : vector<8x1xi1> to vector<8x32xi1>
    %577 = vector.broadcast %cst_173 : f32 to vector<8x32xf32>
    %578 = arith.select %576, %572, %577 : vector<8x32xi1>, vector<8x32xf32>
    %c1_174 = arith.constant 1 : index
    %c0_175 = arith.constant 0 : index
    %c0_176 = arith.constant 0 : index
    %579 = vector.load %arg16[%c1_174, %c0_175, %c0_176] : memref<3x32x32xf32, #tpu.memory_space<vmem>>, vector<1x32x32xf32>
    %580 = vector.shape_cast %579 : vector<1x32x32xf32> to vector<32x32xf32>
    %cst_177 = arith.constant dense<0.000000e+00> : vector<8x32xf32>
    %581 = tpu.matmul %578, %580, %cst_177 {dimension_numbers = #tpu.dot_dimension_numbers<[1], [0], [0], [1], [0, 0, 1, 1], [], []>} : vector<8x32xf32>, vector<32x32xf32>, vector<8x32xf32> -> vector<8x32xf32>
    %582 = arith.addf %571, %581 : vector<8x32xf32>
    %c2_178 = arith.constant 2 : index
    %c0_179 = arith.constant 0 : index
    %c0_180 = arith.constant 0 : index
    %583 = vector.load %arg16[%c2_178, %c0_179, %c0_180] : memref<3x32x32xf32, #tpu.memory_space<vmem>>, vector<1x32x32xf32>
    %584 = vector.shape_cast %583 : vector<1x32x32xf32> to vector<32x32xf32>
    %cst_181 = arith.constant dense<0.000000e+00> : vector<8x32xf32>
    %585 = tpu.matmul %558, %584, %cst_181 {dimension_numbers = #tpu.dot_dimension_numbers<[1], [0], [0], [1], [0, 0, 1, 1], [], []>} : vector<8x32xf32>, vector<32x32xf32>, vector<8x32xf32> -> vector<8x32xf32>
    %586 = arith.addf %582, %585 : vector<8x32xf32>
    %cst_182 = arith.constant 0.000000e+00 : f32
    %587 = vector.broadcast %cst_182 : f32 to vector<8x32xf32>
    %588 = arith.maximumf %586, %587 : vector<8x32xf32>
    %c0_183 = arith.constant 0 : index
    %c0_184 = arith.constant 0 : index
    %589 = vector.load %arg19[%c0_183, %c0_184] : memref<1x32xf32, #tpu.memory_space<vmem>>, vector<1x32xf32>
    %c4_i32_185 = arith.constant 4 : i32
    %590 = tpu.dynamic_rotate %588 by %c4_i32_185 dim 0 : vector<8x32xf32>, i32 -> vector<8x32xf32>
    %c4_i32_186 = arith.constant 4 : i32
    %591 = vector.broadcast %c4_i32_186 : i32 to vector<8x1xi32>
    %592 = arith.cmpi sge, %490, %591 : vector<8x1xi32>
    %cst_187 = arith.constant 0.000000e+00 : f32
    %593 = vector.shape_cast %592 : vector<8x1xi1> to vector<8x1xi1>
    %594 = vector.broadcast %593 : vector<8x1xi1> to vector<8x32xi1>
    %595 = vector.broadcast %cst_187 : f32 to vector<8x32xf32>
    %596 = arith.select %594, %590, %595 : vector<8x32xi1>, vector<8x32xf32>
    %c0_188 = arith.constant 0 : index
    %c0_189 = arith.constant 0 : index
    %c0_190 = arith.constant 0 : index
    %597 = vector.load %arg18[%c0_188, %c0_189, %c0_190] : memref<3x32x32xf32, #tpu.memory_space<vmem>>, vector<1x32x32xf32>
    %598 = vector.shape_cast %597 : vector<1x32x32xf32> to vector<32x32xf32>
    %cst_191 = arith.constant dense<0.000000e+00> : vector<8x32xf32>
    %599 = tpu.matmul %596, %598, %cst_191 {dimension_numbers = #tpu.dot_dimension_numbers<[1], [0], [0], [1], [0, 0, 1, 1], [], []>} : vector<8x32xf32>, vector<32x32xf32>, vector<8x32xf32> -> vector<8x32xf32>
    %600 = vector.broadcast %589 : vector<1x32xf32> to vector<8x32xf32>
    %601 = arith.addf %600, %599 : vector<8x32xf32>
    %c2_i32_192 = arith.constant 2 : i32
    %602 = tpu.dynamic_rotate %588 by %c2_i32_192 dim 0 : vector<8x32xf32>, i32 -> vector<8x32xf32>
    %c2_i32_193 = arith.constant 2 : i32
    %603 = vector.broadcast %c2_i32_193 : i32 to vector<8x1xi32>
    %604 = arith.cmpi sge, %490, %603 : vector<8x1xi32>
    %cst_194 = arith.constant 0.000000e+00 : f32
    %605 = vector.shape_cast %604 : vector<8x1xi1> to vector<8x1xi1>
    %606 = vector.broadcast %605 : vector<8x1xi1> to vector<8x32xi1>
    %607 = vector.broadcast %cst_194 : f32 to vector<8x32xf32>
    %608 = arith.select %606, %602, %607 : vector<8x32xi1>, vector<8x32xf32>
    %c1_195 = arith.constant 1 : index
    %c0_196 = arith.constant 0 : index
    %c0_197 = arith.constant 0 : index
    %609 = vector.load %arg18[%c1_195, %c0_196, %c0_197] : memref<3x32x32xf32, #tpu.memory_space<vmem>>, vector<1x32x32xf32>
    %610 = vector.shape_cast %609 : vector<1x32x32xf32> to vector<32x32xf32>
    %cst_198 = arith.constant dense<0.000000e+00> : vector<8x32xf32>
    %611 = tpu.matmul %608, %610, %cst_198 {dimension_numbers = #tpu.dot_dimension_numbers<[1], [0], [0], [1], [0, 0, 1, 1], [], []>} : vector<8x32xf32>, vector<32x32xf32>, vector<8x32xf32> -> vector<8x32xf32>
    %612 = arith.addf %601, %611 : vector<8x32xf32>
    %c2_199 = arith.constant 2 : index
    %c0_200 = arith.constant 0 : index
    %c0_201 = arith.constant 0 : index
    %613 = vector.load %arg18[%c2_199, %c0_200, %c0_201] : memref<3x32x32xf32, #tpu.memory_space<vmem>>, vector<1x32x32xf32>
    %614 = vector.shape_cast %613 : vector<1x32x32xf32> to vector<32x32xf32>
    %cst_202 = arith.constant dense<0.000000e+00> : vector<8x32xf32>
    %615 = tpu.matmul %588, %614, %cst_202 {dimension_numbers = #tpu.dot_dimension_numbers<[1], [0], [0], [1], [0, 0, 1, 1], [], []>} : vector<8x32xf32>, vector<32x32xf32>, vector<8x32xf32> -> vector<8x32xf32>
    %616 = arith.addf %612, %615 : vector<8x32xf32>
    %cst_203 = arith.constant 0.000000e+00 : f32
    %617 = vector.broadcast %cst_203 : f32 to vector<8x32xf32>
    %618 = arith.maximumf %616, %617 : vector<8x32xf32>
    %619 = arith.addf %618, %558 : vector<8x32xf32>
    %cst_204 = arith.constant 0.000000e+00 : f32
    %620 = vector.broadcast %cst_204 : f32 to vector<8x32xf32>
    %621 = arith.maximumf %619, %620 : vector<8x32xf32>
    %622 = arith.addf %489, %621 : vector<8x32xf32>
    %c0_205 = arith.constant 0 : index
    %c0_206 = arith.constant 0 : index
    %623 = vector.load %arg20[%c0_205, %c0_206] : memref<32x32xf32, #tpu.memory_space<vmem>>, vector<32x32xf32>
    %cst_207 = arith.constant dense<0.000000e+00> : vector<8x32xf32>
    %624 = tpu.matmul %622, %623, %cst_207 {dimension_numbers = #tpu.dot_dimension_numbers<[1], [0], [0], [1], [0, 0, 1, 1], [], []>} : vector<8x32xf32>, vector<32x32xf32>, vector<8x32xf32> -> vector<8x32xf32>
    %c0_208 = arith.constant 0 : index
    %c0_209 = arith.constant 0 : index
    %625 = vector.load %arg21[%c0_208, %c0_209] : memref<1x32xf32, #tpu.memory_space<vmem>>, vector<1x32xf32>
    %626 = vector.broadcast %625 : vector<1x32xf32> to vector<8x32xf32>
    %627 = arith.addf %624, %626 : vector<8x32xf32>
    %c0_210 = arith.constant 0 : index
    %c0_211 = arith.constant 0 : index
    %628 = vector.load %arg22[%c0_210, %c0_211] : memref<32x32xf32, #tpu.memory_space<vmem>>, vector<32x32xf32>
    %cst_212 = arith.constant dense<0.000000e+00> : vector<8x32xf32>
    %629 = tpu.matmul %622, %628, %cst_212 {dimension_numbers = #tpu.dot_dimension_numbers<[1], [0], [0], [1], [0, 0, 1, 1], [], []>} : vector<8x32xf32>, vector<32x32xf32>, vector<8x32xf32> -> vector<8x32xf32>
    %c0_213 = arith.constant 0 : index
    %c0_214 = arith.constant 0 : index
    %630 = vector.load %arg23[%c0_213, %c0_214] : memref<1x32xf32, #tpu.memory_space<vmem>>, vector<1x32xf32>
    %631 = vector.broadcast %630 : vector<1x32xf32> to vector<8x32xf32>
    %632 = arith.addf %629, %631 : vector<8x32xf32>
    %c0_215 = arith.constant 0 : index
    %c0_216 = arith.constant 0 : index
    %633 = vector.load %arg24[%c0_215, %c0_216] : memref<32x32xf32, #tpu.memory_space<vmem>>, vector<32x32xf32>
    %cst_217 = arith.constant dense<0.000000e+00> : vector<8x32xf32>
    %634 = tpu.matmul %622, %633, %cst_217 {dimension_numbers = #tpu.dot_dimension_numbers<[1], [0], [0], [1], [0, 0, 1, 1], [], []>} : vector<8x32xf32>, vector<32x32xf32>, vector<8x32xf32> -> vector<8x32xf32>
    %c0_218 = arith.constant 0 : index
    %c0_219 = arith.constant 0 : index
    %635 = vector.load %arg25[%c0_218, %c0_219] : memref<1x32xf32, #tpu.memory_space<vmem>>, vector<1x32xf32>
    %636 = vector.broadcast %635 : vector<1x32xf32> to vector<8x32xf32>
    %637 = arith.addf %634, %636 : vector<8x32xf32>
    %cst_220 = arith.constant dense<0.000000e+00> : vector<8x8xf32>
    %638 = tpu.matmul %627, %632, %cst_220 {dimension_numbers = #tpu.dot_dimension_numbers<[1], [1], [0], [0], [0, 0, 1, 0], [], []>} : vector<8x32xf32>, vector<8x32xf32>, vector<8x8xf32> -> vector<8x8xf32>
    %cst_221 = arith.constant dense<0xFF800000> : vector<8xf32>
    %639 = vector.multi_reduction <maximumf>, %638, %cst_221 [1] : vector<8x8xf32> to vector<8xf32>
    %640 = vector.shape_cast %639 : vector<8xf32> to vector<8x1xf32>
    %641 = vector.broadcast %640 : vector<8x1xf32> to vector<8x8xf32>
    %642 = arith.subf %638, %641 : vector<8x8xf32>
    %643 = math.exp %642 : vector<8x8xf32>
    %cst_222 = arith.constant dense<0.000000e+00> : vector<8xf32>
    %644 = vector.multi_reduction <add>, %643, %cst_222 [1] : vector<8x8xf32> to vector<8xf32>
    %645 = vector.shape_cast %644 : vector<8xf32> to vector<8x1xf32>
    %646 = tpu.reciprocal %645 {approx = true} : vector<8x1xf32> -> vector<8x1xf32>
    %647 = vector.broadcast %646 : vector<8x1xf32> to vector<8x8xf32>
    %648 = arith.mulf %643, %647 : vector<8x8xf32>
    %cst_223 = arith.constant dense<0.000000e+00> : vector<8x32xf32>
    %649 = tpu.matmul %648, %637, %cst_223 {dimension_numbers = #tpu.dot_dimension_numbers<[1], [0], [0], [1], [0, 0, 1, 1], [], []>} : vector<8x8xf32>, vector<8x32xf32>, vector<8x32xf32> -> vector<8x32xf32>
    %650 = arith.addf %622, %649 : vector<8x32xf32>
    %c0_224 = arith.constant 0 : index
    %c0_225 = arith.constant 0 : index
    %c0_226 = arith.constant 0 : index
    %651 = vector.load %arg26[%c0_224, %c0_225, %c0_226] : memref<1x8x32xf32, #tpu.memory_space<vmem>>, vector<1x8x32xf32>
    %652 = vector.shape_cast %651 : vector<1x8x32xf32> to vector<8x32xf32>
    %653 = vector.shape_cast %650 : vector<8x32xf32> to vector<1x8x32xf32>
    tpu.vector_store %arg26[%c0_224, %c0_225, %c0_226], %653 {strides = array<i32>} : memref<1x8x32xf32, #tpu.memory_space<vmem>>, vector<1x8x32xf32>,
    return
  }
  func.func @transform_0(%arg0: i32) -> (i32, i32, i32) {
    %c0_i32 = arith.constant 0 : i32
    %c0_i32_0 = arith.constant 0 : i32
    %c0_i32_1 = arith.constant 0 : i32
    return %arg0, %c0_i32, %c0_i32_0 : i32, i32, i32
  }
  func.func @transform_1(%arg0: i32) -> (i32, i32) {
    %c0_i32 = arith.constant 0 : i32
    %c0_i32_0 = arith.constant 0 : i32
    %c0_i32_1 = arith.constant 0 : i32
    return %c0_i32, %c0_i32_0 : i32, i32
  }
  func.func @transform_2(%arg0: i32) -> (i32, i32) {
    %c0_i32 = arith.constant 0 : i32
    %c0_i32_0 = arith.constant 0 : i32
    %c0_i32_1 = arith.constant 0 : i32
    return %c0_i32, %c0_i32_0 : i32, i32
  }
  func.func @transform_3(%arg0: i32) -> (i32, i32) {
    %c0_i32 = arith.constant 0 : i32
    %c0_i32_0 = arith.constant 0 : i32
    %c0_i32_1 = arith.constant 0 : i32
    return %c0_i32, %c0_i32_0 : i32, i32
  }
  func.func @transform_4(%arg0: i32) -> (i32, i32) {
    %c0_i32 = arith.constant 0 : i32
    %c0_i32_0 = arith.constant 0 : i32
    %c0_i32_1 = arith.constant 0 : i32
    return %c0_i32, %c0_i32_0 : i32, i32
  }
  func.func @transform_5(%arg0: i32) -> (i32, i32) {
    %c0_i32 = arith.constant 0 : i32
    %c0_i32_0 = arith.constant 0 : i32
    %c0_i32_1 = arith.constant 0 : i32
    return %c0_i32, %c0_i32_0 : i32, i32
  }
  func.func @transform_6(%arg0: i32) -> (i32, i32) {
    %c0_i32 = arith.constant 0 : i32
    %c0_i32_0 = arith.constant 0 : i32
    %c0_i32_1 = arith.constant 0 : i32
    return %c0_i32, %c0_i32_0 : i32, i32
  }
  func.func @transform_7(%arg0: i32) -> (i32, i32) {
    %c0_i32 = arith.constant 0 : i32
    %c0_i32_0 = arith.constant 0 : i32
    %c0_i32_1 = arith.constant 0 : i32
    return %c0_i32, %c0_i32_0 : i32, i32
  }
  func.func @transform_8(%arg0: i32) -> (i32, i32) {
    %c0_i32 = arith.constant 0 : i32
    %c0_i32_0 = arith.constant 0 : i32
    %c0_i32_1 = arith.constant 0 : i32
    return %c0_i32, %c0_i32_0 : i32, i32
  }
  func.func @transform_9(%arg0: i32) -> (i32, i32, i32) {
    %c0_i32 = arith.constant 0 : i32
    %c0_i32_0 = arith.constant 0 : i32
    %c0_i32_1 = arith.constant 0 : i32
    %c0_i32_2 = arith.constant 0 : i32
    return %c0_i32, %c0_i32_0, %c0_i32_1 : i32, i32, i32
  }
  func.func @transform_10(%arg0: i32) -> (i32, i32) {
    %c0_i32 = arith.constant 0 : i32
    %c0_i32_0 = arith.constant 0 : i32
    %c0_i32_1 = arith.constant 0 : i32
    return %c0_i32, %c0_i32_0 : i32, i32
  }
  func.func @transform_11(%arg0: i32) -> (i32, i32, i32) {
    %c0_i32 = arith.constant 0 : i32
    %c0_i32_0 = arith.constant 0 : i32
    %c0_i32_1 = arith.constant 0 : i32
    %c0_i32_2 = arith.constant 0 : i32
    return %c0_i32, %c0_i32_0, %c0_i32_1 : i32, i32, i32
  }
  func.func @transform_12(%arg0: i32) -> (i32, i32) {
    %c0_i32 = arith.constant 0 : i32
    %c0_i32_0 = arith.constant 0 : i32
    %c0_i32_1 = arith.constant 0 : i32
    return %c0_i32, %c0_i32_0 : i32, i32
  }
  func.func @transform_13(%arg0: i32) -> (i32, i32) {
    %c0_i32 = arith.constant 0 : i32
    %c0_i32_0 = arith.constant 0 : i32
    %c0_i32_1 = arith.constant 0 : i32
    return %c0_i32, %c0_i32_0 : i32, i32
  }
  func.func @transform_14(%arg0: i32) -> (i32, i32) {
    %c0_i32 = arith.constant 0 : i32
    %c0_i32_0 = arith.constant 0 : i32
    %c0_i32_1 = arith.constant 0 : i32
    return %c0_i32, %c0_i32_0 : i32, i32
  }
  func.func @transform_15(%arg0: i32) -> (i32, i32, i32) {
    %c0_i32 = arith.constant 0 : i32
    %c0_i32_0 = arith.constant 0 : i32
    %c0_i32_1 = arith.constant 0 : i32
    %c0_i32_2 = arith.constant 0 : i32
    return %c0_i32, %c0_i32_0, %c0_i32_1 : i32, i32, i32
  }
  func.func @transform_16(%arg0: i32) -> (i32, i32) {
    %c0_i32 = arith.constant 0 : i32
    %c0_i32_0 = arith.constant 0 : i32
    %c0_i32_1 = arith.constant 0 : i32
    return %c0_i32, %c0_i32_0 : i32, i32
  }
  func.func @transform_17(%arg0: i32) -> (i32, i32, i32) {
    %c0_i32 = arith.constant 0 : i32
    %c0_i32_0 = arith.constant 0 : i32
    %c0_i32_1 = arith.constant 0 : i32
    %c0_i32_2 = arith.constant 0 : i32
    return %c0_i32, %c0_i32_0, %c0_i32_1 : i32, i32, i32
  }
  func.func @transform_18(%arg0: i32) -> (i32, i32) {
    %c0_i32 = arith.constant 0 : i32
    %c0_i32_0 = arith.constant 0 : i32
    %c0_i32_1 = arith.constant 0 : i32
    return %c0_i32, %c0_i32_0 : i32, i32
  }
  func.func @transform_19(%arg0: i32) -> (i32, i32) {
    %c0_i32 = arith.constant 0 : i32
    %c0_i32_0 = arith.constant 0 : i32
    %c0_i32_1 = arith.constant 0 : i32
    return %c0_i32, %c0_i32_0 : i32, i32
  }
  func.func @transform_20(%arg0: i32) -> (i32, i32) {
    %c0_i32 = arith.constant 0 : i32
    %c0_i32_0 = arith.constant 0 : i32
    %c0_i32_1 = arith.constant 0 : i32
    return %c0_i32, %c0_i32_0 : i32, i32
  }
  func.func @transform_21(%arg0: i32) -> (i32, i32) {
    %c0_i32 = arith.constant 0 : i32
    %c0_i32_0 = arith.constant 0 : i32
    %c0_i32_1 = arith.constant 0 : i32
    return %c0_i32, %c0_i32_0 : i32, i32
  }
  func.func @transform_22(%arg0: i32) -> (i32, i32) {
    %c0_i32 = arith.constant 0 : i32
    %c0_i32_0 = arith.constant 0 : i32
    %c0_i32_1 = arith.constant 0 : i32
    return %c0_i32, %c0_i32_0 : i32, i32
  }
  func.func @transform_23(%arg0: i32) -> (i32, i32) {
    %c0_i32 = arith.constant 0 : i32
    %c0_i32_0 = arith.constant 0 : i32
    %c0_i32_1 = arith.constant 0 : i32
    return %c0_i32, %c0_i32_0 : i32, i32
  }
  func.func @transform_24(%arg0: i32) -> (i32, i32) {
    %c0_i32 = arith.constant 0 : i32
    %c0_i32_0 = arith.constant 0 : i32
    %c0_i32_1 = arith.constant 0 : i32
    return %c0_i32, %c0_i32_0 : i32, i32
  }
  func.func @transform_25(%arg0: i32) -> (i32, i32, i32) {
    %c0_i32 = arith.constant 0 : i32
    %c0_i32_0 = arith.constant 0 : i32
    %c0_i32_1 = arith.constant 0 : i32
    return %arg0, %c0_i32, %c0_i32_0 : i32, i32, i32
  }
}

</mosaic_0001>

<bundles_post_ra>
// kernel: tlab_forward.1
= control target key start
LH: loop header
LB: loop body
LE: loop exit
PB: predicated region body
PF: predicated region fallthrough
CT: control target
= control target key end

     0   :  { %s5238_s0 = inlined_call_operand.hbm [shape: f32[2,8,16], index: 0, kind: input, shape index: {}]   ;;  %s5239_s1 = inlined_call_operand.hbm [shape: f32[16,128], index: 1, kind: input, shape index: {}]   ;;  %s5240_s2 = inlined_call_operand.hbm [shape: f32[32,128], index: 2, kind: input, shape index: {}]   ;;  %s5241_s3 = inlined_call_operand.hbm [shape: f32[1,128], index: 3, kind: input, shape index: {}]   ;;  %s5242_s4 = inlined_call_operand.hbm [shape: f32[32,128], index: 4, kind: input, shape index: {}]   ;;  %s5243_s5 = inlined_call_operand.hbm [shape: f32[32,128], index: 5, kind: input, shape index: {}]   ;;  %s5244_s6 = inlined_call_operand.hbm [shape: f32[1,128], index: 6, kind: input, shape index: {}]   ;;  %s5245_s7 = inlined_call_operand.hbm [shape: f32[16,32], index: 7, kind: input, shape index: {}]   ;;  %s5246_s8 = inlined_call_operand.hbm [shape: f32[1,32], index: 8, kind: input, shape index: {}]   ;;  %s5247_s9 = inlined_call_operand.hbm [shape: f32[3,16,32], index: 9, kind: input, shape index: {}]   ;;  %s5248_s10 = inlined_call_operand.hbm [shape: f32[1,32], index: 10, kind: input, shape index: {}]   ;;  %s5249_s11 = inlined_call_operand.hbm [shape: f32[3,32,32], index: 11, kind: input, shape index: {}]   ;;  %s5250_s12 = inlined_call_operand.hbm [shape: f32[1,32], index: 12, kind: input, shape index: {}]   ;;  %s5251_s13 = inlined_call_operand.vmem [shape: f32[16,32], index: 13, kind: input, shape index: {}]   ;;  %s5252_s14 = inlined_call_operand.hbm [shape: f32[1,32], index: 14, kind: input, shape index: {}]   ;;  %s5253_s15 = inlined_call_operand.hbm [shape: f32[3,32,32], index: 15, kind: input, shape index: {}]   ;;  %s5254_s16 = inlined_call_operand.vmem [shape: f32[1,32], index: 16, kind: input, shape index: {}]   ;;  %s5255_s17 = inlined_call_operand.hbm [shape: f32[3,32,32], index: 17, kind: input, shape index: {}]   ;;  %s5256_s18 = inlined_call_operand.vmem [shape: f32[1,32], index: 18, kind: input, shape index: {}]   ;;  %s5257_s19 = inlined_call_operand.hbm [shape: f32[32,32], index: 19, kind: input, shape index: {}]   ;;  %s5258_s20 = inlined_call_operand.hbm [shape: f32[1,32], index: 20, kind: input, shape index: {}]   ;;  %s5259_s21 = inlined_call_operand.hbm [shape: f32[32,32], index: 21, kind: input, shape index: {}]   ;;  %s5260_s22 = inlined_call_operand.hbm [shape: f32[1,32], index: 22, kind: input, shape index: {}]   ;;  %s5261_s23 = inlined_call_operand.hbm [shape: f32[32,32], index: 23, kind: input, shape index: {}]   ;;  %s5262_s24 = inlined_call_operand.hbm [shape: f32[1,32], index: 24, kind: input, shape index: {}]   ;;  %s5263_s25 = inlined_call_operand.hbm [shape: f32[2,8,32], index: 25, kind: output, shape index: {}]  }
   0x1   :  { %5274 = sst [smem:[#allocation55_spill]] %s5238_s0 }
   0x2   :  { %5275 = sst [smem:[#allocation56_spill]] %s5239_s1 }
   0x3   :  { %5276 = sst [smem:[#allocation57_spill]] %s5240_s2 }
   0x4   :  { %5277 = sst [smem:[#allocation58_spill]] %s5241_s3 }
   0x5   :  { %5278 = sst [smem:[#allocation59_spill]] %s5242_s4 }
   0x6   :  { %5279 = sst [smem:[#allocation60_spill]] %s5243_s5 }
   0x7   :  { %5280 = sst [smem:[#allocation61_spill]] %s5244_s6 }
   0x8   :  { %5281 = sst [smem:[#allocation62_spill]] %s5245_s7 }
   0x9   :  { %5282 = sst [smem:[#allocation63_spill]] %s5246_s8 }
   0xa   :  { %5283 = sst [smem:[#allocation64_spill]] %s5247_s9 }
   0xb   :  { %5284 = sst [smem:[#allocation65_spill]] %s5248_s10 }
   0xc   :  { %5285 = sst [smem:[#allocation66_spill]] %s5249_s11 }
   0xd   :  { %5286 = sst [smem:[#allocation67_spill]] %s5251_s13 }
   0xe   :  { %5287 = sst [smem:[#allocation68_spill]] %s5254_s16 }
   0xf   :  { %5288 = sst [smem:[#allocation69_spill]] %s5256_s18 }
  0x10   :  { %5289 = sst [smem:[#allocation70_spill]] %s5262_s24 }
  0x11   :  { %5290 = sst [smem:[#allocation71_spill]] %s5263_s25 }
  0x12   :  { %30 = vsyncpa [#allocation4], 0 }
  0x13   :  { %32 = vsyncpa [#allocation4 + $0x1], 0 }
  0x14   :  { %33 = vsyncpa [#allocation7], 0 }
  0x15   :  { %34 = vsyncpa [#allocation10], 0 }
  0x16   :  { %35 = vsyncpa [#allocation13], 0 }
  0x17   :  { %36 = vsyncpa [#allocation16], 0 }
  0x18   :  { %37 = vsyncpa [#allocation19], 0 }
  0x19   :  { %38 = vsyncpa [#allocation22], 0 }
  0x1a   :  { %39 = vsyncpa [#allocation25], 0 }
  0x1b   :  { %40 = vsyncpa [#allocation28], 0 }
  0x1c   :  { %41 = vsyncpa [#allocation31], 0 }
  0x1d   :  { %42 = vsyncpa [#allocation34], 0 }
  0x1e   :  { %43 = vsyncpa [#allocation37], 0 }
  0x1f   :  { %44 = vsyncpa [#allocation5], 0 }
  0x20   :  { %46 = vsyncpa [#allocation5 + $0x1], 0  ;;  %s4667_s29 = smov 0   ;;  %s4669_s2 = smov 0  }
  0x21   :  { %s4671_s6 = smov 0   ;;  %s4673_s30 = smov 0  }
  0x22 LB: > { %5291 = sst [smem:[#allocation52_spill]] %s4497_s29  ;;  %s4691_s8 = sadd.s32 4294967295, %s4509_s30   ;;  %s4509_s30 = sphi %s4673_s30, %s5328_s30   ;;  %s4505_s6 = sphi %s4671_s6, %s5327_s6   ;;  %s4501_s2 = sphi %s4669_s2, %s5326_s2   ;;  %s4497_s29 = sphi %s4667_s29, %s5325_s29  }
  0x23   : > { %s5292_s26 = sld [smem:[#allocation56_spill]]  ;;  %p3228_p0 = scmp.ge.s32.totalorder %s4509_s30, 1 }
  0x24   : > { %5293 = sst [smem:[#allocation53_spill]] %s4691_s8  ;;  %p73_p1 = scmp.eq.s32.totalorder %s4691_s8, 0 }
  0x25   : > { %p613_p2 = scmp.lt.s32.totalorder %s4509_s30, 3  ;;  %s4511_s4 = smov [#allocation6]  }
  0x26   : > { %s626_s28 = sshll.u32 %s4511_s4, 4  ;;  %s5296_s0 = sld [smem:[#allocation58_spill]]  ;;  %s627_s28 = int_to_ptr.vmem [resolvable:$true] %s626_s28 }
  0x27   : > { %p4696_p3 = pnand %p3228_p0, %p613_p2  ;;  %s5298_s4 = sld [smem:[#allocation60_spill]] }
  0x28   : > { %s4512_s16 = smov [#allocation9]   ;;  %s4514_s29 = smov 8  }
  0x29   : > { %s624_s1 = sshll.u32 %s5292_s26, 4  ;;  %p3421_p4 = pneg %p4696_p3  ;;  %s625_s1 = int_to_ptr.hbm [resolvable:$true] %s624_s1 }
  0x2a   : > { %s5294_s27 = scalar_select %p4696_p3, 1, 0 }
  0x2b   : > { %p4708_p6 = pnand %p3421_p4, %p73_p1  ;;  %s655_s13 = sshll.u32 %s4512_s16, 4  ;;  %s656_s13 = int_to_ptr.vmem [resolvable:$true] %s655_s13 }
  0x2c   : > { %5295 = sst [smem:[#allocation54_spill]] %s5294_s27  ;;  %s653_s7 = sshll.u32 %s5296_s0, 4  ;;  %s654_s7 = int_to_ptr.hbm [resolvable:$true] %s653_s7 }
  0x2d   : > { %s678_s18 = sshll.u32 %s5298_s4, 4  ;;  %s5271_s27 = smov 128   ;;  %s679_s18 = int_to_ptr.hbm [resolvable:$true] %s678_s18 }
  0x2e   : > { %3424 = dma.hbm_to_vmem [thread:$0]  (!%p4708_p6), %s625_s1, 256, %s627_s28, [#allocation7], %s5271_s27, %s5271_s27, %s4514_s29  }
  0x2f   : > { %3430 = dma.hbm_to_vmem [thread:$0]  (!%p4708_p6), %s654_s7, 16, %s656_s13, [#allocation10]  }
  0x30   : > { %s5299_s0 = sld [smem:[#allocation62_spill]]  ;;  %s4515_s25 = smov [#allocation12]  }
  0x31   : > { %s680_s26 = sshll.u32 %s4515_s25, 4  ;;  %s4516_s16 = smov [#allocation15]   ;;  %s681_s26 = int_to_ptr.vmem [resolvable:$true] %s680_s26 }
  0x32   : > { %3436 = dma.hbm_to_vmem [thread:$0]  (!%p4708_p6), %s679_s18, 512, %s681_s26, [#allocation13], %s5271_s27, %s5271_s27, %s4514_s29  }
  0x33   : > { %s706_s1 = sshll.u32 %s4516_s16, 4  ;;  %s5300_s24 = sld [smem:[#allocation64_spill]]  ;;  %s707_s1 = int_to_ptr.vmem [resolvable:$true] %s706_s1 }
  0x34   : > { %s5301_s11 = sld [smem:[#allocation66_spill]]  ;;  %s814_s4 = sshll.u32 %s5255_s17, 4  ;;  %s815_s4 = int_to_ptr.hbm [resolvable:$true] %s814_s4 }
  0x35   : > { %s4519_s7 = smov [#allocation24]   ;;  %s4520_s9 = smov [#allocation27]  }
  0x36   : > { %s704_s8 = sshll.u32 %s5299_s0, 4  ;;  %s4517_s0 = smov [#allocation18]   ;;  %s705_s8 = int_to_ptr.hbm [resolvable:$true] %s704_s8 }
  0x37   : > { %3442 = dma.hbm_to_vmem [thread:$0]  (!%p4708_p6), %s705_s8, 256, %s707_s1, [#allocation16], %s5271_s27, %s5271_s27, %s4514_s29  }
  0x38   : > { %s732_s18 = sshll.u32 %s4517_s0, 4  ;;  %s786_s8 = sshll.u32 %s5252_s14, 4  ;;  %s733_s18 = int_to_ptr.vmem [resolvable:$true] %s732_s18  ;;  %s787_s8 = int_to_ptr.hbm [resolvable:$true] %s786_s8 }
  0x39   : > { %s730_s13 = sshll.u32 %s5300_s24, 4  ;;  %s4518_s24 = smov [#allocation21]   ;;  %s731_s13 = int_to_ptr.hbm [resolvable:$true] %s730_s13 }
  0x3a   : > { %s756_s5 = sshll.u32 %s5301_s11, 4  ;;  %s758_s25 = sshll.u32 %s4518_s24, 4  ;;  %s757_s5 = int_to_ptr.hbm [resolvable:$true] %s756_s5  ;;  %s759_s25 = int_to_ptr.vmem [resolvable:$true] %s758_s25 }
  0x3b   : > { %3448 = dma.hbm_to_vmem [thread:$0]  (!%p4708_p6), %s731_s13, 768, %s733_s18, [#allocation19], %s5271_s27, %s5271_s27, %s4514_s29  }
  0x3c   : > { %3454 = dma.hbm_to_vmem [thread:$0]  (!%p4708_p6), %s757_s5, 1536, %s759_s25, [#allocation22], %s5271_s27, %s5271_s27, %s4514_s29  }
  0x3d   : > { %s788_s13 = sshll.u32 %s4519_s7, 4  ;;  %s816_s0 = sshll.u32 %s4520_s9, 4  ;;  %s789_s13 = int_to_ptr.vmem [resolvable:$true] %s788_s13  ;;  %s817_s0 = int_to_ptr.vmem [resolvable:$true] %s816_s0 }
  0x3e   : > { %3460 = dma.hbm_to_vmem [thread:$0]  (!%p4708_p6), %s787_s8, 16, %s789_s13, [#allocation25]  }
  0x3f   : > { %s846_s26 = sshll.u32 %s5258_s20, 4  ;;  %s872_s16 = sshll.u32 %s5260_s22, 4  ;;  %s847_s26 = int_to_ptr.hbm [resolvable:$true] %s846_s26  ;;  %s873_s16 = int_to_ptr.hbm [resolvable:$true] %s872_s16 }
  0x40   : > { %3466 = dma.hbm_to_vmem [thread:$0]  (!%p4708_p6), %s815_s4, 1536, %s817_s0, [#allocation28], %s5271_s27, %s5271_s27, %s4514_s29  }
  0x41   : > { %s4521_s1 = smov [#allocation30]   ;;  %s4522_s28 = smov [#allocation33]  }
  0x42   : > { %s848_s8 = sshll.u32 %s4521_s1, 4  ;;  %s874_s7 = sshll.u32 %s4522_s28, 4  ;;  %s849_s8 = int_to_ptr.vmem [resolvable:$true] %s848_s8  ;;  %s875_s7 = int_to_ptr.vmem [resolvable:$true] %s874_s7 }
  0x43   : > { %3472 = dma.hbm_to_vmem [thread:$0]  (!%p4708_p6), %s847_s26, 16, %s849_s8, [#allocation31]  }
  0x44   : > { %s5302_s18 = sld [smem:[#allocation57_spill]]  ;;  %s4523_s1 = smov [#allocation8]  }
  0x45   : > { %3478 = dma.hbm_to_vmem [thread:$0]  (!%p4708_p6), %s873_s16, 16, %s875_s7, [#allocation34]  }
  0x46   : > { %s5303_s5 = sld [smem:[#allocation59_spill]]  ;;  %s640_s27 = sshll.u32 %s4523_s1, 4  ;;  %s641_s27 = int_to_ptr.vmem [resolvable:$true] %s640_s27 }
  0x47   : > { %s5304_s26 = smov 128   ;;  %s4524_s8 = smov [#allocation11]  }
  0x48   : > { %s666_s28 = sshll.u32 %s4524_s8, 4  ;;  %s5306_s0 = sld [smem:[#allocation63_spill]]  ;;  %s667_s28 = int_to_ptr.vmem [resolvable:$true] %s666_s28 }
  0x49   : > { %s4525_s1 = smov [#allocation14]   ;;  %s5307_s10 = sld [smem:[#allocation65_spill]] }
  0x4a   : > { %s638_s24 = sshll.u32 %s5302_s18, 4  ;;  %s5305_s18 = sld [smem:[#allocation61_spill]]  ;;  %s639_s24 = int_to_ptr.hbm [resolvable:$true] %s638_s24 }
  0x4b   : > { %3427 = dma.hbm_to_vmem [thread:$0]  (!%p4708_p6), %s639_s24, 512, %s641_s27, [#allocation7], %s5304_s26, %s5304_s26, %s4514_s29  }
  0x4c   : > { %s664_s25 = sshll.u32 %s5303_s5, 4  ;;  %s695_s27 = sshll.u32 %s4525_s1, 4  ;;  %s665_s25 = int_to_ptr.hbm [resolvable:$true] %s664_s25  ;;  %s696_s27 = int_to_ptr.vmem [resolvable:$true] %s695_s27 }
  0x4d   : > { %3433 = dma.hbm_to_vmem [thread:$0]  (!%p4708_p6), %s665_s25, 512, %s667_s28, [#allocation10], %s5304_s26, %s5304_s26, %s4514_s29  }
  0x4e   : > { %s719_s5 = sshll.u32 %s5306_s0, 4  ;;  %s4526_s24 = smov [#allocation17]   ;;  %s720_s5 = int_to_ptr.hbm [resolvable:$true] %s719_s5 }
  0x4f   : > { %s721_s8 = sshll.u32 %s4526_s24, 4  ;;  %s771_s7 = sshll.u32 %s5250_s12, 4  ;;  %s722_s8 = int_to_ptr.vmem [resolvable:$true] %s721_s8  ;;  %s772_s7 = int_to_ptr.hbm [resolvable:$true] %s771_s7 }
  0x50   : > { %s693_s16 = sshll.u32 %s5305_s18, 4  ;;  %s745_s18 = sshll.u32 %s5307_s10, 4  ;;  %s694_s16 = int_to_ptr.hbm [resolvable:$true] %s693_s16  ;;  %s746_s18 = int_to_ptr.hbm [resolvable:$true] %s745_s18 }
  0x51   : > { %3439 = dma.hbm_to_vmem [thread:$0]  (!%p4708_p6), %s694_s16, 16, %s696_s27, [#allocation13]  }
  0x52   : > { %3445 = dma.hbm_to_vmem [thread:$0]  (!%p4708_p6), %s720_s5, 16, %s722_s8, [#allocation16]  }
  0x53   : > { %s4527_s4 = smov [#allocation20]   ;;  %s4528_s16 = smov [#allocation23]  }
  0x54   : > { %s747_s0 = sshll.u32 %s4527_s4, 4  ;;  %s773_s1 = sshll.u32 %s4528_s16, 4  ;;  %s748_s0 = int_to_ptr.vmem [resolvable:$true] %s747_s0  ;;  %s774_s1 = int_to_ptr.vmem [resolvable:$true] %s773_s1 }
  0x55   : > { %3451 = dma.hbm_to_vmem [thread:$0]  (!%p4708_p6), %s746_s18, 16, %s748_s0, [#allocation19]  }
  0x56   : > { %s797_s13 = sshll.u32 %s5253_s15, 4  ;;  %s831_s9 = sshll.u32 %s5257_s19, 4  ;;  %s798_s13 = int_to_ptr.hbm [resolvable:$true] %s797_s13  ;;  %s832_s9 = int_to_ptr.hbm [resolvable:$true] %s831_s9 }
  0x57   : > { %3457 = dma.hbm_to_vmem [thread:$0]  (!%p4708_p6), %s772_s7, 16, %s774_s1, [#allocation22]  }
  0x58   : > { %s4529_s25 = smov [#allocation26]   ;;  %s4530_s18 = smov [#allocation29]  }
  0x59   : > { %s799_s28 = sshll.u32 %s4529_s25, 4  ;;  %s833_s4 = sshll.u32 %s4530_s18, 4  ;;  %s800_s28 = int_to_ptr.vmem [resolvable:$true] %s799_s28  ;;  %s834_s4 = int_to_ptr.vmem [resolvable:$true] %s833_s4 }
  0x5a   : > { %3463 = dma.hbm_to_vmem [thread:$0]  (!%p4708_p6), %s798_s13, 1536, %s800_s28, [#allocation25], %s5304_s26, %s5304_s26, %s4514_s29  }
  0x5b   : > { %s857_s7 = sshll.u32 %s5259_s21, 4  ;;  %s883_s24 = sshll.u32 %s5261_s23, 4  ;;  %s858_s7 = int_to_ptr.hbm [resolvable:$true] %s857_s7  ;;  %s884_s24 = int_to_ptr.hbm [resolvable:$true] %s883_s24 }
  0x5c   : > { %3469 = dma.hbm_to_vmem [thread:$0]  (!%p4708_p6), %s832_s9, 512, %s834_s4, [#allocation28], %s5304_s26, %s5304_s26, %s4514_s29  }
  0x5d   : > { %s4531_s13 = smov [#allocation32]   ;;  %s4532_s8 = smov [#allocation35]  }
  0x5e   : > { %s859_s5 = sshll.u32 %s4531_s13, 4  ;;  %s885_s9 = sshll.u32 %s4532_s8, 4  ;;  %s860_s5 = int_to_ptr.vmem [resolvable:$true] %s859_s5  ;;  %s886_s9 = int_to_ptr.vmem [resolvable:$true] %s885_s9 }
  0x5f   : > { %3475 = dma.hbm_to_vmem [thread:$0]  (!%p4708_p6), %s858_s7, 512, %s860_s5, [#allocation31], %s5304_s26, %s5304_s26, %s4514_s29  }
  0x60   : > { %s5308_s18 = sld [smem:[#allocation70_spill]]  ;;  %s4533_s7 = smov [#allocation36]  }
  0x61   : > { %s5309_s4 = sld [smem:[#allocation52_spill]]  ;;  %s900_s1 = sshll.u32 %s4533_s7, 4  ;;  %s901_s1 = int_to_ptr.vmem [resolvable:$true] %s900_s1 }
  0x62   : > { %s5310_s16 = sld [smem:[#allocation53_spill]]  ;;  %s3227_s27 = sadd.s32 4294967294, %s4509_s30  }
  0x63   : > { %3481 = dma.hbm_to_vmem [thread:$0]  (!%p4708_p6), %s884_s24, 512, %s886_s9, [#allocation34], %s5304_s26, %s5304_s26, %s4514_s29  }
  0x64   : > { %s4849_s13 = sadd.s32 1, %s4509_s30   ;;  %s59_s5 = sadd.s32 1, %s4505_s6 }
  0x65   : > { %s56_s8 = ssub.s32 %s4509_s30, %s4849_s13  ;;  %p66_p7 = scmp.ne.s32.totalorder %s4505_s6, %s4501_s2 }
  0x66   : > { %s898_s0 = sshll.u32 %s5308_s18, 4  ;;  %p57_p8 = scmp.eq.s32.totalorder %s56_s8, 0  ;;  %s899_s0 = int_to_ptr.hbm [resolvable:$true] %s898_s0 }
  0x67   : > { %3484 = dma.hbm_to_vmem [thread:$0]  (!%p4708_p6), %s899_s0, 16, %s901_s1, [#allocation37]  }
  0x68   : > { %p67_p9 = scmp.eq.s32.totalorder %s4509_s30, 0  ;;  %p72_p10 = scmp.ne.s32.totalorder %s4501_s2, %s5309_s4 }
  0x69   : > { %p600_p11 = scmp.eq.s32.totalorder %s5310_s16, 1  ;;  %p606_p0 = scmp.eq.s32.totalorder %s3227_s27, 1 }
  0x6a   : > { %s4861_s29 = scalar_select %p57_p8, %s4505_s6, %s59_s5  }
  0x6b   : > { %p4865_p12 = por %p73_p1, %p72_p10  ;;  %p4869_p13 = por %p600_p11, %p66_p7 }
  0x6c   : > { %p68_p2 = por %p67_p9, %p66_p7  ;;  %s911_s24 = sand.u32 1, %s4505_s6  }
  0x6d   : > { %p4874_p4 = por %p606_p0, %p72_p10  ;;  %p3514_p6 = scmp.lt.s32.totalorder %s4509_s30, 2 }
  0x6e   : > { %s3251_s25 = sshll.u32 %s911_s24, 3  ;;  %s3252_s28 = sshll.u32 %s4509_s30, 3 }
  0x6f   : > { %s5314_s0 = sld [smem:[#allocation55_spill]]  ;;  %s915_s1 = scalar_lea.vmem [#allocation3], %s3251_s25 }
  0x70   : > { %s923_s5 = sshll.u32 %s915_s1, 4  ;;  %p4883_p8 = pnand %p3514_p6, %p68_p2  ;;  %s924_s5 = int_to_ptr.vmem [resolvable:$true] %s923_s5 }
  0x71   : > { %s912_s8 = scalar_lea.sflag [#allocation4], %s911_s24 }
  0x72   : > { %p4373_p9 = pneg %p4883_p8 }
  0x75   : > { %s919_s16 = scalar_lea.hbm %s5314_s0, %s3252_s28  ;;  %s4376_s25 = scalar_lea.hbm %s5314_s0, 16 }
  0x76   : > { %s921_s7 = sshll.u32 %s919_s16, 4  ;;  %s922_s7 = int_to_ptr.hbm [resolvable:$true] %s921_s7 }
  0x77   : > { %s4369_s10 = sshra.s32 %s922_s7, 4  ;;  %s4370_s10 = int_to_ptr.hbm [resolvable:$true] %s4369_s10 }
  0x78   : > { %s4371_s11 = scalar_lea.hbm %s4370_s10, 8  ;;  %p4377_p0 = scmp.lt.s32.totalorder %s4370_s10, %s5314_s0 }
  0x79   : > { %p4372_p7 = scmp.ne.s32.totalorder %s4370_s10, %s4371_s11  ;;  %p4378_p2 = scmp.lt.s32.totalorder %s4376_s25, %s4371_s11 }
  0x7b   : > { %p4374_p10 = pnand %p4373_p9, %p4372_p7  ;;  %p4379_p6 = por %p4378_p2, %p4377_p0 }
  0x7d   : > { %p4375_p11 = pneg %p4374_p10 }
  0x7f   : > { %p4380_p5 = pnand %p4379_p6, %p4375_p11 }
  0x81   : > { %4383 = shalt.err (!%p4380_p5)
}
  0x82   : > { %3488 = dma.hbm_to_vmem [thread:$0]  (!%p4883_p8), %s922_s7, 128, %s924_s5, %s912_s8  }
  0x83   : > { %932 = sbr.rel (%p4696_p3) target bundleno = 10155 (0x27ab), region = 120  ;;  %s4900_s1 = sand.u32 (!%p4696_p3), 1, %s4501_s2  }
  0x84   : > { %s3254_s28 = sshll.u32 (!%p4696_p3), %s4900_s1, 3  ;;  %s935_s18 = scalar_lea.sflag (!%p4696_p3), [#allocation4], %s4900_s1 }
  0x85   : > { %s4906_s10 = scalar_lea.vmem (!%p4696_p3), [#allocation3], %s3254_s28 }
  0x88   : > { %4444 = dma.done.wait (%p4865_p12), %s935_s18, 128  }
  0x89   : > { %4446 = vsyncadd (%p4865_p12), %s935_s18, 4294967168  ;;  %s5317_s11 = sld [smem:[#allocation53_spill]] }
  0x8a   : > { %4448 = dma.done.wait (%p73_p1), [#allocation7], 768  }
  0x8b   : > { %4450 = vsyncadd (%p73_p1), [#allocation7], 4294966528 }
  0x8c   : > { %4452 = dma.done.wait (%p73_p1), [#allocation10], 528  }
  0x8d   : > { %4454 = vsyncadd (%p73_p1), [#allocation10], 4294966768 }
  0x8e   : > { %4456 = dma.done.wait (%p73_p1), [#allocation13], 528  }
  0x8f   : > { %4458 = vsyncadd (%p73_p1), [#allocation13], 4294966768 }
  0x90   : > { %4460 = dma.done.wait (%p73_p1), [#allocation16], 272  }
  0x91   : > { %4462 = vsyncadd (%p73_p1), [#allocation16], 4294967024 }
  0x92   : > { %4464 = dma.done.wait (%p73_p1), [#allocation19], 784  }
  0x93   : > { %4466 = vsyncadd (%p73_p1), [#allocation19], 4294966512 }
  0x94   : > { %4468 = dma.done.wait (%p73_p1), [#allocation22], 1552  }
  0x95   : > { %4470 = vsyncadd (%p73_p1), [#allocation22], 4294965744 }
  0x96   : > { %4472 = dma.done.wait (%p73_p1), [#allocation25], 1552  }
  0x97   : > { %4474 = vsyncadd (%p73_p1), [#allocation25], 4294965744 }
  0x98   : > { %4476 = dma.done.wait (%p73_p1), [#allocation28], 2048  }
  0x99   : > { %4478 = vsyncadd (%p73_p1), [#allocation28], 4294965248 }
  0x9a   : > { %4480 = dma.done.wait (%p73_p1), [#allocation31], 528  }
  0x9b   : > { %4482 = vsyncadd (%p73_p1), [#allocation31], 4294966768 }
  0x9c   : > { %4484 = dma.done.wait (%p73_p1), [#allocation34], 528  }
  0x9d   : > { %4486 = vsyncadd (%p73_p1), [#allocation34], 4294966768 }
  0x9e   : > { %4488 = dma.done.wait (%p73_p1), [#allocation37], 16  }
  0x9f   : > { %4490 = vsyncadd (%p73_p1), [#allocation37], 4294967280  ;;  %v1145_v0 = vld [vmem:[#allocation8 + $0x18] sm:$0xff]  ;;  %v1144_v2 = vld [vmem:[#allocation8 + $0x10] sm:$0xff]  ;;  %vm1118_vm0 = vcmask 130048   ;;  %v4534_v7 = vmov 0.0  }
  0xa0   : > { %v1113_v1 = vld [vmem:[#allocation6 + $0x8] sm:$0xff]  ;;  %1162 = vmatpush.msra.mxu1 %v1145_v0  ;;  %v1112_v3 = vld [vmem:[#allocation6] sm:$0xff]  ;;  %v1111_v4 = vld [vmem:[%s4906_s10] sm:$0xff]  ;;  %1228 = vmatpush.msra.mxu2 %v1145_v0  ;;  %s4535_s3 = smov 64   ;;  %s4536_s7 = smov 32   ;;  %vm1212_vm5 = vcmask 253952  }
  0xa1   : > { %1136 = vmatpush.msra.mxu0 %v1113_v1  ;;  %v1143_v5 = vld [vmem:[#allocation8 + $0x8] sm:$0xff]  ;;  %v1142_v6 = vld [vmem:[#allocation8] sm:$0xff]  ;;  %1303 = vmatpush.msra.mxu3 %v1145_v0  ;;  %vm1146_vm6 = vcmask 261120   ;;  %s5318_s8 = sld [smem:[#allocation67_spill]]  ;;  %s3330_s5 = sshll.u32 %s5317_s11, 3 }
  0xa2   : > { %1163 = vmatpush.msra.mxu1 %v1144_v2  ;;  %1229 = vmatpush.msra.mxu2 %v1144_v2  ;;  %v3595_v8 = vld [vmem:[#allocation9] ss:$0 sm:$0xff]  ;;  %s5319_s18 = sld [smem:[#allocation68_spill]]  ;;  %s1110_s24 = scalar_lea.vmem [#allocation38], %s3254_s28 }
  0xa3   : > { %1137 = vmatpush.msra.mxu0 %v1112_v3  ;;  %1304 = vmatpush.msra.mxu3 %v1144_v2  ;;  %s5321_s4 = sld [smem:[#allocation71_spill]] }
  0xa4   : > { %3277 = vmatmul.msk.f32.vlgmr.msra.gmra.mxu0 %vm1118_vm0, %v1111_v4  ;;  %1164 = vmatpush.msra.mxu1 %v1143_v5 }
  0xa5   : > { %1230 = vmatpush.msra.mxu2 %v1143_v5  ;;  %1378 = vmatpush.msrb.mxu0 %v1145_v0 }
  0xa6   : > { %1165 = vmatpush.msra.mxu1 %v1142_v6  ;;  %1305 = vmatpush.msra.mxu3 %v1143_v5 }
  0xa7   : > { %1166 = vmatmul.f32.vlgmr.msra.gmra.mxu1 %v4534_v7  ;;  %1231 = vmatpush.msra.mxu2 %v1142_v6 }
  0xa8   : > { %1306 = vmatpush.msra.mxu3 %v1142_v6  ;;  %1379 = vmatpush.msrb.mxu0 %v1144_v2 }
  0xa9   : > { %1453 = vmatpush.msrb.mxu1 %v1145_v0  ;;  %1528 = vmatpush.msrb.mxu2 %v1145_v0  ;;  %s2952_s16 = scalar_lea.hbm %s5321_s4, %s3330_s5  ;;  %s4419_s28 = scalar_lea.hbm %s5321_s4, 16 }
  0xaa   : > { %1380 = vmatpush.msrb.mxu0 %v1143_v5  ;;  %1603 = vmatpush.msrb.mxu3 %v1145_v0 }
  0xab   : > { %1454 = vmatpush.msrb.mxu1 %v1144_v2  ;;  %1529 = vmatpush.msrb.mxu2 %v1144_v2 }
  0xac   : > { %1381 = vmatpush.msrb.mxu0 %v1142_v6  ;;  %1604 = vmatpush.msrb.mxu3 %v1144_v2 }
  0xad   : > { %1455 = vmatpush.msrb.mxu1 %v1143_v5  ;;  %1530 = vmatpush.msrb.mxu2 %v1143_v5 }
  0xae   : > { %1605 = vmatpush.msrb.mxu3 %v1143_v5  ;;  %1678 = vmatpush.msra.mxu0 %v1145_v0 }
  0xaf   : > { %1456 = vmatpush.msrb.mxu1 %v1142_v6  ;;  %1531 = vmatpush.msrb.mxu2 %v1142_v6 }
  0xb0   : > { %1606 = vmatpush.msrb.mxu3 %v1142_v6  ;;  %1679 = vmatpush.msra.mxu0 %v1144_v2 }
  0xb2   : > { %1680 = vmatpush.msra.mxu0 %v1143_v5 }
  0xb4   : > { %1681 = vmatpush.msra.mxu0 %v1142_v6 }
 0x121   : > { %v1139_v9 = vpop.f32.mrf.mxu0 }
 0x122   : > { %v4959_v10 = vadd.f32 %v3595_v8, %v1139_v9 }
 0x124   : > { %v1167_v11 = vpop.f32.mrf.mxu1 }
 0x125   : > { %v1170_v12 = vadd.f32 %v1167_v11, %v4959_v10 }
 0x127   : > { %3606 = vtanh.f32 %v1170_v12  ;;  %v3278_v14 = vmul.f32 -1.442695, %v1170_v12 }
 0x129   : > { %3608 = vpow2.f32 %v3278_v14 }
 0x12d   : > { %v3607_v13 = vpop.eup %3606 }
 0x12e   : > { %1193 = vrot.lane.b32.xlu0 %v3607_v13, %s4535_s3 }
 0x12f   : > { %v3609_v15 = vpop.eup %3608 }
 0x130   : > { %v1174_v16 = vadd.f32 1.0, %v3609_v15 }
 0x132   : > { %3610 = vrcp.f32 %v1174_v16  ;;  %v1186_v22 = vand.u32 2147483648, %v1174_v16  ;;  %vm1180_vm2 = vweird.f32 %v1174_v16  ;;  %v1184_v23 = vand.u32 2147483647, %v1174_v16 }
 0x134   : > { %v1187_v25 = vor.u32 1.1754944e-38, %v1186_v22  ;;  %vm1185_vm4 = vcmp.eq.f32.partialorder %v1184_v23, 8.507059e+37 }
 0x138   : > { %v3611_v17 = vpop.eup %3610 }
 0x139   : > { %v1176_v18 = vmul.f32 %v3611_v17, %v1174_v16  ;;  %vm1181_vm1 = vweird.f32 %v3611_v17 }
 0x13a   : > { %vm1182_vm3 = vmor %vm1180_vm2, %vm1181_vm1 }
 0x13b   : > { %v1177_v19 = vsub.f32 1.0, %v1176_v18 }
 0x13d   : > { %v1178_v20 = vmul.f32 %v3611_v17, %v1177_v19 }
 0x13f   : > { %v1179_v21 = vadd.f32 %v3611_v17, %v1178_v20 }
 0x141   : > { %v1183_v24 = vsel %vm1182_vm3, %v3611_v17, %v1179_v21 }
 0x142   : > { %v1188_v27 = vsel %vm1185_vm4, %v1187_v25, %v1183_v24 }
 0x143   : > { %v1191_v29 = vmul.f32 0.0, %v1188_v27 }
 0x1a0   : > { %v1194_v26 = vpop.permute.xlu0 %1193 }
 0x1a1   : > { %v1196_v28 = vmul.f32 %v1194_v26, %v1188_v27 }
 0x1a3   : > { %1198 = vrot.lane.b32.xlu0 %v1196_v28, %s4536_s7 }
 0x215   : > { %v1199_v30 = vpop.permute.xlu0 %1198 }
 0x216   : > { %v1201_v31 = vadd.f32 %v1199_v30, %v1191_v29 }
 0x218   : > { %3612 = vtanh.f32 %v1201_v31  ;;  %v1261_v55 = vrot.slane %v1201_v31, 7 }
 0x21e   : > { %v3613_v32 = vpop.eup %3612 }
 0x21f   : > { %1204 = vrot.lane.b32.xlu1 %v3613_v32, %s4535_s3 }
 0x291   : > { %v1205_v33 = vpop.permute.xlu1 %1204 }
 0x292   : > { %v1207_v34 = vmul.f32 %v1205_v33, %v1188_v27 }
 0x294   : > { %1209 = vrot.lane.b32.xlu1 %v1207_v34, %s4536_s7 }
 0x306   : > { %v1210_v35 = vpop.permute.xlu1 %1209 }
 0x307   : > { %1213 = vst.msk [vmem:[#allocation2] sm:$0x1] %vm1212_vm5, %v1210_v35  ;;  %3279 = vmatmul.msk.f32.vlgmr.msra.gmra.mxu2 %vm1146_vm6, %v1210_v35 }
 0x38a   : > { %v1233_v36 = vpop.f32.mrf.mxu2 }
 0x38b   : > { %v1237_v37 = vrot.slane %v1233_v36, 7 }
 0x38d   : > { %v1239_v38 = vadd.f32 %v1237_v37, %v4959_v10 }
 0x38f   : > { %3614 = vtanh.f32 %v1239_v38  ;;  %v3280_v40 = vmul.f32 -1.442695, %v1239_v38 }
 0x391   : > { %3616 = vpow2.f32 %v3280_v40 }
 0x395   : > { %v3615_v39 = vpop.eup %3614 }
 0x396   : > { %1265 = vrot.lane.b32.xlu2 %v3615_v39, %s4535_s3 }
 0x397   : > { %v3617_v41 = vpop.eup %3616 }
 0x398   : > { %v1243_v42 = vadd.f32 1.0, %v3617_v41 }
 0x39a   : > { %3618 = vrcp.f32 %v1243_v42  ;;  %v1255_v48 = vand.u32 2147483648, %v1243_v42  ;;  %vm1249_vm8 = vweird.f32 %v1243_v42  ;;  %v1253_v49 = vand.u32 2147483647, %v1243_v42 }
 0x39c   : > { %v1256_v51 = vor.u32 1.1754944e-38, %v1255_v48  ;;  %vm1254_vm10 = vcmp.eq.f32.partialorder %v1253_v49, 8.507059e+37 }
 0x3a0   : > { %v3619_v43 = vpop.eup %3618 }
 0x3a1   : > { %v1245_v44 = vmul.f32 %v3619_v43, %v1243_v42  ;;  %vm1250_vm7 = vweird.f32 %v3619_v43 }
 0x3a2   : > { %vm1251_vm9 = vmor %vm1249_vm8, %vm1250_vm7 }
 0x3a3   : > { %v1246_v45 = vsub.f32 1.0, %v1245_v44 }
 0x3a5   : > { %v1247_v46 = vmul.f32 %v3619_v43, %v1246_v45 }
 0x3a7   : > { %v1248_v47 = vadd.f32 %v3619_v43, %v1247_v46 }
 0x3a9   : > { %v1252_v50 = vsel %vm1251_vm9, %v3619_v43, %v1248_v47 }
 0x3aa   : > { %v1257_v53 = vsel %vm1254_vm10, %v1256_v51, %v1252_v50 }
 0x3ab   : > { %v1263_v56 = vmul.f32 %v1261_v55, %v1257_v53 }
 0x3f0   : > { %v1266_v52 = vpop.permute.xlu2 %1265 }
 0x3f1   : > { %v1268_v54 = vmul.f32 %v1266_v52, %v1257_v53 }
 0x3f3   : > { %1270 = vrot.lane.b32.xlu2 %v1268_v54, %s4536_s7 }
 0x44d   : > { %v1271_v57 = vpop.permute.xlu2 %1270 }
 0x44e   : > { %v1273_v58 = vadd.f32 %v1271_v57, %v1263_v56 }
 0x450   : > { %3620 = vtanh.f32 %v1273_v58  ;;  %v1336_v21 = vrot.slane %v1273_v58, 7 }
 0x456   : > { %v3621_v59 = vpop.eup %3620 }
 0x457   : > { %1276 = vrot.lane.b32.xlu0 %v3621_v59, %s4535_s3 }
 0x4c9   : > { %v1277_v60 = vpop.permute.xlu0 %1276 }
 0x4ca   : > { %v4972_v61 = vmul.f32 %v1277_v60, %v1257_v53 }
 0x4cc   : > { %v1286_v62 = vrot.slane %v4972_v61, 1 }
 0x4ce   : > { %1287 = vrot.lane.b32.xlu1 %v1286_v62, %s4536_s7 }
 0x540   : > { %v1288_v63 = vpop.permute.xlu1 %1287 }
 0x541   : > { %3281 = vmatmul.msk.f32.vlgmr.msra.gmra.mxu3 %vm1146_vm6, %v1288_v63 }
 0x5c4   : > { %v1308_v0 = vpop.f32.mrf.mxu3 }
 0x5c5   : > { %v1312_v1 = vrot.slane %v1308_v0, 6 }
 0x5c7   : > { %v1314_v2 = vadd.f32 %v1312_v1, %v4959_v10 }
 0x5c9   : > { %3622 = vtanh.f32 %v1314_v2  ;;  %v3282_v4 = vmul.f32 -1.442695, %v1314_v2 }
 0x5cb   : > { %3624 = vpow2.f32 %v3282_v4 }
 0x5cf   : > { %v3623_v3 = vpop.eup %3622 }
 0x5d0   : > { %1340 = vrot.lane.b32.xlu2 %v3623_v3, %s4535_s3 }
 0x5d1   : > { %v3625_v5 = vpop.eup %3624 }
 0x5d2   : > { %v1318_v6 = vadd.f32 1.0, %v3625_v5 }
 0x5d4   : > { %3626 = vrcp.f32 %v1318_v6  ;;  %v1330_v14 = vand.u32 2147483648, %v1318_v6  ;;  %vm1324_vm12 = vweird.f32 %v1318_v6  ;;  %v1328_v15 = vand.u32 2147483647, %v1318_v6 }
 0x5d6   : > { %v1331_v17 = vor.u32 1.1754944e-38, %v1330_v14  ;;  %vm1329_vm14 = vcmp.eq.f32.partialorder %v1328_v15, 8.507059e+37 }
 0x5da   : > { %v3627_v8 = vpop.eup %3626 }
 0x5db   : > { %v1320_v9 = vmul.f32 %v3627_v8, %v1318_v6  ;;  %vm1325_vm11 = vweird.f32 %v3627_v8 }
 0x5dc   : > { %vm1326_vm13 = vmor %vm1324_vm12, %vm1325_vm11 }
 0x5dd   : > { %v1321_v11 = vsub.f32 1.0, %v1320_v9 }
 0x5df   : > { %v1322_v12 = vmul.f32 %v3627_v8, %v1321_v11 }
 0x5e1   : > { %v1323_v13 = vadd.f32 %v3627_v8, %v1322_v12 }
 0x5e3   : > { %v1327_v16 = vsel %vm1326_vm13, %v3627_v8, %v1323_v13 }
 0x5e4   : > { %v1332_v19 = vsel %vm1329_vm14, %v1331_v17, %v1327_v16 }
 0x5e5   : > { %v1338_v22 = vmul.f32 %v1336_v21, %v1332_v19 }
 0x62a   : > { %v1341_v18 = vpop.permute.xlu2 %1340 }
 0x62b   : > { %v1343_v20 = vmul.f32 %v1341_v18, %v1332_v19 }
 0x62d   : > { %1345 = vrot.lane.b32.xlu0 %v1343_v20, %s4536_s7 }
 0x69f   : > { %v1346_v23 = vpop.permute.xlu0 %1345 }
 0x6a0   : > { %v1348_v24 = vadd.f32 %v1346_v23, %v1338_v22 }
 0x6a2   : > { %3628 = vtanh.f32 %v1348_v24  ;;  %v1411_v49 = vrot.slane %v1348_v24, 7 }
 0x6a8   : > { %v3629_v25 = vpop.eup %3628 }
 0x6a9   : > { %1351 = vrot.lane.b32.xlu1 %v3629_v25, %s4535_s3 }
 0x71b   : > { %v1352_v26 = vpop.permute.xlu1 %1351 }
 0x71c   : > { %v4981_v27 = vmul.f32 %v1352_v26, %v1332_v19 }
 0x71e   : > { %v1361_v28 = vrot.slane %v4981_v27, 2 }
 0x720   : > { %1362 = vrot.lane.b32.xlu2 %v1361_v28, %s4536_s7 }
 0x77a   : > { %v1363_v29 = vpop.permute.xlu2 %1362 }
 0x77b   : > { %3283 = vmatmul.msk.f32.vlgmr.msrb.gmra.mxu0 %vm1146_vm6, %v1363_v29 }
 0x7f8   : > { %v1383_v30 = vpop.f32.mrf.mxu0 }
 0x7f9   : > { %v1387_v31 = vrot.slane %v1383_v30, 5 }
 0x7fb   : > { %v1389_v32 = vadd.f32 %v1387_v31, %v4959_v10 }
 0x7fd   : > { %3630 = vtanh.f32 %v1389_v32  ;;  %v3284_v34 = vmul.f32 -1.442695, %v1389_v32 }
 0x7ff   : > { %3632 = vpow2.f32 %v3284_v34 }
 0x803   : > { %v3631_v33 = vpop.eup %3630 }
 0x804   : > { %1415 = vrot.lane.b32.xlu0 %v3631_v33, %s4535_s3 }
 0x805   : > { %v3633_v35 = vpop.eup %3632 }
 0x806   : > { %v1393_v36 = vadd.f32 1.0, %v3633_v35 }
 0x808   : > { %3634 = vrcp.f32 %v1393_v36  ;;  %v1405_v42 = vand.u32 2147483648, %v1393_v36  ;;  %vm1399_vm1 = vweird.f32 %v1393_v36  ;;  %v1403_v43 = vand.u32 2147483647, %v1393_v36 }
 0x80a   : > { %v1406_v45 = vor.u32 1.1754944e-38, %v1405_v42  ;;  %vm1404_vm3 = vcmp.eq.f32.partialorder %v1403_v43, 8.507059e+37 }
 0x80e   : > { %v3635_v37 = vpop.eup %3634 }
 0x80f   : > { %v1395_v38 = vmul.f32 %v3635_v37, %v1393_v36  ;;  %vm1400_vm15 = vweird.f32 %v3635_v37 }
 0x810   : > { %vm1401_vm2 = vmor %vm1399_vm1, %vm1400_vm15 }
 0x811   : > { %v1396_v39 = vsub.f32 1.0, %v1395_v38 }
 0x813   : > { %v1397_v40 = vmul.f32 %v3635_v37, %v1396_v39 }
 0x815   : > { %v1398_v41 = vadd.f32 %v3635_v37, %v1397_v40 }
 0x817   : > { %v1402_v44 = vsel %vm1401_vm2, %v3635_v37, %v1398_v41 }
 0x818   : > { %v1407_v47 = vsel %vm1404_vm3, %v1406_v45, %v1402_v44 }
 0x819   : > { %v1413_v50 = vmul.f32 %v1411_v49, %v1407_v47 }
 0x876   : > { %v1416_v46 = vpop.permute.xlu0 %1415 }
 0x877   : > { %v1418_v48 = vmul.f32 %v1416_v46, %v1407_v47 }
 0x879   : > { %1420 = vrot.lane.b32.xlu1 %v1418_v48, %s4536_s7 }
 0x8eb   : > { %v1421_v51 = vpop.permute.xlu1 %1420 }
 0x8ec   : > { %v1423_v52 = vadd.f32 %v1421_v51, %v1413_v50 }
 0x8ee   : > { %3636 = vtanh.f32 %v1423_v52  ;;  %v1486_v16 = vrot.slane %v1423_v52, 7 }
 0x8f4   : > { %v3637_v53 = vpop.eup %3636 }
 0x8f5   : > { %1426 = vrot.lane.b32.xlu2 %v3637_v53, %s4535_s3 }
 0x94f   : > { %v1427_v54 = vpop.permute.xlu2 %1426 }
 0x950   : > { %v4990_v55 = vmul.f32 %v1427_v54, %v1407_v47 }
 0x952   : > { %v1436_v56 = vrot.slane %v4990_v55, 3 }
 0x954   : > { %1437 = vrot.lane.b32.xlu0 %v1436_v56, %s4536_s7 }
 0x9c6   : > { %v1438_v57 = vpop.permute.xlu0 %1437 }
 0x9c7   : > { %3285 = vmatmul.msk.f32.vlgmr.msrb.gmra.mxu1 %vm1146_vm6, %v1438_v57 }
 0xa44   : > { %v1458_v58 = vpop.f32.mrf.mxu1 }
 0xa45   : > { %v1462_v59 = vrot.slane %v1458_v58, 4 }
 0xa47   : > { %v1464_v60 = vadd.f32 %v1462_v59, %v4959_v10 }
 0xa49   : > { %3638 = vtanh.f32 %v1464_v60  ;;  %v3286_v63 = vmul.f32 -1.442695, %v1464_v60 }
 0xa4b   : > { %3640 = vpow2.f32 %v3286_v63 }
 0xa4f   : > { %v3639_v62 = vpop.eup %3638 }
 0xa50   : > { %1490 = vrot.lane.b32.xlu1 %v3639_v62, %s4535_s3 }
 0xa51   : > { %v3641_v0 = vpop.eup %3640 }
 0xa52   : > { %v1468_v1 = vadd.f32 1.0, %v3641_v0 }
 0xa54   : > { %3642 = vrcp.f32 %v1468_v1  ;;  %v1480_v8 = vand.u32 2147483648, %v1468_v1  ;;  %vm1474_vm7 = vweird.f32 %v1468_v1  ;;  %v1478_v9 = vand.u32 2147483647, %v1468_v1 }
 0xa56   : > { %v1481_v12 = vor.u32 1.1754944e-38, %v1480_v8  ;;  %vm1479_vm9 = vcmp.eq.f32.partialorder %v1478_v9, 8.507059e+37 }
 0xa5a   : > { %v3643_v2 = vpop.eup %3642 }
 0xa5b   : > { %v1470_v3 = vmul.f32 %v3643_v2, %v1468_v1  ;;  %vm1475_vm4 = vweird.f32 %v3643_v2 }
 0xa5c   : > { %vm1476_vm8 = vmor %vm1474_vm7, %vm1475_vm4 }
 0xa5d   : > { %v1471_v4 = vsub.f32 1.0, %v1470_v3 }
 0xa5f   : > { %v1472_v5 = vmul.f32 %v3643_v2, %v1471_v4 }
 0xa61   : > { %v1473_v6 = vadd.f32 %v3643_v2, %v1472_v5 }
 0xa63   : > { %v1477_v11 = vsel %vm1476_vm8, %v3643_v2, %v1473_v6 }
 0xa64   : > { %v1482_v14 = vsel %vm1479_vm9, %v1481_v12, %v1477_v11  ;;  %vm1284_vm9 = vcmask 254977  }
 0xa65   : > { %v1488_v17 = vmul.f32 %v1486_v16, %v1482_v14 }
 0xac2   : > { %v1491_v13 = vpop.permute.xlu1 %1490 }
 0xac3   : > { %v1493_v15 = vmul.f32 %v1491_v13, %v1482_v14 }
 0xac5   : > { %1495 = vrot.lane.b32.xlu2 %v1493_v15, %s4536_s7 }
 0xb1f   : > { %v1496_v18 = vpop.permute.xlu2 %1495 }
 0xb20   : > { %v1498_v19 = vadd.f32 %v1496_v18, %v1488_v17 }
 0xb22   : > { %3644 = vtanh.f32 %v1498_v19  ;;  %v1561_v45 = vrot.slane %v1498_v19, 7 }
 0xb28   : > { %v3645_v20 = vpop.eup %3644 }
 0xb29   : > { %1501 = vrot.lane.b32.xlu0 %v3645_v20, %s4535_s3 }
 0xb9b   : > { %v1502_v21 = vpop.permute.xlu0 %1501 }
 0xb9c   : > { %v4999_v22 = vmul.f32 %v1502_v21, %v1482_v14 }
 0xb9e   : > { %v1511_v23 = vrot.slane %v4999_v22, 4 }
 0xba0   : > { %1512 = vrot.lane.b32.xlu1 %v1511_v23, %s4536_s7 }
 0xc12   : > { %v1513_v24 = vpop.permute.xlu1 %1512 }
 0xc13   : > { %3287 = vmatmul.msk.f32.vlgmr.msrb.gmra.mxu2 %vm1146_vm6, %v1513_v24 }
 0xc96   : > { %v1533_v25 = vpop.f32.mrf.mxu2 }
 0xc97   : > { %v1537_v26 = vrot.slane %v1533_v25, 3 }
 0xc99   : > { %v1539_v28 = vadd.f32 %v1537_v26, %v4959_v10 }
 0xc9b   : > { %3646 = vtanh.f32 %v1539_v28  ;;  %v3288_v30 = vmul.f32 -1.442695, %v1539_v28 }
 0xc9d   : > { %3648 = vpow2.f32 %v3288_v30 }
 0xca1   : > { %v3647_v29 = vpop.eup %3646 }
 0xca2   : > { %1565 = vrot.lane.b32.xlu2 %v3647_v29, %s4535_s3 }
 0xca3   : > { %v3649_v31 = vpop.eup %3648 }
 0xca4   : > { %v1543_v32 = vadd.f32 1.0, %v3649_v31 }
 0xca6   : > { %3650 = vrcp.f32 %v1543_v32  ;;  %v1555_v38 = vand.u32 2147483648, %v1543_v32  ;;  %vm1549_vm11 = vweird.f32 %v1543_v32  ;;  %v1553_v39 = vand.u32 2147483647, %v1543_v32 }
 0xca8   : > { %v1556_v41 = vor.u32 1.1754944e-38, %v1555_v38  ;;  %vm1554_vm13 = vcmp.eq.f32.partialorder %v1553_v39, 8.507059e+37 }
 0xcac   : > { %v3651_v33 = vpop.eup %3650 }
 0xcad   : > { %v1545_v34 = vmul.f32 %v3651_v33, %v1543_v32  ;;  %vm1550_vm10 = vweird.f32 %v3651_v33 }
 0xcae   : > { %vm1551_vm12 = vmor %vm1549_vm11, %vm1550_vm10  ;;  %vm1509_vm10 = vcmask 258052   ;;  %vm1359_vm11 = vcmask 256002  }
 0xcaf   : > { %v1546_v35 = vsub.f32 1.0, %v1545_v34 }
 0xcb1   : > { %v1547_v36 = vmul.f32 %v3651_v33, %v1546_v35 }
 0xcb3   : > { %v1548_v37 = vadd.f32 %v3651_v33, %v1547_v36 }
 0xcb5   : > { %v1552_v40 = vsel %vm1551_vm12, %v3651_v33, %v1548_v37  ;;  %vm1584_vm12 = vcmask 259077  }
 0xcb6   : > { %v1557_v43 = vsel %vm1554_vm13, %v1556_v41, %v1552_v40  ;;  %vm1434_vm13 = vcmask 257027  }
 0xcb7   : > { %v1563_v46 = vmul.f32 %v1561_v45, %v1557_v43 }
 0xcfc   : > { %v1566_v42 = vpop.permute.xlu2 %1565 }
 0xcfd   : > { %v1568_v44 = vmul.f32 %v1566_v42, %v1557_v43 }
 0xcff   : > { %1570 = vrot.lane.b32.xlu0 %v1568_v44, %s4536_s7 }
 0xd71   : > { %v1571_v47 = vpop.permute.xlu0 %1570 }
 0xd72   : > { %v1573_v48 = vadd.f32 %v1571_v47, %v1563_v46 }
 0xd74   : > { %3652 = vtanh.f32 %v1573_v48  ;;  %v1636_v13 = vrot.slane %v1573_v48, 7  ;;  %v1771_v48 = vld [vmem:[#allocation12 + $0x18] sm:$0xff] }
 0xd75   : > { %1784 = vmatpush.msra.mxu2 %v1771_v48  ;;  %1849 = vmatpush.msra.mxu3 %v1771_v48 }
 0xd76   : > { %1923 = vmatpush.msrb.mxu0 %v1771_v48 }
 0xd7a   : > { %v3653_v49 = vpop.eup %3652 }
 0xd7b   : > { %1576 = vrot.lane.b32.xlu1 %v3653_v49, %s4535_s3  ;;  %v1770_v49 = vld [vmem:[#allocation12 + $0x10] sm:$0xff] }
 0xd7c   : > { %1785 = vmatpush.msra.mxu2 %v1770_v49  ;;  %1850 = vmatpush.msra.mxu3 %v1770_v49 }
 0xd7d   : > { %1924 = vmatpush.msrb.mxu0 %v1770_v49 }
 0xded   : > { %v1577_v50 = vpop.permute.xlu1 %1576 }
 0xdee   : > { %v5008_v51 = vmul.f32 %v1577_v50, %v1557_v43 }
 0xdf0   : > { %v1586_v52 = vrot.slane %v5008_v51, 5 }
 0xdf2   : > { %1587 = vrot.lane.b32.xlu2 %v1586_v52, %s4536_s7 }
 0xe4c   : > { %v1588_v53 = vpop.permute.xlu2 %1587 }
 0xe4d   : > { %3289 = vmatmul.msk.f32.vlgmr.msrb.gmra.mxu3 %vm1146_vm6, %v1588_v53  ;;  %v1740_v53 = vld [vmem:[#allocation11 + $0x18] sm:$0xff] }
 0xe4e   : > { %1760 = vmatpush.msra.mxu1 %v1740_v53 }
 0xed0   : > { %v1608_v54 = vpop.f32.mrf.mxu3 }
 0xed1   : > { %v1612_v56 = vrot.slane %v1608_v54, 2  ;;  %v1769_v54 = vld [vmem:[#allocation12 + $0x8] sm:$0xff] }
 0xed2   : > { %1786 = vmatpush.msra.mxu2 %v1769_v54  ;;  %1851 = vmatpush.msra.mxu3 %v1769_v54 }
 0xed3   : > { %v1614_v57 = vadd.f32 %v1612_v56, %v4959_v10  ;;  %v1739_v56 = vld [vmem:[#allocation11 + $0x10] sm:$0xff]  ;;  %1925 = vmatpush.msrb.mxu0 %v1769_v54 }
 0xed4   : > { %1761 = vmatpush.msra.mxu1 %v1739_v56 }
 0xed5   : > { %3654 = vtanh.f32 %v1614_v57  ;;  %v3290_v59 = vmul.f32 -1.442695, %v1614_v57  ;;  %v1768_v57 = vld [vmem:[#allocation12] sm:$0xff] }
 0xed6   : > { %1787 = vmatpush.msra.mxu2 %v1768_v57  ;;  %1852 = vmatpush.msra.mxu3 %v1768_v57 }
 0xed7   : > { %3656 = vpow2.f32 %v3290_v59  ;;  %1788 = vmatmul.f32.vlgmr.msra.gmra.mxu2 %v4534_v7  ;;  %v1737_v59 = vld [vmem:[#allocation11] sm:$0xff]  ;;  %1926 = vmatpush.msrb.mxu0 %v1768_v57 }
 0xed8   : > { %2071 = vmatpush.msrb.mxu2 %v1771_v48  ;;  %2145 = vmatpush.msrb.mxu3 %v1771_v48 }
 0xeda   : > { %2072 = vmatpush.msrb.mxu2 %v1770_v49  ;;  %2146 = vmatpush.msrb.mxu3 %v1770_v49 }
 0xedb   : > { %v3655_v58 = vpop.eup %3654 }
 0xedc   : > { %1640 = vrot.lane.b32.xlu0 %v3655_v58, %s4535_s3  ;;  %v1738_v58 = vld [vmem:[#allocation11 + $0x8] sm:$0xff]  ;;  %2073 = vmatpush.msrb.mxu2 %v1769_v54 }
 0xedd   : > { %v3657_v60 = vpop.eup %3656  ;;  %1762 = vmatpush.msra.mxu1 %v1738_v58  ;;  %2147 = vmatpush.msrb.mxu3 %v1769_v54 }
 0xede   : > { %v1618_v62 = vadd.f32 1.0, %v3657_v60  ;;  %2074 = vmatpush.msrb.mxu2 %v1768_v57 }
 0xedf   : > { %1763 = vmatpush.msra.mxu1 %v1737_v59  ;;  %2148 = vmatpush.msrb.mxu3 %v1768_v57 }
 0xee0   : > { %3658 = vrcp.f32 %v1618_v62  ;;  %v1630_v4 = vand.u32 2147483648, %v1618_v62  ;;  %vm1624_vm15 = vweird.f32 %v1618_v62  ;;  %v1628_v5 = vand.u32 2147483647, %v1618_v62 }
 0xee1   : > { %1997 = vmatpush.msrb.mxu1 %v1771_v48 }
 0xee2   : > { %v1631_v8 = vor.u32 1.1754944e-38, %v1630_v4  ;;  %vm1629_vm2 = vcmp.eq.f32.partialorder %v1628_v5, 8.507059e+37 }
 0xee3   : > { %1998 = vmatpush.msrb.mxu1 %v1770_v49 }
 0xee5   : > { %1999 = vmatpush.msrb.mxu1 %v1769_v54 }
 0xee6   : > { %v3659_v63 = vpop.eup %3658 }
 0xee7   : > { %v1620_v0 = vmul.f32 %v3659_v63, %v1618_v62  ;;  %vm1625_vm14 = vweird.f32 %v3659_v63  ;;  %2000 = vmatpush.msrb.mxu1 %v1768_v57  ;;  %v3596_v62 = vld [vmem:[#allocation14] ss:$0 sm:$0xff] }
 0xee8   : > { %vm1626_vm1 = vmor %vm1624_vm15, %vm1625_vm14  ;;  %vm1659_vm14 = vcmask 260102   ;;  %vm1734_vm15 = vcmask 261127  }
 0xee9   : > { %v1621_v1 = vsub.f32 1.0, %v1620_v0 }
 0xeeb   : > { %v1622_v2 = vmul.f32 %v3659_v63, %v1621_v1 }
 0xeed   : > { %v1623_v3 = vadd.f32 %v3659_v63, %v1622_v2 }
 0xeef   : > { %v1627_v6 = vsel %vm1626_vm1, %v3659_v63, %v1623_v3 }
 0xef0   : > { %v1632_v11 = vsel %vm1629_vm2, %v1631_v8, %v1627_v6 }
 0xef1   : > { %v1638_v14 = vmul.f32 %v1636_v13, %v1632_v11 }
 0xf4e   : > { %v1641_v9 = vpop.permute.xlu0 %1640 }
 0xf4f   : > { %v1643_v12 = vmul.f32 %v1641_v9, %v1632_v11 }
 0xf51   : > { %1645 = vrot.lane.b32.xlu1 %v1643_v12, %s4536_s7 }
 0xf5a   : > { %v1789_v0 = vpop.f32.mrf.mxu2 }
 0xfc3   : > { %v1646_v15 = vpop.permute.xlu1 %1645 }
 0xfc4   : > { %v1648_v16 = vadd.f32 %v1646_v15, %v1638_v14 }
 0xfc6   : > { %3660 = vtanh.f32 %v1648_v16  ;;  %v1711_v42 = vrot.slane %v1648_v16, 7 }
 0xfcc   : > { %v3661_v17 = vpop.eup %3660 }
 0xfcd   : > { %1651 = vrot.lane.b32.xlu2 %v3661_v17, %s4535_s3 }
0x1027   : > { %v1652_v18 = vpop.permute.xlu2 %1651 }
0x1028   : > { %v1654_v19 = vmul.f32 %v1652_v18, %v1632_v11 }
0x102a   : > { %v1661_v20 = vrot.slane %v1654_v19, 6 }
0x102c   : > { %1662 = vrot.lane.b32.xlu0 %v1661_v20, %s4536_s7 }
0x109e   : > { %v1663_v21 = vpop.permute.xlu0 %1662 }
0x109f   : > { %3291 = vmatmul.msk.f32.vlgmr.msra.gmra.mxu0 %vm1146_vm6, %v1663_v21 }
0x10a0   : > { %2219 = vmatpush.msra.mxu0 %v1771_v48 }
0x10a2   : > { %2220 = vmatpush.msra.mxu0 %v1770_v49 }
0x10a4   : > { %2221 = vmatpush.msra.mxu0 %v1769_v54 }
0x10a6   : > { %2222 = vmatpush.msra.mxu0 %v1768_v57 }
0x111c   : > { %v1683_v23 = vpop.f32.mrf.mxu0 }
0x111d   : > { %v1687_v24 = vrot.slane %v1683_v23, 1 }
0x111f   : > { %v1689_v25 = vadd.f32 %v1687_v24, %v4959_v10 }
0x1121   : > { %3662 = vtanh.f32 %v1689_v25  ;;  %v3292_v28 = vmul.f32 -1.442695, %v1689_v25 }
0x1123   : > { %3664 = vpow2.f32 %v3292_v28 }
0x1127   : > { %v3663_v26 = vpop.eup %3662 }
0x1128   : > { %1715 = vrot.lane.b32.xlu1 %v3663_v26, %s4535_s3 }
0x1129   : > { %v3665_v29 = vpop.eup %3664 }
0x112a   : > { %v1693_v30 = vadd.f32 1.0, %v3665_v29 }
0x112c   : > { %3666 = vrcp.f32 %v1693_v30  ;;  %v1705_v35 = vand.u32 2147483648, %v1693_v30  ;;  %vm1699_vm4 = vweird.f32 %v1693_v30  ;;  %v1703_v36 = vand.u32 2147483647, %v1693_v30 }
0x112e   : > { %vm1704_vm8 = vcmp.eq.f32.partialorder %v1703_v36, 8.507059e+37 }
0x1130   : > { %1281 = vrot.lane.b32.xlu1 %v4972_v61, %s4536_s7  ;;  %v1706_v61 = vor.u32 1.1754944e-38, %v1705_v35 }
0x1132   : > { %v3667_v31 = vpop.eup %3666 }
0x1133   : > { %v1695_v32 = vmul.f32 %v3667_v31, %v1693_v30  ;;  %vm1700_vm3 = vweird.f32 %v3667_v31 }
0x1134   : > { %vm1701_vm7 = vmor %vm1699_vm4, %vm1700_vm3 }
0x1135   : > { %v1696_v33 = vsub.f32 1.0, %v1695_v32 }
0x1137   : > { %v1697_v34 = vmul.f32 %v3667_v31, %v1696_v33 }
0x1138   : > { %1506 = vrot.lane.b32.xlu1 %v4999_v22, %s4536_s7 }
0x1139   : > { %v1698_v10 = vadd.f32 %v3667_v31, %v1697_v34 }
0x113b   : > { %v1702_v37 = vsel %vm1701_vm7, %v3667_v31, %v1698_v10 }
0x113c   : > { %v1707_v22 = vsel %vm1704_vm8, %v1706_v61, %v1702_v37 }
0x113d   : > { %v1713_v43 = vmul.f32 %v1711_v42, %v1707_v22 }
0x119a   : > { %v1716_v38 = vpop.permute.xlu1 %1715 }
0x119b   : > { %v1718_v39 = vmul.f32 %v1716_v38, %v1707_v22 }
0x119d   : > { %1720 = vrot.lane.b32.xlu2 %v1718_v39, %s4536_s7 }
0x11a2   : > { %v1282_v40 = vpop.permute.xlu1 %1281 }
0x11a3   : > { %1285 = vst.msk [vmem:[#allocation2] sm:$0x2] %vm1284_vm9, %v1282_v40 }
0x11a5   : > { %1356 = vrot.lane.b32.xlu2 %v4981_v27, %s4536_s7 }
0x11aa   : > { %v1507_v41 = vpop.permute.xlu1 %1506 }
0x11ab   : > { %1510 = vst.msk [vmem:[#allocation2] sm:$0x10] %vm1509_vm10, %v1507_v41 }
0x11ad   : > { %1581 = vrot.lane.b32.xlu2 %v5008_v51, %s4536_s7 }
0x11f7   : > { %v1721_v44 = vpop.permute.xlu2 %1720 }
0x11f8   : > { %v1723_v45 = vadd.f32 %v1721_v44, %v1713_v43 }
0x11fa   : > { %3668 = vtanh.f32 %v1723_v45 }
0x11ff   : > { %v1357_v46 = vpop.permute.xlu2 %1356 }
0x1200   : > { %v3669_v47 = vpop.eup %3668  ;;  %1360 = vst.msk [vmem:[#allocation2] sm:$0x4] %vm1359_vm11, %v1357_v46 }
0x1201   : > { %1726 = vrot.lane.b32.xlu0 %v3669_v47, %s4535_s3 }
0x1207   : > { %v1582_v27 = vpop.permute.xlu2 %1581 }
0x1208   : > { %1585 = vst.msk [vmem:[#allocation2] sm:$0x20] %vm1584_vm12, %v1582_v27 }
0x1209   : > { %1431 = vrot.lane.b32.xlu0 %v4990_v55, %s4536_s7 }
0x1211   : > { %1656 = vrot.lane.b32.xlu0 %v1654_v19, %s4536_s7 }
0x1273   : > { %v1727_v50 = vpop.permute.xlu0 %1726 }
0x1274   : > { %v1729_v51 = vmul.f32 %v1727_v50, %v1707_v22 }
0x1276   : > { %1731 = vrot.lane.b32.xlu1 %v1729_v51, %s4536_s7 }
0x127b   : > { %v1432_v52 = vpop.permute.xlu0 %1431 }
0x127c   : > { %1435 = vst.msk [vmem:[#allocation2] sm:$0x8] %vm1434_vm13, %v1432_v52 }
0x1283   : > { %v1657_v55 = vpop.permute.xlu0 %1656 }
0x1284   : > { %1660 = vst.msk [vmem:[#allocation2] sm:$0x40] %vm1659_vm14, %v1657_v55 }
0x12e8   : > { %v1732_v7 = vpop.permute.xlu1 %1731 }
0x12e9   : > { %1735 = vst.msk [vmem:[#allocation2] sm:$0x80] %vm1734_vm15, %v1732_v7 }
0x12f0   : > { %v1736_v60 = vld [vmem:[#allocation2] sm:$0xff] }
0x12f1   : > { %3293 = vmatmul.msk.f32.vlgmr.msra.gmra.mxu1 %vm1146_vm6, %v1736_v60 }
0x12f2   : > { %2293 = vmatpush.msra.mxu1 %v1771_v48 }
0x12f4   : > { %2294 = vmatpush.msra.mxu1 %v1770_v49 }
0x12f6   : > { %2295 = vmatpush.msra.mxu1 %v1769_v54 }
0x12f8   : > { %2296 = vmatpush.msra.mxu1 %v1768_v57 }
0x136e   : > { %v1765_v63 = vpop.f32.mrf.mxu1 }
0x136f   : > { %v5044_v1 = vadd.f32 %v3596_v62, %v1765_v63 }
0x1371   : > { %v1792_v2 = vadd.f32 %v1789_v0, %v5044_v1 }
0x1373   : > { %3670 = vtanh.f32 %v1792_v2  ;;  %v3294_v4 = vmul.f32 -1.442695, %v1792_v2 }
0x1375   : > { %3672 = vpow2.f32 %v3294_v4 }
0x1379   : > { %v3671_v3 = vpop.eup %3670 }
0x137a   : > { %1815 = vrot.lane.b32.xlu2 %v3671_v3, %s4535_s3 }
0x137b   : > { %v3673_v5 = vpop.eup %3672 }
0x137c   : > { %v1796_v6 = vadd.f32 1.0, %v3673_v5 }
0x137e   : > { %3674 = vrcp.f32 %v1796_v6  ;;  %v1808_v14 = vand.u32 2147483648, %v1796_v6  ;;  %vm1802_vm2 = vweird.f32 %v1796_v6  ;;  %v1806_v15 = vand.u32 2147483647, %v1796_v6 }
0x1380   : > { %v1809_v17 = vor.u32 1.1754944e-38, %v1808_v14  ;;  %vm1807_vm4 = vcmp.eq.f32.partialorder %v1806_v15, 8.507059e+37 }
0x1384   : > { %v3675_v8 = vpop.eup %3674 }
0x1385   : > { %v1798_v9 = vmul.f32 %v3675_v8, %v1796_v6  ;;  %vm1803_vm1 = vweird.f32 %v3675_v8 }
0x1386   : > { %vm1804_vm3 = vmor %vm1802_vm2, %vm1803_vm1 }
0x1387   : > { %v1799_v11 = vsub.f32 1.0, %v1798_v9 }
0x1389   : > { %v1800_v12 = vmul.f32 %v3675_v8, %v1799_v11 }
0x138b   : > { %v1801_v13 = vadd.f32 %v3675_v8, %v1800_v12 }
0x138d   : > { %v1805_v16 = vsel %vm1804_vm3, %v3675_v8, %v1801_v13 }
0x138e   : > { %v1810_v19 = vsel %vm1807_vm4, %v1809_v17, %v1805_v16 }
0x138f   : > { %v1813_v21 = vmul.f32 0.0, %v1810_v19 }
0x13d4   : > { %v1816_v18 = vpop.permute.xlu2 %1815 }
0x13d5   : > { %v1818_v20 = vmul.f32 %v1816_v18, %v1810_v19 }
0x13d7   : > { %1820 = vrot.lane.b32.xlu0 %v1818_v20, %s4536_s7 }
0x1449   : > { %v1821_v23 = vpop.permute.xlu0 %1820 }
0x144a   : > { %v1823_v24 = vadd.f32 %v1821_v23, %v1813_v21 }
0x144c   : > { %3676 = vtanh.f32 %v1823_v24  ;;  %v1882_v46 = vrot.slane %v1823_v24, 7 }
0x1452   : > { %v3677_v25 = vpop.eup %3676 }
0x1453   : > { %1826 = vrot.lane.b32.xlu1 %v3677_v25, %s4535_s3 }
0x14c5   : > { %v1827_v26 = vpop.permute.xlu1 %1826 }
0x14c6   : > { %v1829_v28 = vmul.f32 %v1827_v26, %v1810_v19 }
0x14c8   : > { %1831 = vrot.lane.b32.xlu2 %v1829_v28, %s4536_s7 }
0x1522   : > { %v1832_v29 = vpop.permute.xlu2 %1831 }
0x1523   : > { %1834 = vst.msk [vmem:[#allocation2] sm:$0x1] %vm1212_vm5, %v1832_v29  ;;  %3295 = vmatmul.msk.f32.vlgmr.msra.gmra.mxu3 %vm1146_vm6, %v1832_v29 }
0x15a6   : > { %v1854_v30 = vpop.f32.mrf.mxu3 }
0x15a7   : > { %v1858_v31 = vrot.slane %v1854_v30, 7 }
0x15a9   : > { %v1860_v32 = vadd.f32 %v1858_v31, %v5044_v1 }
0x15ab   : > { %3678 = vtanh.f32 %v1860_v32  ;;  %v3296_v34 = vmul.f32 -1.442695, %v1860_v32 }
0x15ad   : > { %3680 = vpow2.f32 %v3296_v34 }
0x15b1   : > { %v3679_v33 = vpop.eup %3678 }
0x15b2   : > { %1886 = vrot.lane.b32.xlu0 %v3679_v33, %s4535_s3 }
0x15b3   : > { %v3681_v10 = vpop.eup %3680 }
0x15b4   : > { %v1864_v35 = vadd.f32 1.0, %v3681_v10 }
0x15b6   : > { %3682 = vrcp.f32 %v1864_v35  ;;  %v1876_v39 = vand.u32 2147483648, %v1864_v35  ;;  %vm1870_vm7 = vweird.f32 %v1864_v35  ;;  %v1874_v40 = vand.u32 2147483647, %v1864_v35 }
0x15b8   : > { %v1877_v42 = vor.u32 1.1754944e-38, %v1876_v39  ;;  %vm1875_vm1 = vcmp.eq.f32.partialorder %v1874_v40, 8.507059e+37 }
0x15bc   : > { %v3683_v36 = vpop.eup %3682 }
0x15bd   : > { %v1866_v37 = vmul.f32 %v3683_v36, %v1864_v35  ;;  %vm1871_vm5 = vweird.f32 %v3683_v36 }
0x15be   : > { %vm1872_vm8 = vmor %vm1870_vm7, %vm1871_vm5 }
0x15bf   : > { %v1867_v61 = vsub.f32 1.0, %v1866_v37 }
0x15c1   : > { %v1868_v38 = vmul.f32 %v3683_v36, %v1867_v61 }
0x15c3   : > { %v1869_v22 = vadd.f32 %v3683_v36, %v1868_v38 }
0x15c5   : > { %v1873_v41 = vsel %vm1872_vm8, %v3683_v36, %v1869_v22 }
0x15c6   : > { %v1878_v44 = vsel %vm1875_vm1, %v1877_v42, %v1873_v41 }
0x15c7   : > { %v1884_v47 = vmul.f32 %v1882_v46, %v1878_v44 }
0x1624   : > { %v1887_v43 = vpop.permute.xlu0 %1886 }
0x1625   : > { %v1889_v45 = vmul.f32 %v1887_v43, %v1878_v44 }
0x1627   : > { %1891 = vrot.lane.b32.xlu1 %v1889_v45, %s4536_s7 }
0x1699   : > { %v1892_v27 = vpop.permute.xlu1 %1891 }
0x169a   : > { %v1894_v48 = vadd.f32 %v1892_v27, %v1884_v47 }
0x169c   : > { %3684 = vtanh.f32 %v1894_v48  ;;  %v1956_v12 = vrot.slane %v1894_v48, 7 }
0x16a2   : > { %v3685_v49 = vpop.eup %3684 }
0x16a3   : > { %1897 = vrot.lane.b32.xlu2 %v3685_v49, %s4535_s3 }
0x16fd   : > { %v1898_v50 = vpop.permute.xlu2 %1897 }
0x16fe   : > { %v5057_v51 = vmul.f32 %v1898_v50, %v1878_v44 }
0x1700   : > { %v1906_v52 = vrot.slane %v5057_v51, 1 }
0x1702   : > { %1907 = vrot.lane.b32.xlu0 %v1906_v52, %s4536_s7 }
0x1774   : > { %v1908_v55 = vpop.permute.xlu0 %1907 }
0x1775   : > { %3297 = vmatmul.msk.f32.vlgmr.msrb.gmra.mxu0 %vm1146_vm6, %v1908_v55 }
0x17f2   : > { %v1928_v53 = vpop.f32.mrf.mxu0 }
0x17f3   : > { %v1932_v54 = vrot.slane %v1928_v53, 6 }
0x17f5   : > { %v1934_v56 = vadd.f32 %v1932_v54, %v5044_v1 }
0x17f7   : > { %3686 = vtanh.f32 %v1934_v56  ;;  %v3298_v58 = vmul.f32 -1.442695, %v1934_v56 }
0x17f9   : > { %3688 = vpow2.f32 %v3298_v58 }
0x17fd   : > { %v3687_v57 = vpop.eup %3686 }
0x17fe   : > { %1960 = vrot.lane.b32.xlu1 %v3687_v57, %s4535_s3 }
0x17ff   : > { %v3689_v59 = vpop.eup %3688 }
0x1800   : > { %v1938_v7 = vadd.f32 1.0, %v3689_v59 }
0x1802   : > { %3690 = vrcp.f32 %v1938_v7  ;;  %v1950_v3 = vand.u32 2147483648, %v1938_v7  ;;  %vm1944_vm3 = vweird.f32 %v1938_v7  ;;  %v1948_v4 = vand.u32 2147483647, %v1938_v7 }
0x1804   : > { %v1951_v6 = vor.u32 1.1754944e-38, %v1950_v3  ;;  %vm1949_vm5 = vcmp.eq.f32.partialorder %v1948_v4, 8.507059e+37 }
0x1808   : > { %v3691_v60 = vpop.eup %3690 }
0x1809   : > { %v1940_v62 = vmul.f32 %v3691_v60, %v1938_v7  ;;  %vm1945_vm2 = vweird.f32 %v3691_v60 }
0x180a   : > { %vm1946_vm4 = vmor %vm1944_vm3, %vm1945_vm2 }
0x180b   : > { %v1941_v63 = vsub.f32 1.0, %v1940_v62 }
0x180d   : > { %v1942_v0 = vmul.f32 %v3691_v60, %v1941_v63 }
0x180f   : > { %v1943_v2 = vadd.f32 %v3691_v60, %v1942_v0 }
0x1811   : > { %v1947_v5 = vsel %vm1946_vm4, %v3691_v60, %v1943_v2 }
0x1812   : > { %v1952_v9 = vsel %vm1949_vm5, %v1951_v6, %v1947_v5 }
0x1813   : > { %v1958_v13 = vmul.f32 %v1956_v12, %v1952_v9 }
0x1870   : > { %v1961_v8 = vpop.permute.xlu1 %1960 }
0x1871   : > { %v1963_v11 = vmul.f32 %v1961_v8, %v1952_v9 }
0x1873   : > { %1965 = vrot.lane.b32.xlu2 %v1963_v11, %s4536_s7 }
0x18cd   : > { %v1966_v14 = vpop.permute.xlu2 %1965 }
0x18ce   : > { %v1968_v15 = vadd.f32 %v1966_v14, %v1958_v13 }
0x18d0   : > { %3692 = vtanh.f32 %v1968_v15  ;;  %v2030_v39 = vrot.slane %v1968_v15, 7 }
0x18d6   : > { %v3693_v16 = vpop.eup %3692 }
0x18d7   : > { %1971 = vrot.lane.b32.xlu0 %v3693_v16, %s4535_s3 }
0x1949   : > { %v1972_v17 = vpop.permute.xlu0 %1971 }
0x194a   : > { %v5066_v18 = vmul.f32 %v1972_v17, %v1952_v9 }
0x194c   : > { %v1980_v19 = vrot.slane %v5066_v18, 2 }
0x194e   : > { %1981 = vrot.lane.b32.xlu1 %v1980_v19, %s4536_s7 }
0x19c0   : > { %v1982_v20 = vpop.permute.xlu1 %1981 }
0x19c1   : > { %3299 = vmatmul.msk.f32.vlgmr.msrb.gmra.mxu1 %vm1146_vm6, %v1982_v20 }
0x1a3e   : > { %v2002_v21 = vpop.f32.mrf.mxu1 }
0x1a3f   : > { %v2006_v23 = vrot.slane %v2002_v21, 5 }
0x1a41   : > { %v2008_v24 = vadd.f32 %v2006_v23, %v5044_v1 }
0x1a43   : > { %3694 = vtanh.f32 %v2008_v24  ;;  %v3300_v26 = vmul.f32 -1.442695, %v2008_v24 }
0x1a45   : > { %3696 = vpow2.f32 %v3300_v26 }
0x1a49   : > { %v3695_v25 = vpop.eup %3694 }
0x1a4a   : > { %2034 = vrot.lane.b32.xlu2 %v3695_v25, %s4535_s3 }
0x1a4b   : > { %v3697_v28 = vpop.eup %3696 }
0x1a4c   : > { %v2012_v29 = vadd.f32 1.0, %v3697_v28 }
0x1a4e   : > { %3698 = vrcp.f32 %v2012_v29  ;;  %v2024_v10 = vand.u32 2147483648, %v2012_v29  ;;  %vm2018_vm8 = vweird.f32 %v2012_v29  ;;  %v2022_v35 = vand.u32 2147483647, %v2012_v29 }
0x1a50   : > { %v2025_v37 = vor.u32 1.1754944e-38, %v2024_v10  ;;  %vm2023_vm2 = vcmp.eq.f32.partialorder %v2022_v35, 8.507059e+37 }
0x1a54   : > { %v3699_v30 = vpop.eup %3698 }
0x1a55   : > { %v2014_v31 = vmul.f32 %v3699_v30, %v2012_v29  ;;  %vm2019_vm7 = vweird.f32 %v3699_v30 }
0x1a56   : > { %vm2020_vm1 = vmor %vm2018_vm8, %vm2019_vm7 }
0x1a57   : > { %v2015_v32 = vsub.f32 1.0, %v2014_v31 }
0x1a59   : > { %v2016_v33 = vmul.f32 %v3699_v30, %v2015_v32 }
0x1a5b   : > { %v2017_v34 = vadd.f32 %v3699_v30, %v2016_v33 }
0x1a5d   : > { %v2021_v36 = vsel %vm2020_vm1, %v3699_v30, %v2017_v34 }
0x1a5e   : > { %v2026_v38 = vsel %vm2023_vm2, %v2025_v37, %v2021_v36 }
0x1a5f   : > { %v2032_v40 = vmul.f32 %v2030_v39, %v2026_v38 }
0x1aa4   : > { %v2035_v61 = vpop.permute.xlu2 %2034 }
0x1aa5   : > { %v2037_v22 = vmul.f32 %v2035_v61, %v2026_v38 }
0x1aa7   : > { %2039 = vrot.lane.b32.xlu0 %v2037_v22, %s4536_s7 }
0x1b19   : > { %v2040_v41 = vpop.permute.xlu0 %2039 }
0x1b1a   : > { %v2042_v42 = vadd.f32 %v2040_v41, %v2032_v40 }
0x1b1c   : > { %3700 = vtanh.f32 %v2042_v42  ;;  %v2104_v4 = vrot.slane %v2042_v42, 7 }
0x1b22   : > { %v3701_v43 = vpop.eup %3700 }
0x1b23   : > { %2045 = vrot.lane.b32.xlu1 %v3701_v43, %s4535_s3 }
0x1b95   : > { %v2046_v44 = vpop.permute.xlu1 %2045 }
0x1b96   : > { %v5075_v45 = vmul.f32 %v2046_v44, %v2026_v38 }
0x1b98   : > { %v2054_v46 = vrot.slane %v5075_v45, 3 }
0x1b9a   : > { %2055 = vrot.lane.b32.xlu2 %v2054_v46, %s4536_s7 }
0x1bf4   : > { %v2056_v47 = vpop.permute.xlu2 %2055 }
0x1bf5   : > { %3301 = vmatmul.msk.f32.vlgmr.msrb.gmra.mxu2 %vm1146_vm6, %v2056_v47 }
0x1c78   : > { %v2076_v27 = vpop.f32.mrf.mxu2 }
0x1c79   : > { %v2080_v48 = vrot.slane %v2076_v27, 4 }
0x1c7b   : > { %v2082_v49 = vadd.f32 %v2080_v48, %v5044_v1 }
0x1c7d   : > { %3702 = vtanh.f32 %v2082_v49  ;;  %v3302_v52 = vmul.f32 -1.442695, %v2082_v49 }
0x1c7f   : > { %3704 = vpow2.f32 %v3302_v52 }
0x1c83   : > { %v3703_v50 = vpop.eup %3702 }
0x1c84   : > { %2108 = vrot.lane.b32.xlu0 %v3703_v50, %s4535_s3 }
0x1c85   : > { %v3705_v55 = vpop.eup %3704 }
0x1c86   : > { %v2086_v53 = vadd.f32 1.0, %v3705_v55 }
0x1c88   : > { %3706 = vrcp.f32 %v2086_v53  ;;  %v2098_v7 = vand.u32 2147483648, %v2086_v53  ;;  %vm2092_vm4 = vweird.f32 %v2086_v53  ;;  %v2096_v60 = vand.u32 2147483647, %v2086_v53 }
0x1c8a   : > { %v2099_v63 = vor.u32 1.1754944e-38, %v2098_v7  ;;  %vm2097_vm7 = vcmp.eq.f32.partialorder %v2096_v60, 8.507059e+37 }
0x1c8e   : > { %v3707_v54 = vpop.eup %3706 }
0x1c8f   : > { %v2088_v56 = vmul.f32 %v3707_v54, %v2086_v53  ;;  %vm2093_vm3 = vweird.f32 %v3707_v54 }
0x1c90   : > { %vm2094_vm5 = vmor %vm2092_vm4, %vm2093_vm3 }
0x1c91   : > { %v2089_v57 = vsub.f32 1.0, %v2088_v56 }
0x1c93   : > { %v2090_v58 = vmul.f32 %v3707_v54, %v2089_v57 }
0x1c95   : > { %v2091_v59 = vadd.f32 %v3707_v54, %v2090_v58 }
0x1c97   : > { %v2095_v62 = vsel %vm2094_vm5, %v3707_v54, %v2091_v59 }
0x1c98   : > { %v2100_v2 = vsel %vm2097_vm7, %v2099_v63, %v2095_v62 }
0x1c99   : > { %v2106_v5 = vmul.f32 %v2104_v4, %v2100_v2 }
0x1cf6   : > { %v2109_v0 = vpop.permute.xlu0 %2108 }
0x1cf7   : > { %v2111_v3 = vmul.f32 %v2109_v0, %v2100_v2 }
0x1cf9   : > { %2113 = vrot.lane.b32.xlu1 %v2111_v3, %s4536_s7 }
0x1d6b   : > { %v2114_v6 = vpop.permute.xlu1 %2113 }
0x1d6c   : > { %v2116_v8 = vadd.f32 %v2114_v6, %v2106_v5  ;;  %v2387_v5 = vld [vmem:[#allocation18 + $0x8] sm:$0xff]  ;;  %v2386_v6 = vld [vmem:[#allocation18] sm:$0xff] }
0x1d6d   : > { %2405 = vmatpush.msra.mxu3 %v2387_v5 }
0x1d6e   : > { %3708 = vtanh.f32 %v2116_v8  ;;  %v2178_v36 = vrot.slane %v2116_v8, 7  ;;  %v2378_v8 = vlaneseq }
0x1d6f   : > { %2406 = vmatpush.msra.mxu3 %v2386_v6 }
0x1d74   : > { %v3709_v9 = vpop.eup %3708 }
0x1d75   : > { %2119 = vrot.lane.b32.xlu2 %v3709_v9, %s4535_s3  ;;  %v3738_v9 = vld [vmem:[%s4906_s10] sm:$0xff]  ;;  %s2956_s10 = sshll.u32 %s2952_s16, 4  ;;  %s2957_s10 = int_to_ptr.hbm [resolvable:$true] %s2956_s10 }
0x1dcf   : > { %v2120_v11 = vpop.permute.xlu2 %2119 }
0x1dd0   : > { %v5084_v12 = vmul.f32 %v2120_v11, %v2100_v2  ;;  %v2381_v11 = vrot.slane %v3738_v9, 6 }
0x1dd2   : > { %v2128_v13 = vrot.slane %v5084_v12, 4 }
0x1dd4   : > { %2129 = vrot.lane.b32.xlu0 %v2128_v13, %s4536_s7  ;;  %v5106_v13 = vshrl.u32 %v2378_v8, 7 }
0x1e46   : > { %v2130_v14 = vpop.permute.xlu0 %2129 }
0x1e47   : > { %3303 = vmatmul.msk.f32.vlgmr.msrb.gmra.mxu3 %vm1146_vm6, %v2130_v14 }
0x1eca   : > { %v2150_v15 = vpop.f32.mrf.mxu3 }
0x1ecb   : > { %v2154_v16 = vrot.slane %v2150_v15, 3 }
0x1ecd   : > { %v2156_v17 = vadd.f32 %v2154_v16, %v5044_v1 }
0x1ecf   : > { %3710 = vtanh.f32 %v2156_v17  ;;  %v3304_v20 = vmul.f32 -1.442695, %v2156_v17 }
0x1ed1   : > { %3712 = vpow2.f32 %v3304_v20  ;;  %v2421_v20 = vld [vmem:[#allocation18 + $0x10] sm:$0xff] }
0x1ed5   : > { %v3711_v19 = vpop.eup %3710 }
0x1ed6   : > { %2182 = vrot.lane.b32.xlu1 %v3711_v19, %s4535_s3  ;;  %v2422_v19 = vld [vmem:[#allocation18 + $0x18] sm:$0xff] }
0x1ed7   : > { %v3713_v21 = vpop.eup %3712  ;;  %2440 = vmatpush.msrb.mxu0 %v2422_v19 }
0x1ed8   : > { %v2160_v23 = vadd.f32 1.0, %v3713_v21  ;;  %v2449_v21 = vld [vmem:[#allocation18 + $0x28] sm:$0xff] }
0x1ed9   : > { %2464 = vmatpush.msrb.mxu1 %v2449_v21  ;;  %2441 = vmatpush.msrb.mxu0 %v2421_v20  ;;  %v2601_v20 = vld [vmem:[#allocation26] sm:$0xff]  ;;  %v2636_v21 = vld [vmem:[#allocation26 + $0x28] sm:$0xff] }
0x1eda   : > { %3714 = vrcp.f32 %v2160_v23  ;;  %v2172_v30 = vand.u32 2147483648, %v2160_v23  ;;  %vm2166_vm1 = vweird.f32 %v2160_v23  ;;  %v2170_v31 = vand.u32 2147483647, %v2160_v23 }
0x1edc   : > { %v2173_v33 = vor.u32 1.1754944e-38, %v2172_v30  ;;  %vm2171_vm3 = vcmp.eq.f32.partialorder %v2170_v31, 8.507059e+37  ;;  %v2478_v30 = vld [vmem:[#allocation21 + $0x18] sm:$0xff]  ;;  %v2477_v31 = vld [vmem:[#allocation21 + $0x10] sm:$0xff] }
0x1ee0   : > { %v3715_v24 = vpop.eup %3714 }
0x1ee1   : > { %v2162_v25 = vmul.f32 %v3715_v24, %v2160_v23  ;;  %vm2167_vm8 = vweird.f32 %v3715_v24  ;;  %v2415_v23 = vrot.slane %v3738_v9, 7 }
0x1ee2   : > { %vm2168_vm2 = vmor %vm2166_vm1, %vm2167_vm8  ;;  %vm2382_vm1 = vcmp.ge.s32.totalorder %v5106_v13, 2 }
0x1ee3   : > { %v2163_v26 = vsub.f32 1.0, %v2162_v25  ;;  %v2385_v14 = vsel %vm2382_vm1, %v2381_v11, 0.0 }
0x1ee4   : > { %3310 = vmatmul.msk.f32.vlgmr.msra.gmra.mxu3 %vm1118_vm0, %v2385_v14 }
0x1ee5   : > { %v2164_v28 = vmul.f32 %v3715_v24, %v2163_v26 }
0x1ee7   : > { %v2165_v29 = vadd.f32 %v3715_v24, %v2164_v28  ;;  %v2352_v28 = vld [vmem:[#allocation15 + $0x8] sm:$0xff] }
0x1ee8   : > { %2371 = vmatpush.msra.mxu2 %v2352_v28 }
0x1ee9   : > { %v2169_v32 = vsel %vm2168_vm2, %v3715_v24, %v2165_v29  ;;  %vm2416_vm2 = vcmp.ge.s32.totalorder %v5106_v13, 1  ;;  %v2448_v24 = vld [vmem:[#allocation18 + $0x20] sm:$0xff]  ;;  %v2351_v29 = vld [vmem:[#allocation15] sm:$0xff] }
0x1eea   : > { %v2174_v10 = vsel %vm2171_vm3, %v2173_v33, %v2169_v32  ;;  %v2419_v25 = vsel %vm2416_vm2, %v2415_v23, 0.0  ;;  %2465 = vmatpush.msrb.mxu1 %v2448_v24  ;;  %2372 = vmatpush.msra.mxu2 %v2351_v29  ;;  %v2512_v32 = vld [vmem:[#allocation21 + $0x38] sm:$0xff]  ;;  %v2476_v33 = vld [vmem:[#allocation21 + $0x8] sm:$0xff] }
0x1eeb   : > { %v2180_v37 = vmul.f32 %v2178_v36, %v2174_v10  ;;  %3309 = vmatmul.msk.f32.vlgmr.msra.gmra.mxu2 %vm1118_vm0, %v3738_v9  ;;  %2528 = vmatpush.msrb.mxu3 %v2512_v32  ;;  %v2509_v36 = vld [vmem:[#allocation21 + $0x20] sm:$0xff] }
0x1eec   : > { %2494 = vmatpush.msrb.mxu2 %v2478_v30  ;;  %v2667_v23 = vld [vmem:[#allocation26 + $0x58] sm:$0xff]  ;;  %v2635_v24 = vld [vmem:[#allocation26 + $0x20] sm:$0xff] }
0x1eed   : > { %v2664_v29 = vld [vmem:[#allocation26 + $0x40] sm:$0xff]  ;;  %v3599_v32 = vld [vmem:[#allocation23] ss:$0 sm:$0xff] }
0x1eee   : > { %2495 = vmatpush.msrb.mxu2 %v2477_v31 }
0x1ef0   : > { %2496 = vmatpush.msrb.mxu2 %v2476_v33 }
0x1f48   : > { %v2183_v34 = vpop.permute.xlu1 %2182 }
0x1f49   : > { %v2185_v35 = vmul.f32 %v2183_v34, %v2174_v10  ;;  %v2511_v34 = vld [vmem:[#allocation21 + $0x30] sm:$0xff] }
0x1f4a   : > { %2529 = vmatpush.msrb.mxu3 %v2511_v34 }
0x1f4b   : > { %2187 = vrot.lane.b32.xlu2 %v2185_v35, %s4536_s7  ;;  %v2510_v35 = vld [vmem:[#allocation21 + $0x28] sm:$0xff] }
0x1f4c   : > { %2530 = vmatpush.msrb.mxu3 %v2510_v35  ;;  %v3600_v35 = vld [vmem:[#allocation24] ss:$0 sm:$0xff] }
0x1f4e   : > { %2531 = vmatpush.msrb.mxu3 %v2509_v36 }
0x1f6e   : > { %v5150_v30 = vpop.f32.mrf.mxu2 }
0x1fa5   : > { %v2188_v61 = vpop.permute.xlu2 %2187 }
0x1fa6   : > { %v2190_v38 = vadd.f32 %v2188_v61, %v2180_v37  ;;  %v2541_v37 = vld [vmem:[#allocation21 + $0x58] sm:$0xff]  ;;  %v2540_v61 = vld [vmem:[#allocation21 + $0x50] sm:$0xff] }
0x1fa8   : > { %3716 = vtanh.f32 %v2190_v38  ;;  %v2252_v63 = vrot.slane %v2190_v38, 7  ;;  %v2539_v38 = vld [vmem:[#allocation21 + $0x48] sm:$0xff] }
0x1fae   : > { %v3717_v22 = vpop.eup %3716 }
0x1faf   : > { %2193 = vrot.lane.b32.xlu0 %v3717_v22, %s4535_s3  ;;  %v2568_v22 = vld [vmem:[%s5318_s8 + $0x8] sm:$0xff] }
0x2021   : > { %v2194_v39 = vpop.permute.xlu0 %2193 }
0x2022   : > { %v5093_v40 = vmul.f32 %v2194_v39, %v2174_v10  ;;  %v2475_v10 = vld [vmem:[#allocation21] sm:$0xff]  ;;  %v2567_v39 = vld [vmem:[%s5318_s8] sm:$0xff] }
0x2023   : > { %2497 = vmatpush.msrb.mxu2 %v2475_v10 }
0x2024   : > { %v2202_v41 = vrot.slane %v5093_v40, 5 }
0x2026   : > { %2203 = vrot.lane.b32.xlu1 %v2202_v41, %s4536_s7  ;;  %v2538_v41 = vld [vmem:[#allocation21 + $0x40] sm:$0xff] }
0x2098   : > { %v2204_v42 = vpop.permute.xlu1 %2203 }
0x2099   : > { %3305 = vmatmul.msk.f32.vlgmr.msra.gmra.mxu0 %vm1146_vm6, %v2204_v42  ;;  %v3597_v42 = vld [vmem:[#allocation20] ss:$0 sm:$0xff] }
0x209a   : > { %2557 = vmatpush.msra.mxu0 %v2541_v37 }
0x209c   : > { %2558 = vmatpush.msra.mxu0 %v2540_v61 }
0x209e   : > { %2559 = vmatpush.msra.mxu0 %v2539_v38 }
0x20a0   : > { %2560 = vmatpush.msra.mxu0 %v2538_v41 }
0x20a1   : > { %3311 = vmatmul.msk.f32.vlgmr.msrb.gmra.mxu0 %vm1118_vm0, %v2419_v25  ;;  %v2666_v25 = vld [vmem:[#allocation26 + $0x50] sm:$0xff] }
0x20a2   : > { %2683 = vmatpush.msrb.mxu0 %v2667_v23  ;;  %v2853_v23 = vld [vmem:[#allocation35 + $0x18] sm:$0xff] }
0x20a4   : > { %2684 = vmatpush.msrb.mxu0 %v2666_v25  ;;  %v2852_v25 = vld [vmem:[#allocation35 + $0x10] sm:$0xff] }
0x2116   : > { %v2224_v43 = vpop.f32.mrf.mxu0 }
0x2117   : > { %v2228_v44 = vrot.slane %v2224_v43, 2  ;;  %v2408_v43 = vpop.f32.mrf.mxu3 }
0x2119   : > { %v2230_v46 = vadd.f32 %v2228_v44, %v5044_v1 }
0x211b   : > { %3718 = vtanh.f32 %v2230_v46  ;;  %v3306_v27 = vmul.f32 -1.442695, %v2230_v46 }
0x211d   : > { %3720 = vpow2.f32 %v3306_v27 }
0x211e   : > { %v2443_v27 = vpop.f32.mrf.mxu0 }
0x2121   : > { %v3719_v47 = vpop.eup %3718 }
0x2122   : > { %2256 = vrot.lane.b32.xlu2 %v3719_v47, %s4535_s3  ;;  %v2414_v47 = vadd.f32 %v3597_v42, %v2408_v43 }
0x2123   : > { %v3721_v48 = vpop.eup %3720 }
0x2124   : > { %v2234_v49 = vadd.f32 1.0, %v3721_v48 }
0x2126   : > { %3722 = vrcp.f32 %v2234_v49  ;;  %v2246_v56 = vand.u32 2147483648, %v2234_v49  ;;  %vm2240_vm5 = vweird.f32 %v2234_v49  ;;  %v2244_v57 = vand.u32 2147483647, %v2234_v49 }
0x2128   : > { %v2247_v59 = vor.u32 1.1754944e-38, %v2246_v56  ;;  %vm2245_vm8 = vcmp.eq.f32.partialorder %v2244_v57, 8.507059e+37 }
0x212c   : > { %v3723_v50 = vpop.eup %3722 }
0x212d   : > { %v2236_v52 = vmul.f32 %v3723_v50, %v2234_v49  ;;  %vm2241_vm4 = vweird.f32 %v3723_v50  ;;  %v2446_v49 = vadd.f32 %v2443_v27, %v2414_v47 }
0x212e   : > { %vm2242_vm7 = vmor %vm2240_vm5, %vm2241_vm4 }
0x212f   : > { %v2237_v55 = vsub.f32 1.0, %v2236_v52 }
0x2131   : > { %v2238_v53 = vmul.f32 %v3723_v50, %v2237_v55 }
0x2133   : > { %v2239_v54 = vadd.f32 %v3723_v50, %v2238_v53 }
0x2135   : > { %v2243_v58 = vsel %vm2242_vm7, %v3723_v50, %v2239_v54 }
0x2136   : > { %v2248_v60 = vsel %vm2245_vm8, %v2247_v59, %v2243_v58 }
0x2137   : > { %v2254_v0 = vmul.f32 %v2252_v63, %v2248_v60 }
0x217c   : > { %v2257_v7 = vpop.permute.xlu2 %2256 }
0x217d   : > { %v2259_v62 = vmul.f32 %v2257_v7, %v2248_v60 }
0x217f   : > { %2261 = vrot.lane.b32.xlu0 %v2259_v62, %s4536_s7 }
0x21f1   : > { %v2262_v2 = vpop.permute.xlu0 %2261 }
0x21f2   : > { %v5101_v3 = vadd.f32 %v2262_v2, %v2254_v0 }
0x21f4   : > { %3724 = vtanh.f32 %v5101_v3 }
0x21fa   : > { %v3725_v4 = vpop.eup %3724 }
0x21fb   : > { %2267 = vrot.lane.b32.xlu1 %v3725_v4, %s4535_s3 }
0x226d   : > { %v2268_v15 = vpop.permute.xlu1 %2267 }
0x226e   : > { %v5112_v16 = vmul.f32 %v2268_v15, %v2248_v60  ;;  %v2602_v15 = vld [vmem:[#allocation26 + $0x8] sm:$0xff] }
0x2270   : > { %v2276_v17 = vrot.slane %v5112_v16, 6 }
0x2272   : > { %2277 = vrot.lane.b32.xlu2 %v2276_v17, %s4536_s7  ;;  %v2637_v17 = vld [vmem:[#allocation26 + $0x30] sm:$0xff] }
0x22cc   : > { %v2278_v26 = vpop.permute.xlu2 %2277 }
0x22cd   : > { %3307 = vmatmul.msk.f32.vlgmr.msra.gmra.mxu1 %vm1146_vm6, %v2278_v26  ;;  %v2665_v26 = vld [vmem:[#allocation26 + $0x48] sm:$0xff] }
0x22ce   : > { %2587 = vmatpush.msra.mxu1 %v2568_v22  ;;  %2685 = vmatpush.msrb.mxu0 %v2665_v26  ;;  %v2792_v26 = vld [vmem:[#allocation29 + $0x8] sm:$0xff] }
0x22d0   : > { %2588 = vmatpush.msra.mxu1 %v2567_v39  ;;  %2686 = vmatpush.msrb.mxu0 %v2664_v29  ;;  %v2791_v29 = vld [vmem:[#allocation29] sm:$0xff] }
0x22d5   : > { %3312 = vmatmul.msk.f32.vlgmr.msrb.gmra.mxu1 %vm1118_vm0, %v3738_v9 }
0x22dd   : > { %3316 = vmatmul.msk.f32.vlgmr.msra.gmra.mxu1 %vm1118_vm0, %v3738_v9  ;;  %v2638_v9 = vld [vmem:[#allocation26 + $0x38] sm:$0xff] }
0x22de   : > { %2654 = vmatpush.msra.mxu3 %v2638_v9 }
0x22e0   : > { %2655 = vmatpush.msra.mxu3 %v2637_v17 }
0x22e2   : > { %2656 = vmatpush.msra.mxu3 %v2636_v21  ;;  %v2825_v21 = vld [vmem:[#allocation32 + $0x18] sm:$0xff] }
0x22e4   : > { %2657 = vmatpush.msra.mxu3 %v2635_v24  ;;  %v2824_v24 = vld [vmem:[#allocation32 + $0x10] sm:$0xff] }
0x234a   : > { %v2298_v44 = vpop.f32.mrf.mxu1 }
0x234b   : > { %v2302_v46 = vrot.slane %v2298_v44, 1 }
0x234d   : > { %v2304_v48 = vadd.f32 %v2302_v46, %v5044_v1  ;;  %v2326_v46 = vrot.slane %v5101_v3, 7  ;;  %v2761_v3 = vld [vmem:[#allocation27 + $0x50] sm:$0xff] }
0x234f   : > { %3726 = vtanh.f32 %v2304_v48  ;;  %v3308_v1 = vmul.f32 -1.442695, %v2304_v48 }
0x2351   : > { %3728 = vpow2.f32 %v3308_v1  ;;  %v2759_v1 = vld [vmem:[#allocation27 + $0x40] sm:$0xff] }
0x2352   : > { %v2467_v50 = vpop.f32.mrf.mxu1 }
0x2353   : > { %v2470_v52 = vadd.f32 %v2467_v50, %v2446_v49 }
0x2355   : > { %v3727_v55 = vpop.eup %3726  ;;  %v2471_v53 = vmax.f32 %v2470_v52, 0.0 }
0x2356   : > { %2330 = vrot.lane.b32.xlu0 %v3727_v55, %s4535_s3  ;;  %v2762_v55 = vld [vmem:[#allocation27 + $0x58] sm:$0xff] }
0x2357   : > { %v2473_v54 = vrot.slane %v2471_v53, 6  ;;  %v2506_v56 = vrot.slane %v2471_v53, 7  ;;  %3315 = vmatmul.msk.f32.vlgmr.msra.gmra.mxu0 %vm1146_vm6, %v2471_v53  ;;  %v3729_v59 = vpop.eup %3728  ;;  %v2699_v53 = vld [vmem:[#allocation27 + $0x18] sm:$0xff] }
0x2358   : > { %v2308_v7 = vadd.f32 1.0, %v3729_v59  ;;  %2715 = vmatpush.msrb.mxu1 %v2699_v53  ;;  %v2731_v59 = vld [vmem:[#allocation27 + $0x28] sm:$0xff] }
0x2359   : > { %v2474_v57 = vsel %vm2382_vm1, %v2473_v54, 0.0  ;;  %v2507_v58 = vsel %vm2416_vm2, %v2506_v56, 0.0  ;;  %v2733_v54 = vld [vmem:[#allocation27 + $0x38] sm:$0xff]  ;;  %v2760_v56 = vld [vmem:[#allocation27 + $0x48] sm:$0xff] }
0x235a   : > { %3313 = vmatmul.msk.f32.vlgmr.msrb.gmra.mxu2 %vm1146_vm6, %v2474_v57  ;;  %3314 = vmatmul.msk.f32.vlgmr.msrb.gmra.mxu3 %vm1146_vm6, %v2507_v58  ;;  %3730 = vrcp.f32 %v2308_v7  ;;  %v2320_v4 = vand.u32 2147483648, %v2308_v7  ;;  %vm2314_vm3 = vweird.f32 %v2308_v7  ;;  %v2318_v5 = vand.u32 2147483647, %v2308_v7  ;;  %v2590_v37 = vpop.f32.mrf.mxu1  ;;  %v2698_v57 = vld [vmem:[#allocation27 + $0x10] sm:$0xff] }
0x235b   : > { %v2591_v22 = vadd.f32 %v3600_v35, %v2590_v37  ;;  %2778 = vmatpush.msrb.mxu3 %v2762_v55  ;;  %v2732_v58 = vld [vmem:[#allocation27 + $0x30] sm:$0xff]  ;;  %2716 = vmatpush.msrb.mxu1 %v2698_v57 }
0x235c   : > { %v2321_v8 = vor.u32 1.1754944e-38, %v2320_v4  ;;  %vm2319_vm5 = vcmp.eq.f32.partialorder %v2318_v5, 8.507059e+37 }
0x235d   : > { %2779 = vmatpush.msrb.mxu3 %v2761_v3 }
0x235e   : > { %1902 = vrot.lane.b32.xlu0 %v5057_v51, %s4536_s7  ;;  %v2604_v51 = vld [vmem:[#allocation26 + $0x18] sm:$0xff] }
0x235f   : > { %2620 = vmatpush.msra.mxu2 %v2604_v51  ;;  %2780 = vmatpush.msrb.mxu3 %v2760_v56 }
0x2360   : > { %v3731_v60 = vpop.eup %3730 }
0x2361   : > { %v2310_v62 = vmul.f32 %v3731_v60, %v2308_v7  ;;  %vm2315_vm0 = vweird.f32 %v3731_v60  ;;  %2781 = vmatpush.msrb.mxu3 %v2759_v1  ;;  %v2696_v7 = vld [vmem:[#allocation27] sm:$0xff] }
0x2362   : > { %vm2316_vm4 = vmor %vm2314_vm3, %vm2315_vm0 }
0x2363   : > { %v2311_v63 = vsub.f32 1.0, %v2310_v62  ;;  %v3601_v62 = vld [vmem:[%s5319_s18] ss:$0 sm:$0xff]  ;;  %s2954_s18 = sshll.u32 %s1110_s24, 4  ;;  %s2955_s18 = int_to_ptr.vmem [resolvable:$true] %s2954_s18 }
0x2365   : > { %v2312_v0 = vmul.f32 %v3731_v60, %v2311_v63 }
0x2366   : > { %2124 = vrot.lane.b32.xlu0 %v5084_v12, %s4536_s7  ;;  %v2603_v12 = vld [vmem:[#allocation26 + $0x10] sm:$0xff] }
0x2367   : > { %v2313_v2 = vadd.f32 %v3731_v60, %v2312_v0  ;;  %2621 = vmatpush.msra.mxu2 %v2603_v12 }
0x2369   : > { %v2317_v6 = vsel %vm2316_vm4, %v3731_v60, %v2313_v2  ;;  %2622 = vmatpush.msra.mxu2 %v2602_v15  ;;  %v2730_v60 = vld [vmem:[#allocation27 + $0x20] sm:$0xff] }
0x236a   : > { %v5143_v14 = vsel %vm2319_vm5, %v2321_v8, %v2317_v6 }
0x236b   : > { %2623 = vmatpush.msra.mxu2 %v2601_v20  ;;  %v2328_v47 = vmul.f32 %v2326_v46, %v5143_v14  ;;  %v2794_v20 = vld [vmem:[#allocation29 + $0x18] sm:$0xff] }
0x236c   : > { %2814 = vmatpush.msra.mxu0 %v2794_v20 }
0x236d   : > { %2749 = vmatpush.msrb.mxu2 %v2733_v54 }
0x236f   : > { %2750 = vmatpush.msrb.mxu2 %v2732_v58 }
0x2371   : > { %2751 = vmatpush.msrb.mxu2 %v2731_v59 }
0x2373   : > { %2752 = vmatpush.msrb.mxu2 %v2730_v60 }
0x23c8   : > { %v2331_v11 = vpop.permute.xlu0 %2330 }
0x23c9   : > { %v2333_v19 = vmul.f32 %v2331_v11, %v5143_v14 }
0x23cb   : > { %2335 = vrot.lane.b32.xlu1 %v2333_v19, %s4536_s7 }
0x23d0   : > { %v1903_v28 = vpop.permute.xlu0 %1902 }
0x23d1   : > { %1905 = vst.msk [vmem:[#allocation2] sm:$0x2] %vm1284_vm9, %v1903_v28  ;;  %vm2597_vm9 = vcmp.ge.s32.totalorder %v5106_v13, 4  ;;  %v2793_v13 = vld [vmem:[#allocation29 + $0x10] sm:$0xff] }
0x23d2   : > { %v2823_v28 = vld [vmem:[#allocation32 + $0x8] sm:$0xff]  ;;  %2815 = vmatpush.msra.mxu0 %v2793_v13 }
0x23d3   : > { %1976 = vrot.lane.b32.xlu1 %v5066_v18, %s4536_s7 }
0x23d4   : > { %v2562_v36 = vpop.f32.mrf.mxu0  ;;  %2816 = vmatpush.msra.mxu0 %v2792_v26 }
0x23d6   : > { %2817 = vmatpush.msra.mxu0 %v2791_v29 }
0x23d8   : > { %v2125_v31 = vpop.permute.xlu0 %2124 }
0x23d9   : > { %2127 = vst.msk [vmem:[#allocation2] sm:$0x10] %vm1509_vm10, %v2125_v31  ;;  %v2822_v31 = vld [vmem:[#allocation32] sm:$0xff]  ;;  %vm2904_vm10 = vcmask 64512  }
0x23db   : > { %2198 = vrot.lane.b32.xlu1 %v5093_v40, %s4536_s7 }
0x23dd   : > { %v2499_v33 = vpop.f32.mrf.mxu2  ;;  %v2533_v34 = vpop.f32.mrf.mxu3 }
0x23de   : > { %v2505_v10 = vadd.f32 %v3599_v32, %v2499_v33  ;;  %v2850_v32 = vld [vmem:[#allocation35] sm:$0xff] }
0x23e0   : > { %v2536_v61 = vadd.f32 %v2533_v34, %v2505_v10 }
0x23e2   : > { %v2565_v38 = vadd.f32 %v2562_v36, %v2536_v61 }
0x23e4   : > { %v2566_v18 = vmax.f32 %v2565_v38, 0.0 }
0x23e6   : > { %v2593_v39 = vadd.f32 %v2591_v22, %v2566_v18  ;;  %v3598_v18 = vld [vmem:[#allocation17] ss:$0 sm:$0xff] }
0x23e8   : > { %v5155_v41 = vmax.f32 %v2593_v39, 0.0 }
0x23ea   : > { %v2596_v42 = vrot.slane %v5155_v41, 4  ;;  %v2632_v43 = vrot.slane %v5155_v41, 6  ;;  %3319 = vmatmul.msk.f32.vlgmr.msrb.gmra.mxu0 %vm1146_vm6, %v5155_v41 }
0x23ec   : > { %v2600_v40 = vsel %vm2597_vm9, %v2596_v42, 0.0  ;;  %v2633_v44 = vsel %vm2382_vm1, %v2632_v43, 0.0  ;;  %v2375_v42 = vadd.f32 %v3598_v18, %v5150_v30 }
0x23ed   : > { %3317 = vmatmul.msk.f32.vlgmr.msra.gmra.mxu2 %vm1146_vm6, %v2600_v40  ;;  %3318 = vmatmul.msk.f32.vlgmr.msra.gmra.mxu3 %vm1146_vm6, %v2633_v44 }
0x23ee   : > { %2870 = vmatpush.msra.mxu2 %v2853_v23 }
0x23f0   : > { %2871 = vmatpush.msra.mxu2 %v2852_v25 }
0x243d   : > { %v2336_v27 = vpop.permute.xlu1 %2335 }
0x243e   : > { %v2338_v48 = vadd.f32 %v2336_v27, %v2328_v47  ;;  %v3604_v47 = vld [vmem:[#allocation33] ss:$0 sm:$0xff]  ;;  %v3603_v27 = vld [vmem:[#allocation30] ss:$0 sm:$0xff] }
0x2440   : > { %3732 = vtanh.f32 %v2338_v48 }
0x2445   : > { %v1977_v49 = vpop.permute.xlu1 %1976 }
0x2446   : > { %v3733_v50 = vpop.eup %3732  ;;  %1979 = vst.msk [vmem:[#allocation2] sm:$0x4] %vm1359_vm11, %v1977_v49 }
0x2447   : > { %2341 = vrot.lane.b32.xlu2 %v3733_v50, %s4535_s3  ;;  %s2942_s3 = scalar_lea.sflag [#allocation5], %s4900_s1 }
0x244d   : > { %v2199_v52 = vpop.permute.xlu1 %2198 }
0x244e   : > { %2201 = vst.msk [vmem:[#allocation2] sm:$0x20] %vm1584_vm12, %v2199_v52  ;;  %v3605_v52 = vld [vmem:[#allocation36] ss:$0 sm:$0xff] }
0x244f   : > { %2050 = vrot.lane.b32.xlu2 %v5075_v45, %s4536_s7  ;;  %v2697_v45 = vld [vmem:[#allocation27 + $0x8] sm:$0xff] }
0x2450   : > { %2717 = vmatpush.msrb.mxu1 %v2697_v45 }
0x2452   : > { %2718 = vmatpush.msrb.mxu1 %v2696_v7 }
0x2454   : > { %2842 = vmatpush.msra.mxu1 %v2825_v21 }
0x2456   : > { %2843 = vmatpush.msra.mxu1 %v2824_v24 }
0x2457   : > { %2272 = vrot.lane.b32.xlu2 %v5112_v16, %s4536_s7 }
0x2458   : > { %2844 = vmatpush.msra.mxu1 %v2823_v28 }
0x245a   : > { %2845 = vmatpush.msra.mxu1 %v2822_v31 }
0x2467   : > { %v2688_v4 = vpop.f32.mrf.mxu0 }
0x2470   : > { %v2625_v63 = vpop.f32.mrf.mxu2  ;;  %v2659_v0 = vpop.f32.mrf.mxu3 }
0x2471   : > { %v2631_v2 = vadd.f32 %v3601_v62, %v2625_v63 }
0x2473   : > { %v2662_v16 = vadd.f32 %v2659_v0, %v2631_v2 }
0x2475   : > { %v2691_v5 = vadd.f32 %v2688_v4, %v2662_v16 }
0x2477   : > { %v2692_v6 = vmax.f32 %v2691_v5, 0.0 }
0x2479   : > { %v2694_v51 = vrot.slane %v2692_v6, 4  ;;  %v2727_v8 = vrot.slane %v2692_v6, 6  ;;  %3322 = vmatmul.msk.f32.vlgmr.msrb.gmra.mxu3 %vm1146_vm6, %v2692_v6 }
0x247b   : > { %v2695_v12 = vsel %vm2597_vm9, %v2694_v51, 0.0  ;;  %v2728_v9 = vsel %vm2382_vm1, %v2727_v8, 0.0 }
0x247c   : > { %3320 = vmatmul.msk.f32.vlgmr.msrb.gmra.mxu1 %vm1146_vm6, %v2695_v12  ;;  %3321 = vmatmul.msk.f32.vlgmr.msrb.gmra.mxu2 %vm1146_vm6, %v2728_v9 }
0x24a1   : > { %v2342_v11 = vpop.permute.xlu2 %2341 }
0x24a2   : > { %v2344_v15 = vmul.f32 %v2342_v11, %v5143_v14  ;;  %v2851_v14 = vld [vmem:[#allocation35 + $0x8] sm:$0xff] }
0x24a3   : > { %2872 = vmatpush.msra.mxu2 %v2851_v14 }
0x24a4   : > { %2346 = vrot.lane.b32.xlu0 %v2344_v15, %s4536_s7  ;;  %s5320_s7 = sld [smem:[#allocation69_spill]] }
0x24a5   : > { %2873 = vmatpush.msra.mxu2 %v2850_v32 }
0x24a9   : > { %v2051_v17 = vpop.permute.xlu2 %2050 }
0x24aa   : > { %2053 = vst.msk [vmem:[#allocation2] sm:$0x8] %vm1434_vm13, %v2051_v17  ;;  %v3602_v33 = vld [vmem:[%s5320_s7] ss:$0 sm:$0xff]  ;;  %s4413_s7 = sshra.s32 %s2957_s10, 4  ;;  %s4414_s7 = int_to_ptr.hbm [resolvable:$true] %s4413_s7 }
0x24ab   : > { %s4415_s0 = scalar_lea.hbm %s4414_s7, 8  ;;  %p4420_p12 = scmp.lt.s32.totalorder %s4414_s7, %s5321_s4 }
0x24ac   : > { %p4416_p1 = scmp.ne.s32.totalorder %s4414_s7, %s4415_s0  ;;  %p4421_p8 = scmp.lt.s32.totalorder %s4419_s28, %s4415_s0 }
0x24ae   : > { %p4417_p3 = pnand %p4416_p1, %p4869_p13  ;;  %p4422_p7 = por %p4421_p8, %p4420_p12 }
0x24b0   : > { %p4418_p5 = pneg %p4417_p3 }
0x24b1   : > { %v2273_v19 = vpop.permute.xlu2 %2272 }
0x24b2   : > { %2275 = vst.msk [vmem:[#allocation2] sm:$0x40] %vm1659_vm14, %v2273_v19  ;;  %p4423_p9 = pnand %p4422_p7, %p4418_p5 }
0x24f9   : > { %v2720_v34 = vpop.f32.mrf.mxu1 }
0x24fa   : > { %v2726_v35 = vadd.f32 %v3602_v33, %v2720_v34 }
0x24fc   : > { %v2783_v37 = vpop.f32.mrf.mxu3 }
0x24ff   : > { %v2754_v10 = vpop.f32.mrf.mxu2 }
0x2500   : > { %v2757_v36 = vadd.f32 %v2754_v10, %v2726_v35 }
0x2502   : > { %v2786_v61 = vadd.f32 %v2783_v37, %v2757_v36 }
0x2504   : > { %v2787_v22 = vmax.f32 %v2786_v61, 0.0 }
0x2506   : > { %v2788_v39 = vadd.f32 %v2787_v22, %v5155_v41 }
0x2508   : > { %v2789_v40 = vmax.f32 %v2788_v39, 0.0 }
0x2516   : > { %v2347_v38 = vpop.permute.xlu0 %2346 }
0x2517   : > { %2349 = vst.msk [vmem:[#allocation2] sm:$0x80] %vm1734_vm15, %v2347_v38 }
0x251e   : > { %v2350_v43 = vld [vmem:[#allocation2] sm:$0xff] }
0x251f   : > { %v2377_v44 = vadd.f32 %v2375_v42, %v2350_v43 }
0x2521   : > { %v2790_v46 = vadd.f32 %v2789_v40, %v2377_v44 }
0x2523   : > { %3323 = vmatmul.msk.f32.vlgmr.msra.gmra.mxu0 %vm1146_vm6, %v2790_v46  ;;  %3324 = vmatmul.msk.f32.vlgmr.msra.gmra.mxu1 %vm1146_vm6, %v2790_v46 }
0x2524   : > { %3325 = vmatmul.msk.f32.vlgmr.msra.gmra.mxu2 %vm1146_vm6, %v2790_v46 }
0x25a0   : > { %v2847_v48 = vpop.f32.mrf.mxu1  ;;  %v2819_v49 = vpop.f32.mrf.mxu0 }
0x25a1   : > { %v2848_v50 = vadd.f32 %v3604_v47, %v2847_v48  ;;  %v2820_v41 = vadd.f32 %v3603_v27, %v2819_v49 }
0x25a3   : > { %3326 = vmatpush.xpose.msk.msra.mxu3 %vm1146_vm6, %v2848_v50 }
0x25a6   : > { %3327 = vmatmul.msk.f32.vlgmr.msra.gmra.mxu3 %vm1146_vm6, %v2820_v41 }
0x25a7   : > { %v2875_v30 = vpop.f32.mrf.mxu2 }
0x25a8   : > { %v2876_v55 = vadd.f32 %v3605_v52, %v2875_v30 }
0x25aa   : > { %2934 = vmatpush.msrb.mxu0 %v2876_v55 }
0x2629   : > { %v2901_v3 = vpop.f32.mrf.mxu3 }
0x262a   : > { %v2905_v53 = vsel %vm2904_vm10, %v2901_v3, -inf }
0x262b   : > { %2906 = vmax.xlane.f32.xlu1 %v2905_v53 }
0x269e   : > { %v2907_v54 = vpop.xlane.xlu1 %2906 }
0x269f   : > { %v2908_v56 = vsub.f32 %v2901_v3, %v2907_v54 }
0x26a1   : > { %v2909_v57 = vmul.f32 1.442695, %v2908_v56 }
0x26a3   : > { %3734 = vpow2.f32 %v2909_v57 }
0x26a9   : > { %v3735_v58 = vpop.eup %3734 }
0x26aa   : > { %v2911_v1 = vsel %vm2904_vm10, %v3735_v58, 0.0 }
0x26ab   : > { %2912 = vadd.xlane.f32.xlu2 %v2911_v1 }
0x271e   : > { %v2913_v45 = vpop.xlane.xlu2 %2912 }
0x271f   : > { %3736 = vrcp.f32 %v2913_v45 }
0x2725   : > { %v3737_v59 = vpop.eup %3736 }
0x2726   : > { %v2915_v7 = vmul.f32 %v3737_v59, %v3735_v58 }
0x2728   : > { %3328 = vmatmul.msk.f32.vlgmr.msrb.gmra.mxu0 %vm2904_vm10, %v2915_v7 }
0x27a5   : > { %v2936_v60 = vpop.f32.mrf.mxu0 }
0x27a6   : > { %v2939_v62 = vadd.f32 %v2936_v60, %v2790_v46 }
0x27a8   : > { %2940 = vst.msk [vmem:[%s1110_s24] sm:$0xff] %vm1146_vm6, %v2939_v62 }
0x27a9   : > { %4426 = shalt.err (!%p4423_p9)
}
0x27aa   : > { %3419 = dma.vmem_to_hbm [thread:$0]  (%p4869_p13), %s2955_s18, 128, %s2957_s10, %s2942_s3  }
0x27ab PF: > { %s5322_s1 = sld [smem:[#allocation52_spill]]  ;;  %p5323_p10 = scmp.ge.s32.totalorder %s4509_s30, 2 }
0x27ad   : > { %p3490_p11 = pnand %p5323_p10, %p4874_p4 }
0x27af   : > { %p3491_p0 = pneg %p3490_p11 }
0x27b1   : > { %s2968_s16 = sand.u32 1, %s5322_s1  }
0x27b2   : > { %s2969_s24 = scalar_lea.sflag [#allocation5], %s2968_s16 }
0x27b3   : > { %4492 = dma.done.wait (%p3491_p0), %s2969_s24, 128  }
0x27b4   : > { %4494 = vsyncadd (%p3491_p0), %s2969_s24, 4294967168  ;;  %s5324_s0 = smov %s4861_s29  ;;  %p49_p2 = scmp.ge.s32.totalorder %s4849_s13, 4  }
0x27b5   : > { %s5325_s29 = smov %s4501_s2  ;;  %s5326_s2 = smov %s4505_s6 }
0x27b6   : > { %s5327_s6 = smov %s5324_s0  ;;  %s5328_s30 = smov %s4849_s13 }
0x27b7   :  { %51 = sbr.rel (!%p49_p2) target bundleno = 34 (0x22), region = 257 }
0x27bc   :  { %2975 = vsyncpa [#allocation4], 1 }
0x27bd   :  { %2977 = vsyncpa [#allocation4 + $0x1], 1 }
0x27be   :  { %2978 = vsyncpa [#allocation7], 1 }
0x27bf   :  { %2979 = vsyncpa [#allocation10], 1 }
0x27c0   :  { %2980 = vsyncpa [#allocation13], 1 }
0x27c1   :  { %2981 = vsyncpa [#allocation16], 1 }
0x27c2   :  { %2982 = vsyncpa [#allocation19], 1 }
0x27c3   :  { %2983 = vsyncpa [#allocation22], 1 }
0x27c4   :  { %2984 = vsyncpa [#allocation25], 1 }
0x27c5   :  { %2985 = vsyncpa [#allocation28], 1 }
0x27c6   :  { %2986 = vsyncpa [#allocation31], 1 }
0x27c7   :  { %2987 = vsyncpa [#allocation34], 1 }
0x27c8   :  { %2988 = vsyncpa [#allocation37], 1 }
0x27c9   :  { %2989 = vsyncpa [#allocation5], 1 }
0x27ca   :  { %2991 = vsyncpa [#allocation5 + $0x1], 1 }

</bundles_post_ra>
